<compile_context>
chip_gen: v5e
topology: v5e:2x2
jax: 0.10.0
libtpu: 0.0.40
codegen_flags: <defaults>
</compile_context>

<pallas_src>
import functools

import jax
import jax.numpy as jnp
from jax import lax
from jax.experimental import pallas as pl
from jax.experimental.pallas import tpu as pltpu


_VMEM_BLOCK_BUDGET = 16 * 1024 * 1024   # conservative live-block budget (fits v5e/v6e/v7x)
_VMEM_LIMIT = 40 * 1024 * 1024          # explicit scoped-VMEM request (< v7x 64 MiB physical)


# ----------------------------------------------------------------------------------- #
# Kernels
# ----------------------------------------------------------------------------------- #
def _upsample_conv_kernel(x_ref, halo_ref, w_ref, b_ref, o_ref, *, wp):
    """Fused nearest-2x upsample + 3x3 conv (parity decomposition), one row tile.

    x_ref:    (1, L, C) bf16   row tile of the zero-padded image, flattened (rows*Wp, C)
    halo_ref: (1, 1, 3*wp, C)  next 3 padded rows (halo; 3rd row only feeds junk cols)
    w_ref:    (2, 2, 2, 2, C, C) bf16  parity-folded weights [ri, rj, u, v, cin, cout]
    b_ref:    (1, C) f32       bias
    o_ref:    (1, 2, 2, L, C) f32  output, parity-major; columns >= W per row are junk
    """
    L = x_ref.shape[1]
    C = x_ref.shape[2]

    # Padded row slab for this tile, resident in VMEM: (TH + 3) * wp rows.
    slab = jnp.concatenate([x_ref[0], halo_ref[0, 0]], axis=0)

    # Nine shifted patches (dy, dx in 0..2), formed once and reused by the 16 matmuls.
    # Because the slab is row-major flattened, a (dy, dx) shift is a contiguous slice.
    patches = {}
    for dy in range(3):
        for dx in range(3):
            s = dy * wp + dx
            patches[(dy, dx)] = slab[s:s + L, :]

    bias = b_ref[...]                                   # (1, C) f32

    for ri in range(2):                                 # output row parity
        for rj in range(2):                             # output col parity
            acc = jnp.zeros((L, C), jnp.float32)
            for u in range(2):
                for v in range(2):
                    acc = acc + jnp.dot(
                        patches[(ri + u, rj + v)],      # (L, C) bf16
                        w_ref[ri, rj, u, v],            # (C, C) bf16
                        preferred_element_type=jnp.float32)
            o_ref[0, ri, rj] = (acc + bias).astype(o_ref.dtype)


def _nearest2x_kernel(x_ref, o_ref):
    """Pure nearest-2x upsample (with_conv=False): broadcast each pixel to 4 parities."""
    v = x_ref[0]                                        # (L, C)
    for ri in range(2):
        for rj in range(2):
            o_ref[0, ri, rj] = v


# ----------------------------------------------------------------------------------- #
# Tiling helper
# ----------------------------------------------------------------------------------- #
def _pick_row_tile(H, bytes_per_row, vmem_budget, *, prefer_multi_tile,
                   row_constraint, cap_rows=None):
    """Largest divisor TH of H with TH*bytes_per_row <= budget and row_constraint(TH).

    If prefer_multi_tile (e.g. N == 1 on a 2-core chip), additionally try TH <= H // 2 so
    the row-tile grid axis has extent >= 2.  Falls back to the smallest legal tile.
    """
    max_rows = max(1, vmem_budget // max(1, bytes_per_row))
    if cap_rows is not None:
        max_rows = min(max_rows, cap_rows)
    divisors = [d for d in range(1, H + 1) if H % d == 0]
    legal = [d for d in divisors if row_constraint(d)]
    if not legal:
        return H

    def best(cap):
        cands = [d for d in legal if d <= cap]
        return max(cands) if cands else None

    th = None
    if prefer_multi_tile and H > 1:
        th = best(min(max_rows, max(1, H // 2)))
    if th is None:
        th = best(max_rows)
    if th is None:
        th = min(legal)   # nothing fits the budget/cap; best-effort smallest legal tile
    return th


# ----------------------------------------------------------------------------------- #
# Wrappers
# ----------------------------------------------------------------------------------- #
def _upsample_conv(x_nhwc, weight_oihw, bias, max_tile_rows=None):
    """Fused path.  Returns parity-major output (N, 2, 2, H, W, C), f32."""
    N, H, W, C = x_nhwc.shape
    Wp = W + 2

    # Fold the nearest-2x upsample into the conv weights (parity decomposition):
    # output row 2a+ri reads input rows a-1+u (ri=0) / a+u (ri=1); M maps taps -> offsets.
    w_t = jnp.transpose(weight_oihw.astype(jnp.float32), (2, 3, 1, 0))   # (3,3,Cin,Cout)
    M = jnp.array([[[1, 0, 0], [0, 1, 1]],
                   [[1, 1, 0], [0, 0, 1]]], jnp.float32)                 # (parity, u, tap)
    w_eff = jnp.einsum('auk,bvl,klio->abuvio', M, M, w_t).astype(jnp.bfloat16)
    b2 = bias.astype(jnp.float32).reshape(1, C)

    # Zero-padded NHWC input, stored ONCE in bf16 (no im2col replication in HBM).
    xpad = jnp.pad(x_nhwc.astype(jnp.bfloat16), ((0, 0), (1, 1), (1, 1), (0, 0)))
    main = xpad[:, :H].reshape(N, H * Wp, C)            # flattened padded rows 0..H-1

    # Row-tile size from a VMEM budget (double-buffered in/out + patches + weights).
    weight_vmem = 2 * 16 * C * C * 2                    # double-buffered bf16 w_eff
    budget = max(_VMEM_BLOCK_BUDGET - weight_vmem, 2 * 1024 * 1024)
    bytes_per_row = 64 * Wp * C                         # conservative live-bytes estimate
    th = _pick_row_tile(
        H, bytes_per_row, budget,
        prefer_multi_tile=(N == 1),
        row_constraint=lambda t: (t * Wp) % 16 == 0 or t == H,
        cap_rows=max_tile_rows)
    T = H // th
    L = th * Wp

    # 3-row halo per tile (padded rows (t+1)*th .. (t+1)*th+2); clamp the last index.
    starts = (jnp.arange(T, dtype=jnp.int32) + 1) * th
    idx = jnp.minimum(starts[:, None] + jnp.arange(3, dtype=jnp.int32)[None, :], H + 1)
    halo = jnp.take(xpad, idx, axis=1).reshape(N, T, 3 * Wp, C)

    kernel = functools.partial(_upsample_conv_kernel, wp=Wp)
    out = pl.pallas_call(
        kernel,
        out_shape=jax.ShapeDtypeStruct((N, 2, 2, H * Wp, C), jnp.float32),
        grid_spec=pltpu.PrefetchScalarGridSpec(
            num_scalar_prefetch=0,
            grid=(N, T),
            in_specs=[
                pl.BlockSpec((1, L, C), lambda n, t: (n, t, 0)),
                pl.BlockSpec((1, 1, 3 * Wp, C), lambda n, t: (n, t, 0, 0)),
                # Constant index maps: fetched once, never re-DMA'd across the grid.
                pl.BlockSpec((2, 2, 2, 2, C, C), lambda n, t: (0, 0, 0, 0, 0, 0)),
                pl.BlockSpec((1, C), lambda n, t: (0, 0)),
            ],
            out_specs=pl.BlockSpec((1, 2, 2, L, C), lambda n, t: (n, 0, 0, t, 0)),
        ),
        compiler_params=pltpu.CompilerParams(
            dimension_semantics=("parallel", "parallel"),
            vmem_limit_bytes=_VMEM_LIMIT),
    )(main, halo, w_eff, b2)

    # Drop the 2 junk columns per row that come from the flattened-row trick.
    out = out.reshape(N, 2, 2, H, Wp, C)[:, :, :, :, :W, :]
    return out


def _nearest2x(x_nhwc, max_tile_rows=None):
    """with_conv=False short-circuit: trivial broadcast kernel, no matmuls."""
    N, H, W, C = x_nhwc.shape
    xf = x_nhwc.reshape(N, H * W, C)
    th = _pick_row_tile(
        H, 48 * W * C, _VMEM_BLOCK_BUDGET,
        prefer_multi_tile=(N == 1),
        row_constraint=lambda t: (t * W) % 8 == 0 or t == H,
        cap_rows=max_tile_rows)
    T = H // th
    L = th * W

    out = pl.pallas_call(
        _nearest2x_kernel,
        out_shape=jax.ShapeDtypeStruct((N, 2, 2, H * W, C), x_nhwc.dtype),
        grid_spec=pltpu.PrefetchScalarGridSpec(
            num_scalar_prefetch=0,
            grid=(N, T),
            in_specs=[pl.BlockSpec((1, L, C), lambda n, t: (n, t, 0))],
            out_specs=pl.BlockSpec((1, 2, 2, L, C), lambda n, t: (n, 0, 0, t, 0)),
        ),
        compiler_params=pltpu.CompilerParams(
            dimension_semantics=("parallel", "parallel"),
            vmem_limit_bytes=_VMEM_LIMIT),
    )(xf)
    return out.reshape(N, 2, 2, H, W, C)


def upsample_forward(x_nchw, weight_oihw=None, bias=None, with_conv=True,
                     data_format="NCHW", max_tile_rows=None):
    """Equivalent of Upsample.forward: nearest 2x upsample, then optional Conv2d(C,C,3,1,1).

    Public API is NCHW (PyTorch convention).  Pass data_format="NHWC" to keep a
    channels-last pipeline (the single un-interleave transpose is still required).
    """
    N, C, H, W = x_nchw.shape
    x = jnp.transpose(x_nchw, (0, 2, 3, 1)).astype(jnp.float32)     # NHWC

    if with_conv:
        assert weight_oihw is not None and bias is not None
        assert weight_oihw.shape == (C, C, 3, 3)
        out6 = _upsample_conv(x, weight_oihw, bias, max_tile_rows)  # (N,2,2,H,W,C) f32
    else:
        out6 = _nearest2x(x, max_tile_rows)                         # (N,2,2,H,W,C)

    # Single fused transpose: parity-major -> interleaved spatial, in the requested layout.
    if data_format == "NCHW":
        y = out6.transpose(0, 5, 3, 1, 4, 2).reshape(N, C, 2 * H, 2 * W)
    else:  # "NHWC"
        y = out6.transpose(0, 3, 1, 4, 2, 5).reshape(N, 2 * H, 2 * W, C)
    return y


# ----------------------------------------------------------------------------------- #
# Pure-JAX reference (matches the PyTorch module)
# ----------------------------------------------------------------------------------- #
def upsample_reference(x_nchw, weight_oihw, bias, with_conv=True):
    up = jnp.repeat(jnp.repeat(x_nchw, 2, axis=2), 2, axis=3)
    if not with_conv:
        return up
    y = lax.conv_general_dilated(
        up, weight_oihw, window_strides=(1, 1), padding=((1, 1), (1, 1)),
        dimension_numbers=('NCHW', 'OIHW', 'NCHW'))
    return y + bias[None, :, None, None]


if __name__ == "__main__":
    key = jax.random.PRNGKey(0)
    kx, kw, kb, kx2 = jax.random.split(key, 4)

    N, C, H, W = 2, 4, 16, 16
    x = jax.random.normal(kx, (N, C, H, W), jnp.float32)
    # deterministic synthetic Conv2d(C, C, 3, 1, 1) params
    w = jax.random.normal(kw, (C, C, 3, 3), jnp.float32) * 0.1
    b = jax.random.normal(kb, (C,), jnp.float32) * 0.1

    # 1) with_conv=True, default tiling (whole-image row tile, grid (N, 1)).
    out = jax.block_until_ready(upsample_forward(x, w, b, with_conv=True))
    ref = upsample_reference(x, w, b, with_conv=True)
    assert out.shape == (N, C, 2 * H, 2 * W)
    err = float(jnp.max(jnp.abs(out - ref)))
    assert err < 2e-2, f"with_conv=True mismatch, max abs err {err}"

    # 2) with_conv=True, N=1 with forced small row tiles (exercises halo + row grid).
    x1 = jax.random.normal(kx2, (1, C, H, W), jnp.float32)
    out2 = jax.block_until_ready(
        upsample_forward(x1, w, b, with_conv=True, max_tile_rows=4))
    ref2 = upsample_reference(x1, w, b, with_conv=True)
    err2 = float(jnp.max(jnp.abs(out2 - ref2)))
    assert err2 < 2e-2, f"tiled with_conv=True mismatch, max abs err {err2}"

    # 3) with_conv=False short-circuit (pure nearest-neighbour upsample, exact).
    out3 = jax.block_until_ready(upsample_forward(x, with_conv=False))
    ref3 = upsample_reference(x, w, b, with_conv=False)
    assert jnp.array_equal(out3, ref3), "with_conv=False mismatch"

    # TODO(synk): the full OpenAIDiscreteVAE enc/dec stacks load pretrained weights from
    # the OpenAI CDN and are not reproduced here; this kernel covers the decoder's
    # upsample(+3x3 conv) block.
    print("KERNEL_OK")
</pallas_src>

<mosaic_0001>
module attributes {stable_mosaic.version = 11 : i64} {
  func.func @_upsample_conv_kernel(%arg0: i32, %arg1: i32, %arg2: memref<1x288x4xbf16, #tpu.memory_space<vmem>>, %arg3: memref<1x1x54x4xbf16, #tpu.memory_space<vmem>>, %arg4: memref<2x2x2x2x4x4xbf16, #tpu.memory_space<vmem>>, %arg5: memref<1x4xf32, #tpu.memory_space<vmem>>, %arg6: memref<1x2x2x288x4xf32, #tpu.memory_space<vmem>>) attributes {dimension_semantics = [#tpu.dimension_semantics<parallel>, #tpu.dimension_semantics<parallel>], iteration_bounds = array<i64: 2, 1>, scalar_prefetch = 0 : i64, scratch_operands = 0 : i64, tpu.core_type = #tpu.core_type<tc>, window_params = [{transform_indices = @transform_0, window_bounds = array<i64: 1, 288, 4>}, {transform_indices = @transform_1, window_bounds = array<i64: 1, 1, 54, 4>}, {pipeline_mode = #tpu.pipeline_mode<synchronous>, transform_indices = @transform_2, window_bounds = array<i64: 2, 2, 2, 2, 4, 4>}, {pipeline_mode = #tpu.pipeline_mode<synchronous>, transform_indices = @transform_3, window_bounds = array<i64: 1, 4>}, {transform_indices = @transform_4, window_bounds = array<i64: 1, 2, 2, 288, 4>}]} {
    %c0 = arith.constant 0 : index
    %c0_0 = arith.constant 0 : index
    %c0_1 = arith.constant 0 : index
    %0 = vector.load %arg2[%c0, %c0_0, %c0_1] : memref<1x288x4xbf16, #tpu.memory_space<vmem>>, vector<1x288x4xbf16>
    %1 = vector.shape_cast %0 : vector<1x288x4xbf16> to vector<288x4xbf16>
    %c0_2 = arith.constant 0 : index
    %c0_3 = arith.constant 0 : index
    %c0_4 = arith.constant 0 : index
    %c0_5 = arith.constant 0 : index
    %2 = vector.load %arg3[%c0_2, %c0_3, %c0_4, %c0_5] : memref<1x1x54x4xbf16, #tpu.memory_space<vmem>>, vector<1x1x54x4xbf16>
    %3 = vector.shape_cast %2 : vector<1x1x54x4xbf16> to vector<54x4xbf16>
    %4 = tpu.concatenate %1, %3 in 0 : vector<288x4xbf16>, vector<54x4xbf16> -> vector<342x4xbf16>
    %5 = vector.extract_strided_slice %4 {offsets = [0, 0], sizes = [288, 4], strides = [1, 1]} : vector<342x4xbf16> to vector<288x4xbf16>
    %6 = vector.extract_strided_slice %4 {offsets = [1, 0], sizes = [288, 4], strides = [1, 1]} : vector<342x4xbf16> to vector<288x4xbf16>
    %7 = vector.extract_strided_slice %4 {offsets = [2, 0], sizes = [288, 4], strides = [1, 1]} : vector<342x4xbf16> to vector<288x4xbf16>
    %8 = vector.extract_strided_slice %4 {offsets = [18, 0], sizes = [288, 4], strides = [1, 1]} : vector<342x4xbf16> to vector<288x4xbf16>
    %9 = vector.extract_strided_slice %4 {offsets = [19, 0], sizes = [288, 4], strides = [1, 1]} : vector<342x4xbf16> to vector<288x4xbf16>
    %10 = vector.extract_strided_slice %4 {offsets = [20, 0], sizes = [288, 4], strides = [1, 1]} : vector<342x4xbf16> to vector<288x4xbf16>
    %11 = vector.extract_strided_slice %4 {offsets = [36, 0], sizes = [288, 4], strides = [1, 1]} : vector<342x4xbf16> to vector<288x4xbf16>
    %12 = vector.extract_strided_slice %4 {offsets = [37, 0], sizes = [288, 4], strides = [1, 1]} : vector<342x4xbf16> to vector<288x4xbf16>
    %13 = vector.extract_strided_slice %4 {offsets = [38, 0], sizes = [288, 4], strides = [1, 1]} : vector<342x4xbf16> to vector<288x4xbf16>
    %c0_6 = arith.constant 0 : index
    %c0_7 = arith.constant 0 : index
    %14 = vector.load %arg5[%c0_6, %c0_7] : memref<1x4xf32, #tpu.memory_space<vmem>>, vector<1x4xf32>
    %cst = arith.constant 0.000000e+00 : f32
    %15 = vector.broadcast %cst : f32 to vector<288x4xf32>
    %c0_8 = arith.constant 0 : index
    %c0_9 = arith.constant 0 : index
    %c0_10 = arith.constant 0 : index
    %c0_11 = arith.constant 0 : index
    %c0_12 = arith.constant 0 : index
    %c0_13 = arith.constant 0 : index
    %16 = vector.load %arg4[%c0_8, %c0_9, %c0_10, %c0_11, %c0_12, %c0_13] : memref<2x2x2x2x4x4xbf16, #tpu.memory_space<vmem>>, vector<1x1x1x1x4x4xbf16>
    %17 = vector.shape_cast %16 : vector<1x1x1x1x4x4xbf16> to vector<4x4xbf16>
    %cst_14 = arith.constant dense<0.000000e+00> : vector<288x4xf32>
    %18 = tpu.matmul %5, %17, %cst_14 {dimension_numbers = #tpu.dot_dimension_numbers<[1], [0], [0], [1], [0, 0, 1, 1], [], []>} : vector<288x4xbf16>, vector<4x4xbf16>, vector<288x4xf32> -> vector<288x4xf32>
    %19 = arith.addf %15, %18 : vector<288x4xf32>
    %c0_15 = arith.constant 0 : index
    %c0_16 = arith.constant 0 : index
    %c0_17 = arith.constant 0 : index
    %c1 = arith.constant 1 : index
    %c0_18 = arith.constant 0 : index
    %c0_19 = arith.constant 0 : index
    %20 = vector.load %arg4[%c0_15, %c0_16, %c0_17, %c1, %c0_18, %c0_19] : memref<2x2x2x2x4x4xbf16, #tpu.memory_space<vmem>>, vector<1x1x1x1x4x4xbf16>
    %21 = vector.shape_cast %20 : vector<1x1x1x1x4x4xbf16> to vector<4x4xbf16>
    %cst_20 = arith.constant dense<0.000000e+00> : vector<288x4xf32>
    %22 = tpu.matmul %6, %21, %cst_20 {dimension_numbers = #tpu.dot_dimension_numbers<[1], [0], [0], [1], [0, 0, 1, 1], [], []>} : vector<288x4xbf16>, vector<4x4xbf16>, vector<288x4xf32> -> vector<288x4xf32>
    %23 = arith.addf %19, %22 : vector<288x4xf32>
    %c0_21 = arith.constant 0 : index
    %c0_22 = arith.constant 0 : index
    %c1_23 = arith.constant 1 : index
    %c0_24 = arith.constant 0 : index
    %c0_25 = arith.constant 0 : index
    %c0_26 = arith.constant 0 : index
    %24 = vector.load %arg4[%c0_21, %c0_22, %c1_23, %c0_24, %c0_25, %c0_26] : memref<2x2x2x2x4x4xbf16, #tpu.memory_space<vmem>>, vector<1x1x1x1x4x4xbf16>
    %25 = vector.shape_cast %24 : vector<1x1x1x1x4x4xbf16> to vector<4x4xbf16>
    %cst_27 = arith.constant dense<0.000000e+00> : vector<288x4xf32>
    %26 = tpu.matmul %8, %25, %cst_27 {dimension_numbers = #tpu.dot_dimension_numbers<[1], [0], [0], [1], [0, 0, 1, 1], [], []>} : vector<288x4xbf16>, vector<4x4xbf16>, vector<288x4xf32> -> vector<288x4xf32>
    %27 = arith.addf %23, %26 : vector<288x4xf32>
    %c0_28 = arith.constant 0 : index
    %c0_29 = arith.constant 0 : index
    %c1_30 = arith.constant 1 : index
    %c1_31 = arith.constant 1 : index
    %c0_32 = arith.constant 0 : index
    %c0_33 = arith.constant 0 : index
    %28 = vector.load %arg4[%c0_28, %c0_29, %c1_30, %c1_31, %c0_32, %c0_33] : memref<2x2x2x2x4x4xbf16, #tpu.memory_space<vmem>>, vector<1x1x1x1x4x4xbf16>
    %29 = vector.shape_cast %28 : vector<1x1x1x1x4x4xbf16> to vector<4x4xbf16>
    %cst_34 = arith.constant dense<0.000000e+00> : vector<288x4xf32>
    %30 = tpu.matmul %9, %29, %cst_34 {dimension_numbers = #tpu.dot_dimension_numbers<[1], [0], [0], [1], [0, 0, 1, 1], [], []>} : vector<288x4xbf16>, vector<4x4xbf16>, vector<288x4xf32> -> vector<288x4xf32>
    %31 = arith.addf %27, %30 : vector<288x4xf32>
    %32 = vector.broadcast %14 : vector<1x4xf32> to vector<288x4xf32>
    %33 = arith.addf %31, %32 : vector<288x4xf32>
    %c0_35 = arith.constant 0 : index
    %c0_36 = arith.constant 0 : index
    %c0_37 = arith.constant 0 : index
    %c0_38 = arith.constant 0 : index
    %c0_39 = arith.constant 0 : index
    %34 = vector.load %arg6[%c0_35, %c0_36, %c0_37, %c0_38, %c0_39] : memref<1x2x2x288x4xf32, #tpu.memory_space<vmem>>, vector<1x1x1x288x4xf32>
    %35 = vector.shape_cast %34 : vector<1x1x1x288x4xf32> to vector<288x4xf32>
    %36 = vector.shape_cast %33 : vector<288x4xf32> to vector<1x1x1x288x4xf32>
    tpu.vector_store %arg6[%c0_35, %c0_36, %c0_37, %c0_38, %c0_39], %36 {strides = array<i32>} : memref<1x2x2x288x4xf32, #tpu.memory_space<vmem>>, vector<1x1x1x288x4xf32>,
    %cst_40 = arith.constant 0.000000e+00 : f32
    %37 = vector.broadcast %cst_40 : f32 to vector<288x4xf32>
    %c0_41 = arith.constant 0 : index
    %c1_42 = arith.constant 1 : index
    %c0_43 = arith.constant 0 : index
    %c0_44 = arith.constant 0 : index
    %c0_45 = arith.constant 0 : index
    %c0_46 = arith.constant 0 : index
    %38 = vector.load %arg4[%c0_41, %c1_42, %c0_43, %c0_44, %c0_45, %c0_46] : memref<2x2x2x2x4x4xbf16, #tpu.memory_space<vmem>>, vector<1x1x1x1x4x4xbf16>
    %39 = vector.shape_cast %38 : vector<1x1x1x1x4x4xbf16> to vector<4x4xbf16>
    %cst_47 = arith.constant dense<0.000000e+00> : vector<288x4xf32>
    %40 = tpu.matmul %6, %39, %cst_47 {dimension_numbers = #tpu.dot_dimension_numbers<[1], [0], [0], [1], [0, 0, 1, 1], [], []>} : vector<288x4xbf16>, vector<4x4xbf16>, vector<288x4xf32> -> vector<288x4xf32>
    %41 = arith.addf %37, %40 : vector<288x4xf32>
    %c0_48 = arith.constant 0 : index
    %c1_49 = arith.constant 1 : index
    %c0_50 = arith.constant 0 : index
    %c1_51 = arith.constant 1 : index
    %c0_52 = arith.constant 0 : index
    %c0_53 = arith.constant 0 : index
    %42 = vector.load %arg4[%c0_48, %c1_49, %c0_50, %c1_51, %c0_52, %c0_53] : memref<2x2x2x2x4x4xbf16, #tpu.memory_space<vmem>>, vector<1x1x1x1x4x4xbf16>
    %43 = vector.shape_cast %42 : vector<1x1x1x1x4x4xbf16> to vector<4x4xbf16>
    %cst_54 = arith.constant dense<0.000000e+00> : vector<288x4xf32>
    %44 = tpu.matmul %7, %43, %cst_54 {dimension_numbers = #tpu.dot_dimension_numbers<[1], [0], [0], [1], [0, 0, 1, 1], [], []>} : vector<288x4xbf16>, vector<4x4xbf16>, vector<288x4xf32> -> vector<288x4xf32>
    %45 = arith.addf %41, %44 : vector<288x4xf32>
    %c0_55 = arith.constant 0 : index
    %c1_56 = arith.constant 1 : index
    %c1_57 = arith.constant 1 : index
    %c0_58 = arith.constant 0 : index
    %c0_59 = arith.constant 0 : index
    %c0_60 = arith.constant 0 : index
    %46 = vector.load %arg4[%c0_55, %c1_56, %c1_57, %c0_58, %c0_59, %c0_60] : memref<2x2x2x2x4x4xbf16, #tpu.memory_space<vmem>>, vector<1x1x1x1x4x4xbf16>
    %47 = vector.shape_cast %46 : vector<1x1x1x1x4x4xbf16> to vector<4x4xbf16>
    %cst_61 = arith.constant dense<0.000000e+00> : vector<288x4xf32>
    %48 = tpu.matmul %9, %47, %cst_61 {dimension_numbers = #tpu.dot_dimension_numbers<[1], [0], [0], [1], [0, 0, 1, 1], [], []>} : vector<288x4xbf16>, vector<4x4xbf16>, vector<288x4xf32> -> vector<288x4xf32>
    %49 = arith.addf %45, %48 : vector<288x4xf32>
    %c0_62 = arith.constant 0 : index
    %c1_63 = arith.constant 1 : index
    %c1_64 = arith.constant 1 : index
    %c1_65 = arith.constant 1 : index
    %c0_66 = arith.constant 0 : index
    %c0_67 = arith.constant 0 : index
    %50 = vector.load %arg4[%c0_62, %c1_63, %c1_64, %c1_65, %c0_66, %c0_67] : memref<2x2x2x2x4x4xbf16, #tpu.memory_space<vmem>>, vector<1x1x1x1x4x4xbf16>
    %51 = vector.shape_cast %50 : vector<1x1x1x1x4x4xbf16> to vector<4x4xbf16>
    %cst_68 = arith.constant dense<0.000000e+00> : vector<288x4xf32>
    %52 = tpu.matmul %10, %51, %cst_68 {dimension_numbers = #tpu.dot_dimension_numbers<[1], [0], [0], [1], [0, 0, 1, 1], [], []>} : vector<288x4xbf16>, vector<4x4xbf16>, vector<288x4xf32> -> vector<288x4xf32>
    %53 = arith.addf %49, %52 : vector<288x4xf32>
    %54 = vector.broadcast %14 : vector<1x4xf32> to vector<288x4xf32>
    %55 = arith.addf %53, %54 : vector<288x4xf32>
    %c0_69 = arith.constant 0 : index
    %c0_70 = arith.constant 0 : index
    %c1_71 = arith.constant 1 : index
    %c0_72 = arith.constant 0 : index
    %c0_73 = arith.constant 0 : index
    %56 = vector.load %arg6[%c0_69, %c0_70, %c1_71, %c0_72, %c0_73] : memref<1x2x2x288x4xf32, #tpu.memory_space<vmem>>, vector<1x1x1x288x4xf32>
    %57 = vector.shape_cast %56 : vector<1x1x1x288x4xf32> to vector<288x4xf32>
    %58 = vector.shape_cast %55 : vector<288x4xf32> to vector<1x1x1x288x4xf32>
    tpu.vector_store %arg6[%c0_69, %c0_70, %c1_71, %c0_72, %c0_73], %58 {strides = array<i32>} : memref<1x2x2x288x4xf32, #tpu.memory_space<vmem>>, vector<1x1x1x288x4xf32>,
    %cst_74 = arith.constant 0.000000e+00 : f32
    %59 = vector.broadcast %cst_74 : f32 to vector<288x4xf32>
    %c1_75 = arith.constant 1 : index
    %c0_76 = arith.constant 0 : index
    %c0_77 = arith.constant 0 : index
    %c0_78 = arith.constant 0 : index
    %c0_79 = arith.constant 0 : index
    %c0_80 = arith.constant 0 : index
    %60 = vector.load %arg4[%c1_75, %c0_76, %c0_77, %c0_78, %c0_79, %c0_80] : memref<2x2x2x2x4x4xbf16, #tpu.memory_space<vmem>>, vector<1x1x1x1x4x4xbf16>
    %61 = vector.shape_cast %60 : vector<1x1x1x1x4x4xbf16> to vector<4x4xbf16>
    %cst_81 = arith.constant dense<0.000000e+00> : vector<288x4xf32>
    %62 = tpu.matmul %8, %61, %cst_81 {dimension_numbers = #tpu.dot_dimension_numbers<[1], [0], [0], [1], [0, 0, 1, 1], [], []>} : vector<288x4xbf16>, vector<4x4xbf16>, vector<288x4xf32> -> vector<288x4xf32>
    %63 = arith.addf %59, %62 : vector<288x4xf32>
    %c1_82 = arith.constant 1 : index
    %c0_83 = arith.constant 0 : index
    %c0_84 = arith.constant 0 : index
    %c1_85 = arith.constant 1 : index
    %c0_86 = arith.constant 0 : index
    %c0_87 = arith.constant 0 : index
    %64 = vector.load %arg4[%c1_82, %c0_83, %c0_84, %c1_85, %c0_86, %c0_87] : memref<2x2x2x2x4x4xbf16, #tpu.memory_space<vmem>>, vector<1x1x1x1x4x4xbf16>
    %65 = vector.shape_cast %64 : vector<1x1x1x1x4x4xbf16> to vector<4x4xbf16>
    %cst_88 = arith.constant dense<0.000000e+00> : vector<288x4xf32>
    %66 = tpu.matmul %9, %65, %cst_88 {dimension_numbers = #tpu.dot_dimension_numbers<[1], [0], [0], [1], [0, 0, 1, 1], [], []>} : vector<288x4xbf16>, vector<4x4xbf16>, vector<288x4xf32> -> vector<288x4xf32>
    %67 = arith.addf %63, %66 : vector<288x4xf32>
    %c1_89 = arith.constant 1 : index
    %c0_90 = arith.constant 0 : index
    %c1_91 = arith.constant 1 : index
    %c0_92 = arith.constant 0 : index
    %c0_93 = arith.constant 0 : index
    %c0_94 = arith.constant 0 : index
    %68 = vector.load %arg4[%c1_89, %c0_90, %c1_91, %c0_92, %c0_93, %c0_94] : memref<2x2x2x2x4x4xbf16, #tpu.memory_space<vmem>>, vector<1x1x1x1x4x4xbf16>
    %69 = vector.shape_cast %68 : vector<1x1x1x1x4x4xbf16> to vector<4x4xbf16>
    %cst_95 = arith.constant dense<0.000000e+00> : vector<288x4xf32>
    %70 = tpu.matmul %11, %69, %cst_95 {dimension_numbers = #tpu.dot_dimension_numbers<[1], [0], [0], [1], [0, 0, 1, 1], [], []>} : vector<288x4xbf16>, vector<4x4xbf16>, vector<288x4xf32> -> vector<288x4xf32>
    %71 = arith.addf %67, %70 : vector<288x4xf32>
    %c1_96 = arith.constant 1 : index
    %c0_97 = arith.constant 0 : index
    %c1_98 = arith.constant 1 : index
    %c1_99 = arith.constant 1 : index
    %c0_100 = arith.constant 0 : index
    %c0_101 = arith.constant 0 : index
    %72 = vector.load %arg4[%c1_96, %c0_97, %c1_98, %c1_99, %c0_100, %c0_101] : memref<2x2x2x2x4x4xbf16, #tpu.memory_space<vmem>>, vector<1x1x1x1x4x4xbf16>
    %73 = vector.shape_cast %72 : vector<1x1x1x1x4x4xbf16> to vector<4x4xbf16>
    %cst_102 = arith.constant dense<0.000000e+00> : vector<288x4xf32>
    %74 = tpu.matmul %12, %73, %cst_102 {dimension_numbers = #tpu.dot_dimension_numbers<[1], [0], [0], [1], [0, 0, 1, 1], [], []>} : vector<288x4xbf16>, vector<4x4xbf16>, vector<288x4xf32> -> vector<288x4xf32>
    %75 = arith.addf %71, %74 : vector<288x4xf32>
    %76 = vector.broadcast %14 : vector<1x4xf32> to vector<288x4xf32>
    %77 = arith.addf %75, %76 : vector<288x4xf32>
    %c0_103 = arith.constant 0 : index
    %c1_104 = arith.constant 1 : index
    %c0_105 = arith.constant 0 : index
    %c0_106 = arith.constant 0 : index
    %c0_107 = arith.constant 0 : index
    %78 = vector.load %arg6[%c0_103, %c1_104, %c0_105, %c0_106, %c0_107] : memref<1x2x2x288x4xf32, #tpu.memory_space<vmem>>, vector<1x1x1x288x4xf32>
    %79 = vector.shape_cast %78 : vector<1x1x1x288x4xf32> to vector<288x4xf32>
    %80 = vector.shape_cast %77 : vector<288x4xf32> to vector<1x1x1x288x4xf32>
    tpu.vector_store %arg6[%c0_103, %c1_104, %c0_105, %c0_106, %c0_107], %80 {strides = array<i32>} : memref<1x2x2x288x4xf32, #tpu.memory_space<vmem>>, vector<1x1x1x288x4xf32>,
    %cst_108 = arith.constant 0.000000e+00 : f32
    %81 = vector.broadcast %cst_108 : f32 to vector<288x4xf32>
    %c1_109 = arith.constant 1 : index
    %c1_110 = arith.constant 1 : index
    %c0_111 = arith.constant 0 : index
    %c0_112 = arith.constant 0 : index
    %c0_113 = arith.constant 0 : index
    %c0_114 = arith.constant 0 : index
    %82 = vector.load %arg4[%c1_109, %c1_110, %c0_111, %c0_112, %c0_113, %c0_114] : memref<2x2x2x2x4x4xbf16, #tpu.memory_space<vmem>>, vector<1x1x1x1x4x4xbf16>
    %83 = vector.shape_cast %82 : vector<1x1x1x1x4x4xbf16> to vector<4x4xbf16>
    %cst_115 = arith.constant dense<0.000000e+00> : vector<288x4xf32>
    %84 = tpu.matmul %9, %83, %cst_115 {dimension_numbers = #tpu.dot_dimension_numbers<[1], [0], [0], [1], [0, 0, 1, 1], [], []>} : vector<288x4xbf16>, vector<4x4xbf16>, vector<288x4xf32> -> vector<288x4xf32>
    %85 = arith.addf %81, %84 : vector<288x4xf32>
    %c1_116 = arith.constant 1 : index
    %c1_117 = arith.constant 1 : index
    %c0_118 = arith.constant 0 : index
    %c1_119 = arith.constant 1 : index
    %c0_120 = arith.constant 0 : index
    %c0_121 = arith.constant 0 : index
    %86 = vector.load %arg4[%c1_116, %c1_117, %c0_118, %c1_119, %c0_120, %c0_121] : memref<2x2x2x2x4x4xbf16, #tpu.memory_space<vmem>>, vector<1x1x1x1x4x4xbf16>
    %87 = vector.shape_cast %86 : vector<1x1x1x1x4x4xbf16> to vector<4x4xbf16>
    %cst_122 = arith.constant dense<0.000000e+00> : vector<288x4xf32>
    %88 = tpu.matmul %10, %87, %cst_122 {dimension_numbers = #tpu.dot_dimension_numbers<[1], [0], [0], [1], [0, 0, 1, 1], [], []>} : vector<288x4xbf16>, vector<4x4xbf16>, vector<288x4xf32> -> vector<288x4xf32>
    %89 = arith.addf %85, %88 : vector<288x4xf32>
    %c1_123 = arith.constant 1 : index
    %c1_124 = arith.constant 1 : index
    %c1_125 = arith.constant 1 : index
    %c0_126 = arith.constant 0 : index
    %c0_127 = arith.constant 0 : index
    %c0_128 = arith.constant 0 : index
    %90 = vector.load %arg4[%c1_123, %c1_124, %c1_125, %c0_126, %c0_127, %c0_128] : memref<2x2x2x2x4x4xbf16, #tpu.memory_space<vmem>>, vector<1x1x1x1x4x4xbf16>
    %91 = vector.shape_cast %90 : vector<1x1x1x1x4x4xbf16> to vector<4x4xbf16>
    %cst_129 = arith.constant dense<0.000000e+00> : vector<288x4xf32>
    %92 = tpu.matmul %12, %91, %cst_129 {dimension_numbers = #tpu.dot_dimension_numbers<[1], [0], [0], [1], [0, 0, 1, 1], [], []>} : vector<288x4xbf16>, vector<4x4xbf16>, vector<288x4xf32> -> vector<288x4xf32>
    %93 = arith.addf %89, %92 : vector<288x4xf32>
    %c1_130 = arith.constant 1 : index
    %c1_131 = arith.constant 1 : index
    %c1_132 = arith.constant 1 : index
    %c1_133 = arith.constant 1 : index
    %c0_134 = arith.constant 0 : index
    %c0_135 = arith.constant 0 : index
    %94 = vector.load %arg4[%c1_130, %c1_131, %c1_132, %c1_133, %c0_134, %c0_135] : memref<2x2x2x2x4x4xbf16, #tpu.memory_space<vmem>>, vector<1x1x1x1x4x4xbf16>
    %95 = vector.shape_cast %94 : vector<1x1x1x1x4x4xbf16> to vector<4x4xbf16>
    %cst_136 = arith.constant dense<0.000000e+00> : vector<288x4xf32>
    %96 = tpu.matmul %13, %95, %cst_136 {dimension_numbers = #tpu.dot_dimension_numbers<[1], [0], [0], [1], [0, 0, 1, 1], [], []>} : vector<288x4xbf16>, vector<4x4xbf16>, vector<288x4xf32> -> vector<288x4xf32>
    %97 = arith.addf %93, %96 : vector<288x4xf32>
    %98 = vector.broadcast %14 : vector<1x4xf32> to vector<288x4xf32>
    %99 = arith.addf %97, %98 : vector<288x4xf32>
    %c0_137 = arith.constant 0 : index
    %c1_138 = arith.constant 1 : index
    %c1_139 = arith.constant 1 : index
    %c0_140 = arith.constant 0 : index
    %c0_141 = arith.constant 0 : index
    %100 = vector.load %arg6[%c0_137, %c1_138, %c1_139, %c0_140, %c0_141] : memref<1x2x2x288x4xf32, #tpu.memory_space<vmem>>, vector<1x1x1x288x4xf32>
    %101 = vector.shape_cast %100 : vector<1x1x1x288x4xf32> to vector<288x4xf32>
    %102 = vector.shape_cast %99 : vector<288x4xf32> to vector<1x1x1x288x4xf32>
    tpu.vector_store %arg6[%c0_137, %c1_138, %c1_139, %c0_140, %c0_141], %102 {strides = array<i32>} : memref<1x2x2x288x4xf32, #tpu.memory_space<vmem>>, vector<1x1x1x288x4xf32>,
    return
  }
  func.func @transform_0(%arg0: i32, %arg1: i32) -> (i32, i32, i32) {
    %c0_i32 = arith.constant 0 : i32
    %c0_i32_0 = arith.constant 0 : i32
    return %arg0, %arg1, %c0_i32 : i32, i32, i32
  }
  func.func @transform_1(%arg0: i32, %arg1: i32) -> (i32, i32, i32, i32) {
    %c0_i32 = arith.constant 0 : i32
    %c0_i32_0 = arith.constant 0 : i32
    %c0_i32_1 = arith.constant 0 : i32
    return %arg0, %arg1, %c0_i32, %c0_i32_0 : i32, i32, i32, i32
  }
  func.func @transform_2(%arg0: i32, %arg1: i32) -> (i32, i32, i32, i32, i32, i32) {
    %c0_i32 = arith.constant 0 : i32
    %c0_i32_0 = arith.constant 0 : i32
    %c0_i32_1 = arith.constant 0 : i32
    %c0_i32_2 = arith.constant 0 : i32
    %c0_i32_3 = arith.constant 0 : i32
    %c0_i32_4 = arith.constant 0 : i32
    %c0_i32_5 = arith.constant 0 : i32
    return %c0_i32, %c0_i32_0, %c0_i32_1, %c0_i32_2, %c0_i32_3, %c0_i32_4 : i32, i32, i32, i32, i32, i32
  }
  func.func @transform_3(%arg0: i32, %arg1: i32) -> (i32, i32) {
    %c0_i32 = arith.constant 0 : i32
    %c0_i32_0 = arith.constant 0 : i32
    %c0_i32_1 = arith.constant 0 : i32
    return %c0_i32, %c0_i32_0 : i32, i32
  }
  func.func @transform_4(%arg0: i32, %arg1: i32) -> (i32, i32, i32, i32, i32) {
    %c0_i32 = arith.constant 0 : i32
    %c0_i32_0 = arith.constant 0 : i32
    %c0_i32_1 = arith.constant 0 : i32
    %c0_i32_2 = arith.constant 0 : i32
    return %arg0, %c0_i32, %c0_i32_0, %arg1, %c0_i32_1 : i32, i32, i32, i32, i32
  }
}

</mosaic_0001>

<bundles_post_ra>
// kernel: tpu_custom_call.1
= control target key start
LH: loop header
LB: loop body
LE: loop exit
PB: predicated region body
PF: predicated region fallthrough
CT: control target
= control target key end

     0   :  { %9 = vsyncpa [#allocation3], 0  ;;  %s6044_s0 = inlined_call_operand.vmem [shape: bf16[2,288,4], index: 0, kind: input, shape index: {}]   ;;  %s6045_s1 = inlined_call_operand.vmem [shape: bf16[2,1,54,4], index: 1, kind: input, shape index: {}]   ;;  %s6046_s2 = inlined_call_operand.hbm [shape: bf16[2,2,2,2,4,4], index: 2, kind: input, shape index: {}]   ;;  %s6047_s3 = inlined_call_operand.hbm [shape: f32[1,4], index: 3, kind: input, shape index: {}]   ;;  %s6048_s4 = inlined_call_operand.vmem [shape: f32[2,2,2,288,4], index: 4, kind: output, shape index: {}]  }
   0x1   :  { %10 = vsyncpa [#allocation5], 0  ;;  %s4348_s15 = smov 0   ;;  %s4350_s16 = smov 0  }
   0x2   :  { %s4352_s17 = smov 0  }
   0x3 LB: > { %s3626_s18 = sadd.s32 4294967295, %s4317_s17   ;;  %s28_s19 = sadd.s32 1, %s4313_s16  ;;  %s4317_s17 = sphi %s4352_s17, %s16_s17   ;;  %s4313_s16 = sphi %s4350_s16, %s6275_s16   ;;  %s4309_s15 = sphi %s4348_s15, %s6274_s15  }
   0x4   : > { %p30_p0 = scmp.ge.s32.totalorder %s28_s19, 2  ;;  %p3628_p1 = scmp.ge.s32.totalorder %s4317_s17, 1 }
   0x5   : > { %p159_p2 = scmp.lt.s32.totalorder %s4317_s17, 3  ;;  %p4373_p4 = scmp.eq.s32.totalorder %s3626_s18, 0 }
   0x6   : > { %s6277_s19 = smov (%p30_p0, %s28_s19), 0  ;;  %s170_s24 = sshll.u32 %s6046_s2, 4  ;;  %s171_s24 = int_to_ptr.hbm [resolvable:$true] %s170_s24 }
   0x7   : > { %p4369_p3 = pnand %p3628_p1, %p159_p2  ;;  %s4319_s25 = smov [#allocation2]  }
   0x8   : > { %s172_s26 = sshll.u32 %s4319_s25, 4  ;;  %s185_s29 = sshll.u32 %s6047_s3, 4  ;;  %s173_s26 = int_to_ptr.vmem [resolvable:$true] %s172_s26  ;;  %s186_s29 = int_to_ptr.hbm [resolvable:$true] %s185_s29 }
   0x9   : > { %p4152_p5 = pneg %p4369_p3  ;;  %s4320_s30 = smov 32  }
   0xa   : > { %s4321_s5 = smov 2   ;;  %s4322_s6 = smov [#allocation4]  }
   0xb   : > { %p4153_p6 = pnand %p4373_p4, %p4152_p5  ;;  %s187_s7 = sshll.u32 %s4322_s6, 4  ;;  %s188_s7 = int_to_ptr.vmem [resolvable:$true] %s187_s7 }
   0xc   : > { %225 = sbr.rel (%p4369_p3) target bundleno = 1317 (0x525), region = 36 }
   0xd   : > { %4155 = dma.hbm_to_vmem [thread:$0]  (!%p4153_p6), %s171_s24, 512, %s173_s26, [#allocation3], %s4320_s30, %s4320_s30, %s4321_s5  }
   0xe   : > { %4158 = dma.hbm_to_vmem [thread:$0]  (!%p4153_p6), %s186_s29, 16, %s188_s7, [#allocation5]  }
  0x11   : > { %4300 = dma.done.wait (%p4373_p4), [#allocation3], 512  }
  0x12   : > { %4302 = vsyncadd (%p4373_p4), [#allocation3], 4294966784 }
  0x13   : > { %4304 = dma.done.wait (%p4373_p4), [#allocation5], 16  }
  0x14   : > { %4306 = vsyncadd (%p4373_p4), [#allocation5], 4294967280  ;;  %p275_p7 = scmp.lt.s32.totalorder %s4309_s15, 1  ;;  %vm659_vm0 = vcmask 1041408   ;;  %vm604_vm1 = vcmask 31744   ;;  %vm902_vm3 = vcmask 1046528  }
  0x15   : > { %vm455_vm2 = vsmask.f32 7424  ;;  %v452_v0 = vld [vmem:[#allocation2] sm:$0x3]  ;;  %v901_v1 = vld [vmem:[#allocation2 + $0x4] sm:$0x3] }
  0x16   : > { %s6279_s15 = smov (!%p275_p7, %s4309_s15), 1  ;;  %v799_v3 = vsel %vm659_vm0, %v452_v0, 0  ;;  %v995_v4 = vsel %vm659_vm0, %v901_v1, 0  ;;  %v454_v7 = vld [vmem:[#allocation2 + $0x2] sm:$0x3]  ;;  %vm1839_vm5 = vcmask 1045504  }
  0x17   : > { %s4141_s8 = smul.u32 144, %s6279_s15  ;;  %808 = vmatpush.bf16.msra.mxu1 %v799_v3  ;;  %1004 = vmatpush.bf16.msra.mxu2 %v995_v4  ;;  %v661_v8 = vsel %vm659_vm0, %v454_v7, 0  ;;  %v1133_v9 = vld [vmem:[#allocation2 + $0x6] sm:$0x3]  ;;  %v1698_v10 = vld [vmem:[#allocation2 + $0xc] sm:$0x3] }
  0x18   : > { %670 = vmatpush.bf16.msra.mxu0 %v661_v8  ;;  %v1272_v14 = vsel %vm659_vm0, %v1133_v9, 0  ;;  %v1700_v15 = vsel %vm659_vm0, %v1698_v10, 0  ;;  %v1838_v16 = vld [vmem:[#allocation2 + $0xe] sm:$0x3]  ;;  %v1487_v21 = vld [vmem:[#allocation2 + $0xa] sm:$0x3] }
  0x19   : > { %s4405_s11 = scalar_lea.vmem %s6044_s0, %s4141_s8  ;;  %1281 = vmatpush.bf16.msra.mxu3 %v1272_v14  ;;  %v1932_v24 = vsel %vm659_vm0, %v1838_v16, 0  ;;  %v1494_v25 = vsel %vm659_vm0, %v1487_v21, 0  ;;  %v1485_v26 = vld [vmem:[#allocation2 + $0x8] sm:$0x3]  ;;  %vm1134_vm4 = vsmask.f32 6400 }
  0x1a   : > { %v4120_v2 = vld [vmem:[%s4405_s11] sm:$0xff]  ;;  %v4411_v5 = vld [vmem:[%s4405_s11 + $0x8] sm:$0xff]  ;;  %v4414_v6 = vld [vmem:[%s4405_s11 + $0x10] sm:$0xff]  ;;  %v1596_v33 = vsel %vm659_vm0, %v1485_v26, 0  ;;  %s4143_s12 = smul.u32 1152, %s6279_s15  ;;  %vm3193_vm7 = vcmask 1044480  }
  0x1b   : > { %v457_v11 = vshrl.u32 %v4120_v2, 16  ;;  %v6049_v12 = vrot.slane %v4411_v5, 1  ;;  %v904_v13 = vrot.slane %v4414_v6, 1  ;;  %1709 = vmatpush.bf16.msrb.mxu2 %v1700_v15  ;;  %v459_v17 = vshll.u32 %v4120_v2, 16  ;;  %3740 = vmatmul.msk.bf16.vlgmr.msra.gmra.mxu1 %vm604_vm1, %v4120_v2  ;;  %v4443_v37 = vld [vmem:[%s4405_s11 + $0x18] sm:$0xff]  ;;  %v4479_v51 = vld [vmem:[%s4405_s11 + $0x20] sm:$0xff] }
  0x1c   : > { %v464_v18 = vshll.u32 %v4411_v5, 16  ;;  %v468_v19 = vshrl.u32 %v4411_v5, 16  ;;  %v4424_v20 = vshll.u32 %v4414_v6, 16  ;;  %v4433_v23 = vshrl.u32 %v4414_v6, 16  ;;  %1503 = vmatpush.bf16.msrb.mxu0 %v1494_v25  ;;  %1605 = vmatpush.bf16.msrb.mxu1 %v1596_v33  ;;  %v4125_v63 = vld [vmem:[%s4405_s11 + $0x28] sm:$0xff]  ;;  %s4686_s18 = scalar_lea.vmem %s6048_s4, %s4143_s12  ;;  %s4142_s20 = smul.u32 28, %s6279_s15 }
  0x1d   : > { %v4430_v22 = vsel %vm902_vm3, %v6049_v12, %v904_v13  ;;  %v461_v27 = vrot.slane %v459_v17, 1  ;;  %1941 = vmatpush.bf16.msrb.mxu3 %v1932_v24  ;;  %v4456_v40 = vshll.u32 %v4443_v37, 16  ;;  %v4459_v41 = vshrl.u32 %v4443_v37, 16  ;;  %v4667_v12 = vld [vmem:[%s4405_s11 + $0x58] sm:$0xff] }
  0x1e   : > { %6134 = vst [vmem:[#allocation8_spill] sm:$0xff] %v4424_v20  ;;  %3758 = vmatmul.msk.bf16.vlgmr.msra.gmra.mxu2 %vm604_vm1, %v4430_v22  ;;  %v466_v28 = vrot.slane %v464_v18, 1  ;;  %v1135_v29 = vrot.slane %v468_v19, 1  ;;  %v1136_v30 = vrot.slane %v464_v18, 2  ;;  %v1138_v31 = vrot.slane %v4433_v23, 1  ;;  %s4927_s22 = scalar_lea.vmem %s6045_s1, %s4142_s20 }
  0x1f   : > { %6135 = vst [vmem:[#allocation9_spill] sm:$0xff] %v4433_v23  ;;  %v1139_v32 = vrot.slane %v4424_v20, 2  ;;  %v462_v34 = vor.u32 %v461_v27, %v457_v11  ;;  %v906_v42 = vrot.slane %v4443_v37, 1  ;;  %v1142_v43 = vrot.slane %v4459_v41, 1 }
  0x20   : > { %v1137_v35 = vor.u32 %v1136_v30, %v1135_v29  ;;  %6136 = vst [vmem:[#allocation10_spill] sm:$0xff] %v4456_v40  ;;  %v1143_v44 = vrot.slane %v4456_v40, 2  ;;  %v470_v46 = vor.u32 %v468_v19, %v466_v28  ;;  %v474_v47 = vrot.slane %v4424_v20, 1 }
  0x21   : > { %v1140_v36 = vor.u32 %v1139_v32, %v1138_v31  ;;  %v4446_v38 = vsel %vm455_vm2, %v462_v34, %v466_v28  ;;  %6137 = vst [vmem:[#allocation11_spill] sm:$0xff] %v4459_v41  ;;  %v4465_v45 = vsel %vm902_vm3, %v904_v13, %v906_v42  ;;  %v4486_v52 = vshll.u32 %v4479_v51, 16  ;;  %v4126_v13 = vld [vmem:[%s4405_s11 + $0x30] sm:$0xff]  ;;  %v4127_v28 = vld [vmem:[%s4405_s11 + $0x38] sm:$0xff] }
  0x22   : > { %3722 = vmatmul.msk.bf16.vlgmr.msra.gmra.mxu0 %vm604_vm1, %v4446_v38  ;;  %v1144_v48 = vor.u32 %v1143_v44, %v1142_v43  ;;  %v4473_v49 = vsel %vm455_vm2, %v470_v46, %v474_v47  ;;  %v4489_v53 = vshrl.u32 %v4479_v51, 16  ;;  %v908_v54 = vrot.slane %v4479_v51, 1  ;;  %v4128_v46 = vld [vmem:[%s4405_s11 + $0x40] sm:$0xff] }
  0x23   : > { %v4451_v39 = vsel %vm1134_vm4, %v1137_v35, %v1140_v36  ;;  %6138 = vst [vmem:[#allocation12_spill] sm:$0xff] %v4486_v52  ;;  %v1147_v56 = vrot.slane %v4486_v52, 2  ;;  %v478_v58 = vor.u32 %v4433_v23, %v474_v47  ;;  %v482_v59 = vrot.slane %v4456_v40, 1 }
  0x24   : > { %3776 = vmatmul.msk.bf16.vlgmr.msra.gmra.mxu3 %vm604_vm1, %v4451_v39  ;;  %v4476_v50 = vsel %vm1134_vm4, %v1140_v36, %v1144_v48  ;;  %6139 = vst [vmem:[#allocation13_spill] sm:$0xff] %v4489_v53  ;;  %v1146_v55 = vrot.slane %v4489_v53, 1  ;;  %v4495_v57 = vsel %vm902_vm3, %v906_v42, %v908_v54  ;;  %v4514_v0 = vshll.u32 %v4125_v63, 16 }
  0x25   : > { %v4504_v61 = vsel %vm455_vm2, %v478_v58, %v482_v59  ;;  %v4516_v1 = vshrl.u32 %v4125_v63, 16  ;;  %v910_v2 = vrot.slane %v4125_v63, 1  ;;  %v486_v7 = vor.u32 %v4459_v41, %v482_v59 }
  0x26   : > { %v1148_v60 = vor.u32 %v1147_v56, %v1146_v55  ;;  %6140 = vst [vmem:[#allocation14_spill] sm:$0xff] %v4514_v0  ;;  %v1151_v4 = vrot.slane %v4514_v0, 2  ;;  %v490_v8 = vrot.slane %v4486_v52, 1  ;;  %v4540_v14 = vshll.u32 %v4126_v13, 16 }
  0x27   : > { %6141 = vst [vmem:[#allocation15_spill] sm:$0xff] %v4516_v1  ;;  %v1150_v3 = vrot.slane %v4516_v1, 1  ;;  %v4542_v15 = vshrl.u32 %v4126_v13, 16  ;;  %v912_v16 = vrot.slane %v4126_v13, 1  ;;  %v498_v24 = vrot.slane %v4514_v0, 1 }
  0x28   : > { %v4507_v62 = vsel %vm1134_vm4, %v1144_v48, %v1148_v60  ;;  %v4530_v10 = vsel %vm455_vm2, %v486_v7, %v490_v8  ;;  %6142 = vst [vmem:[#allocation16_spill] sm:$0xff] %v4540_v14  ;;  %v1155_v18 = vrot.slane %v4540_v14, 2  ;;  %v494_v21 = vor.u32 %v4489_v53, %v490_v8 }
  0x29   : > { %v1152_v9 = vor.u32 %v1151_v4, %v1150_v3  ;;  %6143 = vst [vmem:[#allocation17_spill] sm:$0xff] %v4542_v15  ;;  %v1154_v17 = vrot.slane %v4542_v15, 1  ;;  %v4547_v19 = vsel %vm902_vm3, %v910_v2, %v912_v16  ;;  %v4566_v29 = vshll.u32 %v4127_v28, 16  ;;  %v4129_v4 = vld [vmem:[%s4405_s11 + $0x48] sm:$0xff] }
  0x2a   : > { %v4556_v26 = vsel %vm455_vm2, %v494_v21, %v498_v24  ;;  %v4568_v30 = vshrl.u32 %v4127_v28, 16  ;;  %v914_v31 = vrot.slane %v4127_v28, 1  ;;  %v502_v35 = vor.u32 %v4516_v1, %v498_v24 }
  0x2b   : > { %3741 = vmatmul.msk.bf16.gmra.mxu1 %vm604_vm1, %v4411_v5  ;;  %v4533_v11 = vsel %vm1134_vm4, %v1148_v60, %v1152_v9  ;;  %v1156_v25 = vor.u32 %v1155_v18, %v1154_v17  ;;  %6144 = vst [vmem:[#allocation18_spill] sm:$0xff] %v4566_v29  ;;  %v1159_v33 = vrot.slane %v4566_v29, 2  ;;  %v506_v36 = vrot.slane %v4540_v14, 1 }
  0x2c   : > { %6145 = vst [vmem:[#allocation19_spill] sm:$0xff] %v4568_v30  ;;  %v1158_v32 = vrot.slane %v4568_v30, 1  ;;  %v4573_v34 = vsel %vm902_vm3, %v912_v16, %v914_v31  ;;  %v4591_v47 = vshll.u32 %v4128_v46, 16  ;;  %v4593_v48 = vshrl.u32 %v4128_v46, 16 }
  0x2d   : > { %v4559_v27 = vsel %vm1134_vm4, %v1152_v9, %v1156_v25  ;;  %v4581_v43 = vsel %vm455_vm2, %v502_v35, %v506_v36  ;;  %v510_v59 = vor.u32 %v4542_v15, %v506_v36  ;;  %v514_v60 = vrot.slane %v4566_v29, 1 }
  0x2e   : > { %3759 = vmatmul.msk.bf16.gmra.mxu2 %vm604_vm1, %v4465_v45  ;;  %v1160_v42 = vor.u32 %v1159_v33, %v1158_v32  ;;  %6146 = vst [vmem:[#allocation20_spill] sm:$0xff] %v4591_v47  ;;  %v1162_v55 = vrot.slane %v4593_v48, 1  ;;  %v1163_v56 = vrot.slane %v4591_v47, 2  ;;  %v4616_v7 = vshll.u32 %v4129_v4, 16  ;;  %v4637_v32 = vld [vmem:[%s4405_s11 + $0x50] sm:$0xff] }
  0x2f   : > { %6147 = vst [vmem:[#allocation21_spill] sm:$0xff] %v4593_v48  ;;  %v4618_v8 = vshrl.u32 %v4129_v4, 16  ;;  %v918_v9 = vrot.slane %v4129_v4, 1  ;;  %v518_v18 = vor.u32 %v4568_v30, %v514_v60  ;;  %v522_v21 = vrot.slane %v4591_v47, 1 }
  0x30   : > { %v4584_v44 = vsel %vm1134_vm4, %v1156_v25, %v1160_v42  ;;  %6148 = vst [vmem:[#allocation22_spill] sm:$0xff] %v4616_v7  ;;  %v1167_v16 = vrot.slane %v4616_v7, 2  ;;  %v4647_v33 = vshrl.u32 %v4637_v32, 16  ;;  %v920_v35 = vrot.slane %v4637_v32, 1 }
  0x31   : > { %6149 = vst [vmem:[#allocation23_spill] sm:$0xff] %v4618_v8  ;;  %v4631_v25 = vsel %vm455_vm2, %v518_v18, %v522_v21  ;;  %vm2497_vm6 = vsmask.f32 5376 }
  0x32   : > { %3723 = vmatmul.msk.bf16.gmra.mxu0 %vm604_vm1, %v4473_v49  ;;  %6151 = vst [vmem:[#allocation25_spill] sm:$0xff] %v4647_v33  ;;  %v1170_v36 = vrot.slane %v4647_v33, 1 }
  0x34   : > { %3777 = vmatmul.msk.bf16.gmra.mxu3 %vm604_vm1, %v4476_v50 }
  0x3b   : > { %3742 = vmatmul.msk.bf16.gmra.mxu1 %vm604_vm1, %v4414_v6  ;;  %v4521_v6 = vsel %vm902_vm3, %v908_v54, %v910_v2  ;;  %v916_v54 = vrot.slane %v4128_v46, 1  ;;  %v4606_v2 = vsel %vm455_vm2, %v510_v59, %v514_v60  ;;  %v530_v59 = vrot.slane %v4616_v7, 1 }
  0x3d   : > { %v4598_v58 = vsel %vm902_vm3, %v914_v31, %v916_v54  ;;  %v4623_v17 = vsel %vm902_vm3, %v916_v54, %v918_v9 }
  0x3e   : > { %3760 = vmatmul.msk.bf16.gmra.mxu2 %vm604_vm1, %v4495_v57 }
  0x42   : > { %3724 = vmatmul.msk.bf16.gmra.mxu0 %vm604_vm1, %v4504_v61 }
  0x44   : > { %3778 = vmatmul.msk.bf16.gmra.mxu3 %vm604_vm1, %v4507_v62 }
  0x4b   : > { %3743 = vmatmul.msk.bf16.gmra.mxu1 %vm604_vm1, %v4443_v37 }
  0x4e   : > { %3761 = vmatmul.msk.bf16.gmra.mxu2 %vm604_vm1, %v4521_v6 }
  0x52   : > { %3725 = vmatmul.msk.bf16.gmra.mxu0 %vm604_vm1, %v4530_v10 }
  0x54   : > { %3779 = vmatmul.msk.bf16.gmra.mxu3 %vm604_vm1, %v4533_v11 }
  0x5b   : > { %3744 = vmatmul.msk.bf16.gmra.mxu1 %vm604_vm1, %v4479_v51 }
  0x5e   : > { %3762 = vmatmul.msk.bf16.gmra.mxu2 %vm604_vm1, %v4547_v19 }
  0x62   : > { %3726 = vmatmul.msk.bf16.gmra.mxu0 %vm604_vm1, %v4556_v26 }
  0x64   : > { %3780 = vmatmul.msk.bf16.gmra.mxu3 %vm604_vm1, %v4559_v27 }
  0x6b   : > { %3745 = vmatmul.msk.bf16.gmra.mxu1 %vm604_vm1, %v4125_v63  ;;  %v1164_v63 = vor.u32 %v1163_v56, %v1162_v55  ;;  %v4653_v55 = vsel %vm902_vm3, %v918_v9, %v920_v35  ;;  %v526_v56 = vor.u32 %v4593_v48, %v522_v21 }
  0x6d   : > { %v4609_v3 = vsel %vm1134_vm4, %v1160_v42, %v1164_v63 }
  0x6e   : > { %3763 = vmatmul.msk.bf16.gmra.mxu2 %vm604_vm1, %v4573_v34 }
  0x72   : > { %3727 = vmatmul.msk.bf16.gmra.mxu0 %vm604_vm1, %v4581_v43 }
  0x74   : > { %3781 = vmatmul.msk.bf16.gmra.mxu3 %vm604_vm1, %v4584_v44 }
  0x7b   : > { %3746 = vmatmul.msk.bf16.gmra.mxu1 %vm604_vm1, %v4126_v13  ;;  %v1166_v13 = vrot.slane %v4618_v8, 1 }
  0x7d   : > { %v1168_v24 = vor.u32 %v1167_v16, %v1166_v13  ;;  %v4661_v13 = vsel %vm455_vm2, %v526_v56, %v530_v59  ;;  %v922_v56 = vrot.slane %v4667_v12, 1 }
  0x7e   : > { %3764 = vmatmul.msk.bf16.gmra.mxu2 %vm604_vm1, %v4598_v58 }
  0x7f   : > { %v4634_v31 = vsel %vm1134_vm4, %v1164_v63, %v1168_v24  ;;  %v4692_v14 = vsel %vm902_vm3, %v920_v35, %v922_v56 }
  0x82   : > { %3728 = vmatmul.msk.bf16.gmra.mxu0 %vm604_vm1, %v4606_v2 }
  0x84   : > { %3782 = vmatmul.msk.bf16.gmra.mxu3 %vm604_vm1, %v4609_v3 }
  0x8b   : > { %3747 = vmatmul.msk.bf16.gmra.mxu1 %vm604_vm1, %v4127_v28  ;;  %v4644_v28 = vshll.u32 %v4637_v32, 16 }
  0x8d   : > { %6150 = vst [vmem:[#allocation24_spill] sm:$0xff] %v4644_v28  ;;  %v1171_v42 = vrot.slane %v4644_v28, 2 }
  0x8e   : > { %3765 = vmatmul.msk.bf16.gmra.mxu2 %vm604_vm1, %v4623_v17 }
  0x8f   : > { %v1172_v60 = vor.u32 %v1171_v42, %v1170_v36  ;;  %v4675_v36 = vshll.u32 %v4667_v12, 16  ;;  %v4678_v42 = vshrl.u32 %v4667_v12, 16 }
  0x91   : > { %v4664_v9 = vsel %vm1134_vm4, %v1168_v24, %v1172_v60  ;;  %6152 = vst [vmem:[#allocation26_spill] sm:$0xff] %v4675_v36  ;;  %v1175_v47 = vrot.slane %v4675_v36, 2 }
  0x92   : > { %3729 = vmatmul.msk.bf16.gmra.mxu0 %vm604_vm1, %v4631_v25  ;;  %6153 = vst [vmem:[#allocation27_spill] sm:$0xff] %v4678_v42 }
  0x94   : > { %3783 = vmatmul.msk.bf16.gmra.mxu3 %vm604_vm1, %v4634_v31 }
  0x98   : > { %v810_v54 = vpop.f32.mrf.mxu1 }
  0x9b   : > { %3748 = vmatmul.msk.bf16.gmra.mxu1 %vm604_vm1, %v4128_v46 }
  0x9e   : > { %3766 = vmatmul.msk.bf16.gmra.mxu2 %vm604_vm1, %v4653_v55 }
  0x9f   : > { %v672_v63 = vpop.f32.mrf.mxu0 }
  0xa0   : > { %v811_v16 = vadd.f32 %v810_v54, %v672_v63  ;;  %v812_v21 = vpop.f32.mrf.mxu1  ;;  %v4680_v54 = vld [vmem:[#allocation4] ss:$0 sm:$0xff] }
  0xa1   : > { %v1006_v18 = vpop.f32.mrf.mxu2 }
  0xa2   : > { %3730 = vmatmul.msk.bf16.gmra.mxu0 %vm604_vm1, %v4661_v13  ;;  %v1096_v46 = vadd.f32 %v1006_v18, %v811_v16  ;;  %v1174_v18 = vrot.slane %v4678_v42, 1 }
  0xa4   : > { %3784 = vmatmul.msk.bf16.gmra.mxu3 %vm604_vm1, %v4664_v9  ;;  %v1176_v15 = vor.u32 %v1175_v47, %v1174_v18 }
  0xa7   : > { %v1283_v24 = vpop.f32.mrf.mxu3  ;;  %v674_v7 = vpop.f32.mrf.mxu0 }
  0xa8   : > { %v1373_v63 = vadd.f32 %v1283_v24, %v1096_v46  ;;  %v813_v29 = vadd.f32 %v812_v21, %v674_v7  ;;  %v815_v30 = vpop.f32.mrf.mxu1  ;;  %v534_v46 = vor.u32 %v4618_v8, %v530_v59  ;;  %v538_v24 = vrot.slane %v4644_v28, 1  ;;  %v4708_v28 = vld [vmem:[%s4405_s11 + $0x60] sm:$0xff] }
  0xa9   : > { %v1008_v16 = vpop.f32.mrf.mxu2  ;;  %v4705_v59 = vsel %vm1134_vm4, %v1172_v60, %v1176_v15 }
  0xaa   : > { %v1412_v48 = vadd.f32 %v4680_v54, %v1373_v63  ;;  %v1097_v0 = vadd.f32 %v1008_v16, %v813_v29  ;;  %v4702_v35 = vsel %vm455_vm2, %v534_v46, %v538_v24  ;;  %v4718_v29 = vshll.u32 %v4708_v28, 16 }
  0xab   : > { %3749 = vmatmul.msk.bf16.gmra.mxu1 %vm604_vm1, %v4129_v4  ;;  %v924_v16 = vrot.slane %v4708_v28, 1  ;;  %v542_v52 = vor.u32 %v4647_v33, %v538_v24 }
  0xac   : > { %1448 = vst.msk [vmem:[%s4686_s18] sm:$0xff] %vm604_vm1, %v1412_v48 }
  0xad   : > { %6154 = vst [vmem:[#allocation28_spill] sm:$0xff] %v4718_v29  ;;  %v4728_v8 = vsel %vm902_vm3, %v922_v56, %v924_v16 }
  0xae   : > { %3767 = vmatmul.msk.bf16.gmra.mxu2 %vm604_vm1, %v4692_v14  ;;  %6156 = vst [vmem:[#allocation30_spill] sm:$0xff] %v4728_v8 }
  0xaf   : > { %v1285_v7 = vpop.f32.mrf.mxu3  ;;  %v677_v63 = vpop.f32.mrf.mxu0 }
  0xb0   : > { %v1374_v21 = vadd.f32 %v1285_v7, %v1097_v0  ;;  %v816_v1 = vadd.f32 %v815_v30, %v677_v63  ;;  %v817_v47 = vpop.f32.mrf.mxu1  ;;  %v4721_v30 = vshrl.u32 %v4708_v28, 16  ;;  %v1179_v63 = vrot.slane %v4718_v29, 2 }
  0xb1   : > { %v1011_v48 = vpop.f32.mrf.mxu2 }
  0xb2   : > { %v1413_v4 = vadd.f32 %v4680_v54, %v1374_v21  ;;  %3731 = vmatmul.msk.bf16.gmra.mxu0 %vm604_vm1, %v4702_v35  ;;  %v1098_v0 = vadd.f32 %v1011_v48, %v816_v1  ;;  %6155 = vst [vmem:[#allocation29_spill] sm:$0xff] %v4721_v30  ;;  %v1178_v21 = vrot.slane %v4721_v30, 1 }
  0xb4   : > { %1449 = vst.msk [vmem:[%s4686_s18 + $0x8] sm:$0xff] %vm604_vm1, %v1413_v4  ;;  %3785 = vmatmul.msk.bf16.gmra.mxu3 %vm604_vm1, %v4705_v59 }
  0xb7   : > { %v1288_v60 = vpop.f32.mrf.mxu3  ;;  %v679_v46 = vpop.f32.mrf.mxu0 }
  0xb8   : > { %v1375_v18 = vadd.f32 %v1288_v60, %v1098_v0  ;;  %v818_v48 = vadd.f32 %v817_v47, %v679_v46  ;;  %v820_v4 = vpop.f32.mrf.mxu1  ;;  %v546_v0 = vrot.slane %v4675_v36, 1  ;;  %v1180_v60 = vor.u32 %v1179_v63, %v1178_v21  ;;  %v4745_v36 = vld [vmem:[%s4405_s11 + $0x68] sm:$0xff] }
  0xb9   : > { %v1013_v7 = vpop.f32.mrf.mxu2  ;;  %v926_v63 = vrot.slane %v4745_v36, 1 }
  0xba   : > { %v1414_v1 = vadd.f32 %v4680_v54, %v1375_v18  ;;  %v1099_v53 = vadd.f32 %v1013_v7, %v818_v48  ;;  %v4739_v56 = vsel %vm455_vm2, %v542_v52, %v546_v0  ;;  %v4742_v24 = vsel %vm1134_vm4, %v1176_v15, %v1180_v60 }
  0xbb   : > { %3750 = vmatmul.msk.bf16.gmra.mxu1 %vm604_vm1, %v4637_v32  ;;  %v4755_v52 = vshll.u32 %v4745_v36, 16  ;;  %v4758_v15 = vshrl.u32 %v4745_v36, 16  ;;  %v4765_v33 = vsel %vm902_vm3, %v924_v16, %v926_v63  ;;  %v550_v41 = vor.u32 %v4678_v42, %v546_v0 }
  0xbc   : > { %1450 = vst.msk [vmem:[%s4686_s18 + $0x10] sm:$0xff] %vm604_vm1, %v1414_v1 }
  0xbd   : > { %6157 = vst [vmem:[#allocation31_spill] sm:$0xff] %v4755_v52 }
  0xbe   : > { %3768 = vmatmul.msk.bf16.gmra.mxu2 %vm604_vm1, %v4728_v8  ;;  %6158 = vst [vmem:[#allocation32_spill] sm:$0xff] %v4758_v15 }
  0xbf   : > { %v1290_v47 = vpop.f32.mrf.mxu3  ;;  %v682_v46 = vpop.f32.mrf.mxu0  ;;  %6159 = vst [vmem:[#allocation33_spill] sm:$0xff] %v4765_v33 }
  0xc0   : > { %v1376_v18 = vadd.f32 %v1290_v47, %v1099_v53  ;;  %v821_v1 = vadd.f32 %v820_v4, %v682_v46  ;;  %v822_v21 = vpop.f32.mrf.mxu1  ;;  %v1183_v46 = vrot.slane %v4755_v52, 2 }
  0xc1   : > { %v1016_v40 = vpop.f32.mrf.mxu2 }
  0xc2   : > { %v1415_v32 = vadd.f32 %v4680_v54, %v1376_v18  ;;  %3732 = vmatmul.msk.bf16.gmra.mxu0 %vm604_vm1, %v4739_v56  ;;  %v1100_v53 = vadd.f32 %v1016_v40, %v821_v1  ;;  %v1182_v18 = vrot.slane %v4758_v15, 1 }
  0xc4   : > { %1451 = vst.msk [vmem:[%s4686_s18 + $0x18] sm:$0xff] %vm604_vm1, %v1415_v32  ;;  %3786 = vmatmul.msk.bf16.gmra.mxu3 %vm604_vm1, %v4742_v24 }
  0xc7   : > { %v1293_v7 = vpop.f32.mrf.mxu3  ;;  %v684_v4 = vpop.f32.mrf.mxu0 }
  0xc8   : > { %v1377_v48 = vadd.f32 %v1293_v7, %v1100_v53  ;;  %v823_v1 = vadd.f32 %v822_v21, %v684_v4  ;;  %v825_v32 = vpop.f32.mrf.mxu1  ;;  %v554_v53 = vrot.slane %v4718_v29, 1  ;;  %v1184_v7 = vor.u32 %v1183_v46, %v1182_v18  ;;  %v4782_v29 = vld [vmem:[%s4405_s11 + $0x70] sm:$0xff] }
  0xc9   : > { %v1018_v47 = vpop.f32.mrf.mxu2  ;;  %v928_v46 = vrot.slane %v4782_v29, 1 }
  0xca   : > { %v1416_v40 = vadd.f32 %v4680_v54, %v1377_v48  ;;  %v1101_v20 = vadd.f32 %v1018_v47, %v823_v1  ;;  %v4776_v16 = vsel %vm455_vm2, %v550_v41, %v554_v53  ;;  %v4779_v0 = vsel %vm1134_vm4, %v1180_v60, %v1184_v7 }
  0xcb   : > { %3751 = vmatmul.msk.bf16.gmra.mxu1 %vm604_vm1, %v4667_v12  ;;  %6160 = vst [vmem:[#allocation34_spill] sm:$0xff] %v4779_v0  ;;  %v4792_v41 = vshll.u32 %v4782_v29, 16  ;;  %v4795_v60 = vshrl.u32 %v4782_v29, 16  ;;  %v4802_v42 = vsel %vm902_vm3, %v926_v63, %v928_v46 }
  0xcc   : > { %1452 = vst.msk [vmem:[%s4686_s18 + $0x20] sm:$0xff] %vm604_vm1, %v1416_v40 }
  0xcd   : > { %6161 = vst [vmem:[#allocation35_spill] sm:$0xff] %v4792_v41 }
  0xce   : > { %3769 = vmatmul.msk.bf16.gmra.mxu2 %vm604_vm1, %v4765_v33  ;;  %6162 = vst [vmem:[#allocation36_spill] sm:$0xff] %v4795_v60  ;;  %v558_v33 = vor.u32 %v4721_v30, %v554_v53 }
  0xcf   : > { %v1295_v21 = vpop.f32.mrf.mxu3  ;;  %v687_v4 = vpop.f32.mrf.mxu0  ;;  %6163 = vst [vmem:[#allocation37_spill] sm:$0xff] %v4802_v42 }
  0xd0   : > { %v1378_v48 = vadd.f32 %v1295_v21, %v1101_v20  ;;  %v826_v40 = vadd.f32 %v825_v32, %v687_v4  ;;  %v827_v18 = vpop.f32.mrf.mxu1  ;;  %v1187_v4 = vrot.slane %v4792_v41, 2 }
  0xd1   : > { %v1021_v23 = vpop.f32.mrf.mxu2 }
  0xd2   : > { %v1417_v12 = vadd.f32 %v4680_v54, %v1378_v48  ;;  %3733 = vmatmul.msk.bf16.gmra.mxu0 %vm604_vm1, %v4776_v16  ;;  %v1102_v20 = vadd.f32 %v1021_v23, %v826_v40  ;;  %v1186_v48 = vrot.slane %v4795_v60, 1 }
  0xd4   : > { %1453 = vst.msk [vmem:[%s4686_s18 + $0x28] sm:$0xff] %vm604_vm1, %v1417_v12  ;;  %3787 = vmatmul.msk.bf16.gmra.mxu3 %vm604_vm1, %v4779_v0 }
  0xd7   : > { %v1298_v47 = vpop.f32.mrf.mxu3  ;;  %v689_v32 = vpop.f32.mrf.mxu0 }
  0xd8   : > { %v1379_v1 = vadd.f32 %v1298_v47, %v1102_v20  ;;  %v828_v40 = vadd.f32 %v827_v18, %v689_v32  ;;  %v830_v12 = vpop.f32.mrf.mxu1  ;;  %v562_v20 = vrot.slane %v4755_v52, 1  ;;  %v1188_v47 = vor.u32 %v1187_v4, %v1186_v48  ;;  %v4819_v52 = vld [vmem:[%s4405_s11 + $0x78] sm:$0xff] }
  0xd9   : > { %v1023_v21 = vpop.f32.mrf.mxu2  ;;  %v930_v4 = vrot.slane %v4819_v52, 1 }
  0xda   : > { %v1418_v23 = vadd.f32 %v4680_v54, %v1379_v1  ;;  %v1103_v8 = vadd.f32 %v1023_v21, %v828_v40  ;;  %v4813_v63 = vsel %vm455_vm2, %v558_v33, %v562_v20  ;;  %v4816_v53 = vsel %vm1134_vm4, %v1184_v7, %v1188_v47 }
  0xdb   : > { %3752 = vmatmul.msk.bf16.gmra.mxu1 %vm604_vm1, %v4708_v28  ;;  %6164 = vst [vmem:[#allocation38_spill] sm:$0xff] %v4813_v63  ;;  %v4829_v33 = vshll.u32 %v4819_v52, 16  ;;  %v4832_v7 = vshrl.u32 %v4819_v52, 16  ;;  %v4839_v30 = vsel %vm902_vm3, %v928_v46, %v930_v4 }
  0xdc   : > { %1454 = vst.msk [vmem:[%s4686_s18 + $0x30] sm:$0xff] %vm604_vm1, %v1418_v23 }
  0xdd   : > { %6165 = vst [vmem:[#allocation39_spill] sm:$0xff] %v4816_v53 }
  0xde   : > { %3770 = vmatmul.msk.bf16.gmra.mxu2 %vm604_vm1, %v4802_v42  ;;  %6166 = vst [vmem:[#allocation40_spill] sm:$0xff] %v4829_v33  ;;  %v566_v42 = vor.u32 %v4758_v15, %v562_v20 }
  0xdf   : > { %v1300_v18 = vpop.f32.mrf.mxu3  ;;  %v692_v32 = vpop.f32.mrf.mxu0  ;;  %6167 = vst [vmem:[#allocation41_spill] sm:$0xff] %v4832_v7 }
  0xe0   : > { %v1380_v1 = vadd.f32 %v1300_v18, %v1103_v8  ;;  %v831_v23 = vadd.f32 %v830_v12, %v692_v32  ;;  %v832_v48 = vpop.f32.mrf.mxu1  ;;  %v1191_v32 = vrot.slane %v4829_v33, 2  ;;  %6168 = vst [vmem:[#allocation42_spill] sm:$0xff] %v4839_v30 }
  0xe1   : > { %v1026_v0 = vpop.f32.mrf.mxu2 }
  0xe2   : > { %v1419_v28 = vadd.f32 %v4680_v54, %v1380_v1  ;;  %3734 = vmatmul.msk.bf16.gmra.mxu0 %vm604_vm1, %v4813_v63  ;;  %v1104_v8 = vadd.f32 %v1026_v0, %v831_v23  ;;  %v1190_v1 = vrot.slane %v4832_v7, 1 }
  0xe4   : > { %1455 = vst.msk [vmem:[%s4686_s18 + $0x38] sm:$0xff] %vm604_vm1, %v1419_v28  ;;  %3788 = vmatmul.msk.bf16.gmra.mxu3 %vm604_vm1, %v4816_v53 }
  0xe7   : > { %v1303_v21 = vpop.f32.mrf.mxu3  ;;  %v694_v12 = vpop.f32.mrf.mxu0 }
  0xe8   : > { %v1381_v40 = vadd.f32 %v1303_v21, %v1104_v8  ;;  %v833_v23 = vadd.f32 %v832_v48, %v694_v12  ;;  %v835_v28 = vpop.f32.mrf.mxu1  ;;  %v570_v8 = vrot.slane %v4792_v41, 1  ;;  %v1192_v21 = vor.u32 %v1191_v32, %v1190_v1  ;;  %v4856_v41 = vld [vmem:[%s4405_s11 + $0x80] sm:$0xff] }
  0xe9   : > { %v1028_v18 = vpop.f32.mrf.mxu2  ;;  %v932_v32 = vrot.slane %v4856_v41, 1 }
  0xea   : > { %v1420_v0 = vadd.f32 %v4680_v54, %v1381_v40  ;;  %v1105_v53 = vadd.f32 %v1028_v18, %v833_v23  ;;  %v4850_v46 = vsel %vm455_vm2, %v566_v42, %v570_v8  ;;  %v4853_v20 = vsel %vm1134_vm4, %v1188_v47, %v1192_v21 }
  0xeb   : > { %3753 = vmatmul.msk.bf16.gmra.mxu1 %vm604_vm1, %v4745_v36  ;;  %6169 = vst [vmem:[#allocation43_spill] sm:$0xff] %v4850_v46  ;;  %v4866_v42 = vshll.u32 %v4856_v41, 16  ;;  %v4869_v47 = vshrl.u32 %v4856_v41, 16  ;;  %v4876_v15 = vsel %vm902_vm3, %v930_v4, %v932_v32 }
  0xec   : > { %1456 = vst.msk [vmem:[%s4686_s18 + $0x40] sm:$0xff] %vm604_vm1, %v1420_v0 }
  0xed   : > { %6170 = vst [vmem:[#allocation44_spill] sm:$0xff] %v4853_v20 }
  0xee   : > { %3771 = vmatmul.msk.bf16.gmra.mxu2 %vm604_vm1, %v4839_v30  ;;  %6171 = vst [vmem:[#allocation45_spill] sm:$0xff] %v4866_v42  ;;  %v574_v30 = vor.u32 %v4795_v60, %v570_v8 }
  0xef   : > { %v1305_v48 = vpop.f32.mrf.mxu3  ;;  %v697_v12 = vpop.f32.mrf.mxu0  ;;  %6172 = vst [vmem:[#allocation46_spill] sm:$0xff] %v4869_v47 }
  0xf0   : > { %v1382_v40 = vadd.f32 %v1305_v48, %v1105_v53  ;;  %v836_v0 = vadd.f32 %v835_v28, %v697_v12  ;;  %v837_v1 = vpop.f32.mrf.mxu1  ;;  %v1195_v12 = vrot.slane %v4866_v42, 2  ;;  %6173 = vst [vmem:[#allocation47_spill] sm:$0xff] %v4876_v15 }
  0xf1   : > { %v1031_v63 = vpop.f32.mrf.mxu2 }
  0xf2   : > { %v1421_v36 = vadd.f32 %v4680_v54, %v1382_v40  ;;  %3735 = vmatmul.msk.bf16.gmra.mxu0 %vm604_vm1, %v4850_v46  ;;  %v1106_v53 = vadd.f32 %v1031_v63, %v836_v0  ;;  %v1194_v40 = vrot.slane %v4869_v47, 1 }
  0xf4   : > { %1457 = vst.msk [vmem:[%s4686_s18 + $0x48] sm:$0xff] %vm604_vm1, %v1421_v36  ;;  %3789 = vmatmul.msk.bf16.gmra.mxu3 %vm604_vm1, %v4853_v20 }
  0xf7   : > { %v1308_v18 = vpop.f32.mrf.mxu3  ;;  %v699_v28 = vpop.f32.mrf.mxu0 }
  0xf8   : > { %v1383_v23 = vadd.f32 %v1308_v18, %v1106_v53  ;;  %v838_v0 = vadd.f32 %v837_v1, %v699_v28  ;;  %v840_v36 = vpop.f32.mrf.mxu1  ;;  %v578_v53 = vrot.slane %v4829_v33, 1  ;;  %v1196_v18 = vor.u32 %v1195_v12, %v1194_v40  ;;  %v4893_v33 = vld [vmem:[%s4405_s11 + $0x88] sm:$0xff] }
  0xf9   : > { %v1033_v48 = vpop.f32.mrf.mxu2  ;;  %v934_v12 = vrot.slane %v4893_v33, 1 }
  0xfa   : > { %v1422_v63 = vadd.f32 %v4680_v54, %v1383_v23  ;;  %v1107_v20 = vadd.f32 %v1033_v48, %v838_v0  ;;  %v4887_v4 = vsel %vm455_vm2, %v574_v30, %v578_v53  ;;  %v4890_v8 = vsel %vm1134_vm4, %v1192_v21, %v1196_v18 }
  0xfb   : > { %3754 = vmatmul.msk.bf16.gmra.mxu1 %vm604_vm1, %v4782_v29  ;;  %6174 = vst [vmem:[#allocation48_spill] sm:$0xff] %v4890_v8  ;;  %v4903_v30 = vshll.u32 %v4893_v33, 16  ;;  %v4906_v21 = vshrl.u32 %v4893_v33, 16  ;;  %v4914_v60 = vsel %vm902_vm3, %v932_v32, %v934_v12 }
  0xfc   : > { %1458 = vst.msk [vmem:[%s4686_s18 + $0x50] sm:$0xff] %vm604_vm1, %v1422_v63 }
  0xfd   : > { %6175 = vst [vmem:[#allocation49_spill] sm:$0xff] %v4903_v30 }
  0xfe   : > { %3772 = vmatmul.msk.bf16.gmra.mxu2 %vm604_vm1, %v4876_v15  ;;  %6176 = vst [vmem:[#allocation50_spill] sm:$0xff] %v4906_v21  ;;  %v582_v15 = vor.u32 %v4832_v7, %v578_v53 }
  0xff   : > { %v1310_v1 = vpop.f32.mrf.mxu3  ;;  %v702_v28 = vpop.f32.mrf.mxu0  ;;  %6177 = vst [vmem:[#allocation51_spill] sm:$0xff] %v4914_v60 }
 0x100   : > { %v1384_v23 = vadd.f32 %v1310_v1, %v1107_v20  ;;  %v841_v63 = vadd.f32 %v840_v36, %v702_v28  ;;  %v842_v40 = vpop.f32.mrf.mxu1 }
 0x101   : > { %v1036_v46 = vpop.f32.mrf.mxu2 }
 0x102   : > { %v1423_v29 = vadd.f32 %v4680_v54, %v1384_v23  ;;  %3736 = vmatmul.msk.bf16.gmra.mxu0 %vm604_vm1, %v4887_v4  ;;  %v1108_v20 = vadd.f32 %v1036_v46, %v841_v63  ;;  %v1198_v23 = vrot.slane %v4906_v21, 1  ;;  %v1199_v46 = vrot.slane %v4903_v30, 2 }
 0x104   : > { %1459 = vst.msk [vmem:[%s4686_s18 + $0x58] sm:$0xff] %vm604_vm1, %v1423_v29  ;;  %3790 = vmatmul.msk.bf16.gmra.mxu3 %vm604_vm1, %v4890_v8 }
 0x107   : > { %v1313_v48 = vpop.f32.mrf.mxu3  ;;  %v704_v36 = vpop.f32.mrf.mxu0 }
 0x108   : > { %v1385_v0 = vadd.f32 %v1313_v48, %v1108_v20  ;;  %v843_v63 = vadd.f32 %v842_v40, %v704_v36  ;;  %v845_v29 = vpop.f32.mrf.mxu1  ;;  %v586_v20 = vrot.slane %v4866_v42, 1  ;;  %v1200_v48 = vor.u32 %v1199_v46, %v1198_v23 }
 0x109   : > { %v1038_v1 = vpop.f32.mrf.mxu2 }
 0x10a   : > { %v1424_v28 = vadd.f32 %v4680_v54, %v1385_v0  ;;  %v1109_v8 = vadd.f32 %v1038_v1, %v843_v63  ;;  %v4930_v0 = vsel %vm455_vm2, %v582_v15, %v586_v20  ;;  %v4933_v23 = vsel %vm1134_vm4, %v1196_v18, %v1200_v48  ;;  %v4936_v1 = vld [vmem:[%s4927_s22] sm:$0xff] }
 0x10b   : > { %3755 = vmatmul.msk.bf16.gmra.mxu1 %vm604_vm1, %v4819_v52  ;;  %6178 = vst [vmem:[#allocation52_spill] sm:$0xff] %v4933_v23  ;;  %v4946_v15 = vshll.u32 %v4936_v1, 16  ;;  %v6103_v18 = vshrl.u32 %v4936_v1, 16 }
 0x10c   : > { %1460 = vst.msk [vmem:[%s4686_s18 + $0x60] sm:$0xff] %vm604_vm1, %v1424_v28 }
 0x10d   : > { %6179 = vst [vmem:[#allocation53_spill] sm:$0xff] %v4936_v1 }
 0x10e   : > { %3773 = vmatmul.msk.bf16.gmra.mxu2 %vm604_vm1, %v4914_v60  ;;  %6180 = vst [vmem:[#allocation54_spill] sm:$0xff] %v4946_v15 }
 0x10f   : > { %v1315_v32 = vpop.f32.mrf.mxu3  ;;  %v707_v53 = vpop.f32.mrf.mxu0 }
 0x110   : > { %v1386_v40 = vadd.f32 %v1315_v32, %v1109_v8  ;;  %v846_v36 = vadd.f32 %v845_v29, %v707_v53  ;;  %v847_v28 = vpop.f32.mrf.mxu1  ;;  %v936_v29 = vrot.slane %v4936_v1, 1 }
 0x111   : > { %v1041_v52 = vpop.f32.mrf.mxu2 }
 0x112   : > { %v1425_v46 = vadd.f32 %v4680_v54, %v1386_v40  ;;  %3737 = vmatmul.msk.bf16.gmra.mxu0 %vm604_vm1, %v4930_v0  ;;  %v1110_v8 = vadd.f32 %v1041_v52, %v846_v36  ;;  %v1205_v36 = vrot.slane %v4946_v15, 2  ;;  %v4955_v60 = vsel %vm902_vm3, %v934_v12, %v936_v29 }
 0x113   : > { %6181 = vst [vmem:[#allocation55_spill] sm:$0xff] %v4955_v60 }
 0x114   : > { %1461 = vst.msk [vmem:[%s4686_s18 + $0x68] sm:$0xff] %vm604_vm1, %v1425_v46  ;;  %3791 = vmatmul.msk.bf16.gmra.mxu3 %vm604_vm1, %v4933_v23  ;;  %v1204_v46 = vrot.slane %v6103_v18, 1  ;;  %v590_v23 = vor.u32 %v4869_v47, %v586_v20 }
 0x117   : > { %v1318_v63 = vpop.f32.mrf.mxu3  ;;  %v709_v40 = vpop.f32.mrf.mxu0 }
 0x118   : > { %v1387_v32 = vadd.f32 %v1318_v63, %v1110_v8  ;;  %v848_v42 = vadd.f32 %v847_v28, %v709_v40  ;;  %v850_v7 = vpop.f32.mrf.mxu1  ;;  %v594_v8 = vrot.slane %v4903_v30, 1  ;;  %v1206_v63 = vor.u32 %v1205_v36, %v1204_v46 }
 0x119   : > { %v1043_v53 = vpop.f32.mrf.mxu2 }
 0x11a   : > { %v1426_v52 = vadd.f32 %v4680_v54, %v1387_v32  ;;  %v1111_v18 = vadd.f32 %v1043_v53, %v848_v42  ;;  %v4966_v32 = vld [vmem:[%s4927_s22 + $0x8] sm:$0xff]  ;;  %v4972_v30 = vsel %vm1134_vm4, %v1200_v48, %v1206_v63  ;;  %v2496_v53 = vld [vmem:[#allocation2 + $0x16] sm:$0x3] }
 0x11b   : > { %3756 = vmatmul.msk.bf16.gmra.mxu1 %vm604_vm1, %v4856_v41  ;;  %6182 = vst [vmem:[#allocation56_spill] sm:$0xff] %v4966_v32  ;;  %v2633_v36 = vsel %vm659_vm0, %v2496_v53, 0 }
 0x11c   : > { %1462 = vst.msk [vmem:[%s4686_s18 + $0x70] sm:$0xff] %vm604_vm1, %v1426_v52  ;;  %v4969_v52 = vsel %vm455_vm2, %v590_v23, %v594_v8  ;;  %v2351_v23 = vld [vmem:[#allocation2 + $0x14] sm:$0x3]  ;;  %2642 = vmatpush.bf16.msra.mxu3 %v2633_v36 }
 0x11d   : > { %6183 = vst [vmem:[#allocation57_spill] sm:$0xff] %v4969_v52  ;;  %v2358_v48 = vsel %vm659_vm0, %v2351_v23, 0  ;;  %v6185_v23 = vshrl.u32 %v4966_v32, 16 }
 0x11e   : > { %3774 = vmatmul.msk.bf16.gmra.mxu2 %vm604_vm1, %v4955_v60  ;;  %6184 = vst [vmem:[#allocation58_spill] sm:$0xff] %v4972_v30 }
 0x11f   : > { %v1320_v28 = vpop.f32.mrf.mxu3  ;;  %v712_v40 = vpop.f32.mrf.mxu0  ;;  %2367 = vmatpush.bf16.msra.mxu2 %v2358_v48  ;;  %v1211_v53 = vrot.slane %v6185_v23, 1 }
 0x120   : > { %v1388_v12 = vadd.f32 %v1320_v28, %v1111_v18  ;;  %v851_v20 = vadd.f32 %v850_v7, %v712_v40  ;;  %v852_v46 = vpop.f32.mrf.mxu1  ;;  %v2145_v28 = vld [vmem:[#allocation2 + $0x12] sm:$0x3] }
 0x121   : > { %v1046_v47 = vpop.f32.mrf.mxu2  ;;  %v2147_v40 = vsel %vm659_vm0, %v2145_v28, 0 }
 0x122   : > { %v1427_v1 = vadd.f32 %v4680_v54, %v1388_v12  ;;  %3738 = vmatmul.msk.bf16.gmra.mxu0 %vm604_vm1, %v4969_v52  ;;  %v1112_v18 = vadd.f32 %v1046_v47, %v851_v20  ;;  %v2143_v12 = vld [vmem:[#allocation2 + $0x10] sm:$0x3]  ;;  %v938_v20 = vrot.slane %v4966_v32, 1 }
 0x123   : > { %v2249_v47 = vsel %vm659_vm0, %v2143_v12, 0  ;;  %2156 = vmatpush.bf16.msra.mxu0 %v2147_v40  ;;  %v598_v40 = vor.u32 %v4906_v21, %v594_v8  ;;  %v6201_v21 = vld [vmem:[#allocation42_spill] sm:$0xff] }
 0x124   : > { %1463 = vst.msk [vmem:[%s4686_s18 + $0x78] sm:$0xff] %vm604_vm1, %v1427_v1  ;;  %3792 = vmatmul.msk.bf16.gmra.mxu3 %vm604_vm1, %v4972_v30  ;;  %2258 = vmatpush.bf16.msra.mxu1 %v2249_v47  ;;  %v6186_v30 = vshll.u32 %v4966_v32, 16  ;;  %v4994_v12 = vsel %vm902_vm3, %v936_v29, %v938_v20 }
 0x125   : > { %6187 = vst [vmem:[#allocation59_spill] sm:$0xff] %v4994_v12 }
 0x126   : > { %v1214_v48 = vrot.slane %v6186_v30, 2 }
 0x127   : > { %v1323_v1 = vpop.f32.mrf.mxu3  ;;  %v714_v42 = vpop.f32.mrf.mxu0 }
 0x128   : > { %v1389_v7 = vadd.f32 %v1323_v1, %v1112_v18  ;;  %v853_v52 = vadd.f32 %v852_v46, %v714_v42  ;;  %v855_v28 = vpop.f32.mrf.mxu1  ;;  %v602_v18 = vrot.slane %v4946_v15, 1  ;;  %v1215_v47 = vor.u32 %v1214_v48, %v1211_v53  ;;  %v6198_v15 = vld [vmem:[#allocation37_spill] sm:$0xff] }
 0x129   : > { %v1048_v60 = vpop.f32.mrf.mxu2 }
 0x12a   : > { %v1428_v36 = vadd.f32 %v4680_v54, %v1389_v7  ;;  %v1113_v1 = vadd.f32 %v1048_v60, %v853_v52  ;;  %v5005_v29 = vsel %vm455_vm2, %v598_v40, %v602_v18  ;;  %v5008_v20 = vsel %vm1134_vm4, %v1206_v63, %v1215_v47  ;;  %v4192_v47 = vld [vmem:[%s4405_s11] sm:$0xff] }
 0x12b   : > { %3757 = vmatmul.msk.bf16.gmra.mxu1 %vm604_vm1, %v4893_v33  ;;  %6188 = vst [vmem:[#allocation60_spill] sm:$0xff] %v5008_v20 }
 0x12c   : > { %1464 = vst.msk [vmem:[%s4686_s18 + $0x80] sm:$0xff] %vm604_vm1, %v1428_v36 }
 0x12e   : > { %3775 = vmatmul.msk.bf16.gmra.mxu2 %vm604_vm1, %v4994_v12 }
 0x12f   : > { %v1325_v30 = vpop.f32.mrf.mxu3  ;;  %v717_v42 = vpop.f32.mrf.mxu0 }
 0x130   : > { %v1390_v46 = vadd.f32 %v1325_v30, %v1113_v1  ;;  %v856_v7 = vadd.f32 %v855_v28, %v717_v42  ;;  %v857_v53 = vpop.f32.mrf.mxu1  ;;  %v1488_v1 = vrot.slane %v4192_v47, 1  ;;  %v4193_v30 = vld [vmem:[%s4405_s11 + $0x8] sm:$0xff]  ;;  %v4194_v42 = vld [vmem:[%s4405_s11 + $0x10] sm:$0xff] }
 0x131   : > { %v1051_v8 = vpop.f32.mrf.mxu2 }
 0x132   : > { %v1429_v23 = vadd.f32 %v4680_v54, %v1390_v46  ;;  %3739 = vmatmul.msk.bf16.gmra.mxu0 %vm604_vm1, %v5005_v29  ;;  %v1114_v60 = vadd.f32 %v1051_v8, %v856_v7  ;;  %v1840_v46 = vrot.slane %v4193_v30, 2  ;;  %v1841_v7 = vrot.slane %v4194_v42, 2 }
 0x134   : > { %1465 = vst.msk [vmem:[%s4686_s18 + $0x88] sm:$0xff] %vm604_vm1, %v1429_v23  ;;  %3793 = vmatmul.msk.bf16.gmra.mxu3 %vm604_vm1, %v5008_v20 }
 0x137   : > { %v1328_v52 = vpop.f32.mrf.mxu3  ;;  %v719_v36 = vpop.f32.mrf.mxu0 }
 0x138   : > { %v1391_v48 = vadd.f32 %v1328_v52, %v1114_v60  ;;  %v858_v40 = vadd.f32 %v857_v53, %v719_v36  ;;  %v860_v18 = vpop.f32.mrf.mxu1  ;;  %v6189_v52 = vrot.slane %v4411_v5, 1 }
 0x139   : > { %v1053_v28 = vpop.f32.mrf.mxu2 }
 0x13a   : > { %v1430_v63 = vadd.f32 %v4680_v54, %v1391_v48  ;;  %v1115_v8 = vadd.f32 %v1053_v28, %v858_v40  ;;  %v1489_v48 = vsel %vm902_vm3, %v1488_v1, %v6189_v52 }
 0x13b   : > { %3812 = vmatmul.msk.bf16.vlgmr.msrb.gmra.mxu1 %vm604_vm1, %v4446_v38 }
 0x13c   : > { %1466 = vst.msk [vmem:[%s4686_s18 + $0x90] sm:$0xff] %vm604_vm1, %v1430_v63  ;;  %v5031_v63 = vsel %vm1839_vm5, %v1840_v46, %v1841_v7 }
 0x13d   : > { %6190 = vst [vmem:[#allocation61_spill] sm:$0xff] %v5031_v63 }
 0x13e   : > { %3830 = vmatmul.msk.bf16.vlgmr.msrb.gmra.mxu2 %vm604_vm1, %v4451_v39 }
 0x13f   : > { %v1330_v23 = vpop.f32.mrf.mxu3  ;;  %v722_v60 = vpop.f32.mrf.mxu0 }
 0x140   : > { %v1392_v53 = vadd.f32 %v1330_v23, %v1115_v8  ;;  %v861_v36 = vadd.f32 %v860_v18, %v722_v60  ;;  %v862_v28 = vpop.f32.mrf.mxu1  ;;  %v1843_v23 = vrot.slane %v4443_v37, 2 }
 0x141   : > { %v1056_v38 = vpop.f32.mrf.mxu2 }
 0x142   : > { %v1431_v47 = vadd.f32 %v4680_v54, %v1392_v53  ;;  %3794 = vmatmul.msk.bf16.vlgmr.msrb.gmra.mxu0 %vm604_vm1, %v1489_v48  ;;  %v1116_v40 = vadd.f32 %v1056_v38, %v861_v36 }
 0x144   : > { %1467 = vst.msk [vmem:[%s4686_s18 + $0x98] sm:$0xff] %vm604_vm1, %v1431_v47  ;;  %3848 = vmatmul.msk.bf16.vlgmr.msrb.gmra.mxu3 %vm604_vm1, %v5031_v63  ;;  %v5048_v47 = vsel %vm1839_vm5, %v1841_v7, %v1843_v23 }
 0x147   : > { %v1333_v5 = vpop.f32.mrf.mxu3  ;;  %v724_v1 = vpop.f32.mrf.mxu0 }
 0x148   : > { %v1393_v30 = vadd.f32 %v1333_v5, %v1116_v40  ;;  %v863_v8 = vadd.f32 %v862_v28, %v724_v1  ;;  %v865_v46 = vpop.f32.mrf.mxu1 }
 0x149   : > { %v1058_v18 = vpop.f32.mrf.mxu2 }
 0x14a   : > { %v1432_v42 = vadd.f32 %v4680_v54, %v1393_v30  ;;  %v1117_v53 = vadd.f32 %v1058_v18, %v863_v8  ;;  %v1845_v8 = vrot.slane %v4479_v51, 2 }
 0x14b   : > { %3813 = vmatmul.msk.bf16.gmra.mxu1 %vm604_vm1, %v4473_v49 }
 0x14c   : > { %1468 = vst.msk [vmem:[%s4686_s18 + $0xa0] sm:$0xff] %vm604_vm1, %v1432_v42 }
 0x14e   : > { %3831 = vmatmul.msk.bf16.gmra.mxu2 %vm604_vm1, %v4476_v50 }
 0x14f   : > { %v1335_v60 = vpop.f32.mrf.mxu3  ;;  %v727_v48 = vpop.f32.mrf.mxu0 }
 0x150   : > { %v1394_v52 = vadd.f32 %v1335_v60, %v1117_v53  ;;  %v866_v36 = vadd.f32 %v865_v46, %v727_v48  ;;  %v867_v40 = vpop.f32.mrf.mxu1 }
 0x151   : > { %v1061_v38 = vpop.f32.mrf.mxu2 }
 0x152   : > { %v1433_v28 = vadd.f32 %v4680_v54, %v1394_v52  ;;  %3795 = vmatmul.msk.bf16.gmra.mxu0 %vm604_vm1, %v4430_v22  ;;  %v1118_v37 = vadd.f32 %v1061_v38, %v866_v36  ;;  %v5066_v38 = vsel %vm1839_vm5, %v1843_v23, %v1845_v8 }
 0x154   : > { %1469 = vst.msk [vmem:[%s4686_s18 + $0xa8] sm:$0xff] %vm604_vm1, %v1433_v28  ;;  %3849 = vmatmul.msk.bf16.gmra.mxu3 %vm604_vm1, %v5048_v47 }
 0x157   : > { %v1338_v49 = vpop.f32.mrf.mxu3  ;;  %v729_v30 = vpop.f32.mrf.mxu0 }
 0x158   : > { %v1395_v5 = vadd.f32 %v1338_v49, %v1118_v37  ;;  %v868_v7 = vadd.f32 %v867_v40, %v729_v30  ;;  %v870_v42 = vpop.f32.mrf.mxu1 }
 0x159   : > { %v1063_v1 = vpop.f32.mrf.mxu2 }
 0x15a   : > { %v1434_v18 = vadd.f32 %v4680_v54, %v1395_v5  ;;  %v1119_v46 = vadd.f32 %v1063_v1, %v868_v7 }
 0x15b   : > { %3814 = vmatmul.msk.bf16.gmra.mxu1 %vm604_vm1, %v4504_v61 }
 0x15c   : > { %1470 = vst.msk [vmem:[%s4686_s18 + $0xb0] sm:$0xff] %vm604_vm1, %v1434_v18  ;;  %v4195_v18 = vld [vmem:[%s4405_s11 + $0x28] sm:$0xff] }
 0x15d   : > { %v1847_v7 = vrot.slane %v4195_v18, 2 }
 0x15e   : > { %3832 = vmatmul.msk.bf16.gmra.mxu2 %vm604_vm1, %v4507_v62 }
 0x15f   : > { %v1340_v53 = vpop.f32.mrf.mxu3  ;;  %v732_v52 = vpop.f32.mrf.mxu0 }
 0x160   : > { %v1396_v60 = vadd.f32 %v1340_v53, %v1119_v46  ;;  %v871_v48 = vadd.f32 %v870_v42, %v732_v52  ;;  %v872_v40 = vpop.f32.mrf.mxu1 }
 0x161   : > { %v1066_v36 = vpop.f32.mrf.mxu2 }
 0x162   : > { %v1435_v28 = vadd.f32 %v4680_v54, %v1396_v60  ;;  %3796 = vmatmul.msk.bf16.gmra.mxu0 %vm604_vm1, %v4465_v45  ;;  %v1120_v51 = vadd.f32 %v1066_v36, %v871_v48  ;;  %v5084_v36 = vsel %vm1839_vm5, %v1845_v8, %v1847_v7 }
 0x164   : > { %1471 = vst.msk [vmem:[%s4686_s18 + $0xb8] sm:$0xff] %vm604_vm1, %v1435_v28  ;;  %3850 = vmatmul.msk.bf16.gmra.mxu3 %vm604_vm1, %v5066_v38 }
 0x167   : > { %v1343_v61 = vpop.f32.mrf.mxu3  ;;  %v734_v49 = vpop.f32.mrf.mxu0 }
 0x168   : > { %v1397_v37 = vadd.f32 %v1343_v61, %v1120_v51  ;;  %v873_v30 = vadd.f32 %v872_v40, %v734_v49  ;;  %v875_v1 = vpop.f32.mrf.mxu1 }
 0x169   : > { %v1068_v5 = vpop.f32.mrf.mxu2 }
 0x16a   : > { %v1436_v23 = vadd.f32 %v4680_v54, %v1397_v37  ;;  %v1121_v42 = vadd.f32 %v1068_v5, %v873_v30  ;;  %v4196_v30 = vld [vmem:[%s4405_s11 + $0x30] sm:$0xff] }
 0x16b   : > { %3815 = vmatmul.msk.bf16.gmra.mxu1 %vm604_vm1, %v4530_v10 }
 0x16c   : > { %1472 = vst.msk [vmem:[%s4686_s18 + $0xc0] sm:$0xff] %vm604_vm1, %v1436_v23 }
 0x16e   : > { %3833 = vmatmul.msk.bf16.gmra.mxu2 %vm604_vm1, %v4533_v11 }
 0x16f   : > { %v1345_v46 = vpop.f32.mrf.mxu3  ;;  %v737_v60 = vpop.f32.mrf.mxu0 }
 0x170   : > { %v1398_v53 = vadd.f32 %v1345_v46, %v1121_v42  ;;  %v876_v52 = vadd.f32 %v875_v1, %v737_v60  ;;  %v877_v40 = vpop.f32.mrf.mxu1  ;;  %v1849_v1 = vrot.slane %v4196_v30, 2 }
 0x171   : > { %v1071_v48 = vpop.f32.mrf.mxu2 }
 0x172   : > { %v1437_v28 = vadd.f32 %v4680_v54, %v1398_v53  ;;  %3797 = vmatmul.msk.bf16.gmra.mxu0 %vm604_vm1, %v4495_v57  ;;  %v1122_v10 = vadd.f32 %v1071_v48, %v876_v52  ;;  %v5102_v48 = vsel %vm1839_vm5, %v1847_v7, %v1849_v1 }
 0x174   : > { %1473 = vst.msk [vmem:[%s4686_s18 + $0xc8] sm:$0xff] %vm604_vm1, %v1437_v28  ;;  %3851 = vmatmul.msk.bf16.gmra.mxu3 %vm604_vm1, %v5084_v36 }
 0x177   : > { %v1348_v51 = vpop.f32.mrf.mxu3  ;;  %v739_v37 = vpop.f32.mrf.mxu0 }
 0x178   : > { %v1399_v61 = vadd.f32 %v1348_v51, %v1122_v10  ;;  %v878_v5 = vadd.f32 %v877_v40, %v739_v37  ;;  %v880_v23 = vpop.f32.mrf.mxu1 }
 0x179   : > { %v1073_v49 = vpop.f32.mrf.mxu2 }
 0x17a   : > { %v1438_v8 = vadd.f32 %v4680_v54, %v1399_v61  ;;  %v1123_v18 = vadd.f32 %v1073_v49, %v878_v5  ;;  %v4197_v5 = vld [vmem:[%s4405_s11 + $0x38] sm:$0xff] }
 0x17b   : > { %3816 = vmatmul.msk.bf16.gmra.mxu1 %vm604_vm1, %v4556_v26 }
 0x17c   : > { %1474 = vst.msk [vmem:[%s4686_s18 + $0xd0] sm:$0xff] %vm604_vm1, %v1438_v8 }
 0x17e   : > { %3834 = vmatmul.msk.bf16.gmra.mxu2 %vm604_vm1, %v4559_v27 }
 0x17f   : > { %v1350_v42 = vpop.f32.mrf.mxu3  ;;  %v742_v53 = vpop.f32.mrf.mxu0 }
 0x180   : > { %v1400_v46 = vadd.f32 %v1350_v42, %v1123_v18  ;;  %v881_v60 = vadd.f32 %v880_v23, %v742_v53  ;;  %v882_v40 = vpop.f32.mrf.mxu1  ;;  %v1851_v23 = vrot.slane %v4197_v5, 2 }
 0x181   : > { %v1076_v52 = vpop.f32.mrf.mxu2 }
 0x182   : > { %v1439_v28 = vadd.f32 %v4680_v54, %v1400_v46  ;;  %3798 = vmatmul.msk.bf16.gmra.mxu0 %vm604_vm1, %v4521_v6  ;;  %v1124_v26 = vadd.f32 %v1076_v52, %v881_v60  ;;  %v5120_v52 = vsel %vm1839_vm5, %v1849_v1, %v1851_v23 }
 0x184   : > { %1475 = vst.msk [vmem:[%s4686_s18 + $0xd8] sm:$0xff] %vm604_vm1, %v1439_v28  ;;  %3852 = vmatmul.msk.bf16.gmra.mxu3 %vm604_vm1, %v5102_v48 }
 0x187   : > { %v1353_v10 = vpop.f32.mrf.mxu3  ;;  %v744_v61 = vpop.f32.mrf.mxu0 }
 0x188   : > { %v1401_v51 = vadd.f32 %v1353_v10, %v1124_v26  ;;  %v883_v49 = vadd.f32 %v882_v40, %v744_v61  ;;  %v885_v8 = vpop.f32.mrf.mxu1 }
 0x189   : > { %v1078_v37 = vpop.f32.mrf.mxu2 }
 0x18a   : > { %v1440_v7 = vadd.f32 %v4680_v54, %v1401_v51  ;;  %v1125_v30 = vadd.f32 %v1078_v37, %v883_v49  ;;  %v4198_v49 = vld [vmem:[%s4405_s11 + $0x40] sm:$0xff] }
 0x18b   : > { %3817 = vmatmul.msk.bf16.gmra.mxu1 %vm604_vm1, %v4581_v43 }
 0x18c   : > { %1476 = vst.msk [vmem:[%s4686_s18 + $0xe0] sm:$0xff] %vm604_vm1, %v1440_v7 }
 0x18e   : > { %3835 = vmatmul.msk.bf16.gmra.mxu2 %vm604_vm1, %v4584_v44 }
 0x18f   : > { %v1355_v18 = vpop.f32.mrf.mxu3  ;;  %v747_v46 = vpop.f32.mrf.mxu0 }
 0x190   : > { %v1402_v42 = vadd.f32 %v1355_v18, %v1125_v30  ;;  %v886_v53 = vadd.f32 %v885_v8, %v747_v46  ;;  %v887_v40 = vpop.f32.mrf.mxu1  ;;  %v1853_v8 = vrot.slane %v4198_v49, 2 }
 0x191   : > { %v1081_v60 = vpop.f32.mrf.mxu2 }
 0x192   : > { %v1441_v28 = vadd.f32 %v4680_v54, %v1402_v42  ;;  %3799 = vmatmul.msk.bf16.gmra.mxu0 %vm604_vm1, %v4547_v19  ;;  %v1126_v43 = vadd.f32 %v1081_v60, %v886_v53  ;;  %v5138_v60 = vsel %vm1839_vm5, %v1851_v23, %v1853_v8 }
 0x194   : > { %1477 = vst.msk [vmem:[%s4686_s18 + $0xe8] sm:$0xff] %vm604_vm1, %v1441_v28  ;;  %3853 = vmatmul.msk.bf16.gmra.mxu3 %vm604_vm1, %v5120_v52 }
 0x197   : > { %v1358_v26 = vpop.f32.mrf.mxu3  ;;  %v749_v51 = vpop.f32.mrf.mxu0 }
 0x198   : > { %v1403_v10 = vadd.f32 %v1358_v26, %v1126_v43  ;;  %v888_v37 = vadd.f32 %v887_v40, %v749_v51  ;;  %v890_v7 = vpop.f32.mrf.mxu1 }
 0x199   : > { %v1083_v61 = vpop.f32.mrf.mxu2 }
 0x19a   : > { %v1442_v1 = vadd.f32 %v4680_v54, %v1403_v10  ;;  %v1127_v5 = vadd.f32 %v1083_v61, %v888_v37  ;;  %v4199_v37 = vld [vmem:[%s4405_s11 + $0x48] sm:$0xff] }
 0x19b   : > { %3818 = vmatmul.msk.bf16.gmra.mxu1 %vm604_vm1, %v4606_v2 }
 0x19c   : > { %1478 = vst.msk [vmem:[%s4686_s18 + $0xf0] sm:$0xff] %vm604_vm1, %v1442_v1 }
 0x19e   : > { %3836 = vmatmul.msk.bf16.gmra.mxu2 %vm604_vm1, %v4609_v3 }
 0x19f   : > { %v1360_v30 = vpop.f32.mrf.mxu3  ;;  %v752_v42 = vpop.f32.mrf.mxu0 }
 0x1a0   : > { %v1404_v18 = vadd.f32 %v1360_v30, %v1127_v5  ;;  %v891_v46 = vadd.f32 %v890_v7, %v752_v42  ;;  %v892_v40 = vpop.f32.mrf.mxu1  ;;  %v1855_v7 = vrot.slane %v4199_v37, 2 }
 0x1a1   : > { %v1086_v53 = vpop.f32.mrf.mxu2 }
 0x1a2   : > { %v1443_v28 = vadd.f32 %v4680_v54, %v1404_v18  ;;  %3800 = vmatmul.msk.bf16.gmra.mxu0 %vm604_vm1, %v4573_v34  ;;  %v1128_v2 = vadd.f32 %v1086_v53, %v891_v46  ;;  %v5156_v53 = vsel %vm1839_vm5, %v1853_v8, %v1855_v7 }
 0x1a4   : > { %1479 = vst.msk [vmem:[%s4686_s18 + $0xf8] sm:$0xff] %vm604_vm1, %v1443_v28  ;;  %3854 = vmatmul.msk.bf16.gmra.mxu3 %vm604_vm1, %v5138_v60 }
 0x1a7   : > { %v1363_v43 = vpop.f32.mrf.mxu3  ;;  %v754_v10 = vpop.f32.mrf.mxu0 }
 0x1a8   : > { %v1405_v26 = vadd.f32 %v1363_v43, %v1128_v2  ;;  %v893_v61 = vadd.f32 %v892_v40, %v754_v10  ;;  %v895_v1 = vpop.f32.mrf.mxu1 }
 0x1a9   : > { %v1088_v51 = vpop.f32.mrf.mxu2 }
 0x1aa   : > { %v1444_v23 = vadd.f32 %v4680_v54, %v1405_v26  ;;  %v1129_v49 = vadd.f32 %v1088_v51, %v893_v61  ;;  %v5165_v51 = vld [vmem:[#allocation4] ss:$0 sm:$0xff]  ;;  %v4201_v61 = vld [vmem:[%s4405_s11 + $0x50] sm:$0xff] }
 0x1ab   : > { %3819 = vmatmul.msk.bf16.gmra.mxu1 %vm604_vm1, %v4631_v25 }
 0x1ac   : > { %1480 = vst.msk [vmem:[%s4686_s18 + $0x100] sm:$0xff] %vm604_vm1, %v1444_v23 }
 0x1ae   : > { %3837 = vmatmul.msk.bf16.gmra.mxu2 %vm604_vm1, %v4634_v31 }
 0x1af   : > { %v1365_v5 = vpop.f32.mrf.mxu3  ;;  %v757_v18 = vpop.f32.mrf.mxu0 }
 0x1b0   : > { %v1406_v30 = vadd.f32 %v1365_v5, %v1129_v49  ;;  %v896_v42 = vadd.f32 %v895_v1, %v757_v18  ;;  %v897_v40 = vpop.f32.mrf.mxu1  ;;  %v1857_v1 = vrot.slane %v4201_v61, 2 }
 0x1b1   : > { %v1091_v46 = vpop.f32.mrf.mxu2 }
 0x1b2   : > { %v1445_v28 = vadd.f32 %v4680_v54, %v1406_v30  ;;  %3801 = vmatmul.msk.bf16.gmra.mxu0 %vm604_vm1, %v4598_v58  ;;  %v1130_v25 = vadd.f32 %v1091_v46, %v896_v42  ;;  %v5176_v46 = vsel %vm1839_vm5, %v1855_v7, %v1857_v1 }
 0x1b4   : > { %1481 = vst.msk [vmem:[%s4686_s18 + $0x108] sm:$0xff] %vm604_vm1, %v1445_v28  ;;  %3855 = vmatmul.msk.bf16.gmra.mxu3 %vm604_vm1, %v5156_v53 }
 0x1b7   : > { %v1368_v2 = vpop.f32.mrf.mxu3  ;;  %v759_v26 = vpop.f32.mrf.mxu0 }
 0x1b8   : > { %v1407_v43 = vadd.f32 %v1368_v2, %v1130_v25  ;;  %v898_v54 = vadd.f32 %v897_v40, %v759_v26  ;;  %v1607_v23 = vpop.f32.mrf.mxu1 }
 0x1b9   : > { %v1093_v10 = vpop.f32.mrf.mxu2 }
 0x1ba   : > { %v1446_v8 = vadd.f32 %v5165_v51, %v1407_v43  ;;  %v1131_v37 = vadd.f32 %v1093_v10, %v898_v54  ;;  %v4202_v54 = vld [vmem:[%s4405_s11 + $0x58] sm:$0xff] }
 0x1bb   : > { %3820 = vmatmul.msk.bf16.gmra.mxu1 %vm604_vm1, %v4661_v13 }
 0x1bc   : > { %1482 = vst.msk [vmem:[%s4686_s18 + $0x110] sm:$0xff] %vm604_vm1, %v1446_v8 }
 0x1be   : > { %3838 = vmatmul.msk.bf16.gmra.mxu2 %vm604_vm1, %v4664_v9 }
 0x1bf   : > { %v1370_v49 = vpop.f32.mrf.mxu3  ;;  %v1505_v30 = vpop.f32.mrf.mxu0 }
 0x1c0   : > { %v1408_v5 = vadd.f32 %v1370_v49, %v1131_v37  ;;  %v1608_v18 = vadd.f32 %v1607_v23, %v1505_v30  ;;  %v1609_v40 = vpop.f32.mrf.mxu1  ;;  %v1859_v23 = vrot.slane %v4202_v54, 2 }
 0x1c1   : > { %v1711_v42 = vpop.f32.mrf.mxu2 }
 0x1c2   : > { %v1447_v28 = vadd.f32 %v5165_v51, %v1408_v5  ;;  %3802 = vmatmul.msk.bf16.gmra.mxu0 %vm604_vm1, %v4623_v17  ;;  %v1801_v13 = vadd.f32 %v1711_v42, %v1608_v18  ;;  %v5194_v42 = vsel %vm1839_vm5, %v1857_v1, %v1859_v23 }
 0x1c4   : > { %1483 = vst.msk [vmem:[%s4686_s18 + $0x118] sm:$0xff] %vm604_vm1, %v1447_v28  ;;  %3856 = vmatmul.msk.bf16.gmra.mxu3 %vm604_vm1, %v5176_v46 }
 0x1c7   : > { %v1943_v25 = vpop.f32.mrf.mxu3  ;;  %v1507_v43 = vpop.f32.mrf.mxu0 }
 0x1c8   : > { %v2033_v2 = vadd.f32 %v1943_v25, %v1801_v13  ;;  %v1610_v10 = vadd.f32 %v1609_v40, %v1507_v43  ;;  %v1612_v8 = vpop.f32.mrf.mxu1 }
 0x1c9   : > { %v1713_v26 = vpop.f32.mrf.mxu2 }
 0x1ca   : > { %v2069_v7 = vadd.f32 %v5165_v51, %v2033_v2  ;;  %v1802_v61 = vadd.f32 %v1713_v26, %v1610_v10  ;;  %v4203_v10 = vld [vmem:[%s4405_s11 + $0x60] sm:$0xff] }
 0x1cb   : > { %3821 = vmatmul.msk.bf16.gmra.mxu1 %vm604_vm1, %v4702_v35 }
 0x1cc   : > { %3866 = vst.msk [vmem:[%s4686_s18 + $0x120] sm:$0xff] %vm604_vm1, %v2069_v7 }
 0x1ce   : > { %3839 = vmatmul.msk.bf16.gmra.mxu2 %vm604_vm1, %v4705_v59 }
 0x1cf   : > { %v1945_v37 = vpop.f32.mrf.mxu3  ;;  %v1510_v5 = vpop.f32.mrf.mxu0 }
 0x1d0   : > { %v2034_v49 = vadd.f32 %v1945_v37, %v1802_v61  ;;  %v1613_v30 = vadd.f32 %v1612_v8, %v1510_v5  ;;  %v1614_v40 = vpop.f32.mrf.mxu1  ;;  %v1861_v8 = vrot.slane %v4203_v10, 2 }
 0x1d1   : > { %v1716_v18 = vpop.f32.mrf.mxu2 }
 0x1d2   : > { %v2070_v28 = vadd.f32 %v5165_v51, %v2034_v49  ;;  %3803 = vmatmul.msk.bf16.gmra.mxu0 %vm604_vm1, %v4653_v55  ;;  %v1803_v35 = vadd.f32 %v1716_v18, %v1613_v30  ;;  %v5212_v18 = vsel %vm1839_vm5, %v1859_v23, %v1861_v8 }
 0x1d4   : > { %3867 = vst.msk [vmem:[%s4686_s18 + $0x128] sm:$0xff] %vm604_vm1, %v2070_v28  ;;  %3857 = vmatmul.msk.bf16.gmra.mxu3 %vm604_vm1, %v5194_v42 }
 0x1d7   : > { %v1948_v13 = vpop.f32.mrf.mxu3  ;;  %v1512_v2 = vpop.f32.mrf.mxu0 }
 0x1d8   : > { %v2035_v25 = vadd.f32 %v1948_v13, %v1803_v35  ;;  %v1615_v26 = vadd.f32 %v1614_v40, %v1512_v2  ;;  %v1617_v7 = vpop.f32.mrf.mxu1 }
 0x1d9   : > { %v1718_v43 = vpop.f32.mrf.mxu2 }
 0x1da   : > { %v2071_v1 = vadd.f32 %v5165_v51, %v2035_v25  ;;  %v1804_v54 = vadd.f32 %v1718_v43, %v1615_v26  ;;  %v4204_v26 = vld [vmem:[%s4405_s11 + $0x68] sm:$0xff] }
 0x1db   : > { %3822 = vmatmul.msk.bf16.gmra.mxu1 %vm604_vm1, %v4739_v56 }
 0x1dc   : > { %3868 = vst.msk [vmem:[%s4686_s18 + $0x130] sm:$0xff] %vm604_vm1, %v2071_v1 }
 0x1de   : > { %3840 = vmatmul.msk.bf16.gmra.mxu2 %vm604_vm1, %v4742_v24 }
 0x1df   : > { %v1950_v61 = vpop.f32.mrf.mxu3  ;;  %v1515_v49 = vpop.f32.mrf.mxu0 }
 0x1e0   : > { %v2036_v37 = vadd.f32 %v1950_v61, %v1804_v54  ;;  %v1618_v5 = vadd.f32 %v1617_v7, %v1515_v49  ;;  %v1619_v40 = vpop.f32.mrf.mxu1  ;;  %v1863_v7 = vrot.slane %v4204_v26, 2  ;;  %v6191_v54 = vld [vmem:[#allocation34_spill] sm:$0xff] }
 0x1e1   : > { %v1721_v30 = vpop.f32.mrf.mxu2  ;;  %v6193_v26 = vld [vmem:[#allocation38_spill] sm:$0xff] }
 0x1e2   : > { %v2072_v28 = vadd.f32 %v5165_v51, %v2036_v37  ;;  %3804 = vmatmul.msk.bf16.gmra.mxu0 %vm604_vm1, %v4692_v14  ;;  %v1805_v56 = vadd.f32 %v1721_v30, %v1618_v5 }
 0x1e4   : > { %3869 = vst.msk [vmem:[%s4686_s18 + $0x138] sm:$0xff] %vm604_vm1, %v2072_v28  ;;  %3858 = vmatmul.msk.bf16.gmra.mxu3 %vm604_vm1, %v5212_v18  ;;  %v5230_v28 = vsel %vm1839_vm5, %v1861_v8, %v1863_v7 }
 0x1e7   : > { %v1953_v35 = vpop.f32.mrf.mxu3  ;;  %v1517_v25 = vpop.f32.mrf.mxu0 }
 0x1e8   : > { %v2037_v13 = vadd.f32 %v1953_v35, %v1805_v56  ;;  %v1620_v43 = vadd.f32 %v1619_v40, %v1517_v25  ;;  %v1622_v1 = vpop.f32.mrf.mxu1 }
 0x1e9   : > { %v1723_v2 = vpop.f32.mrf.mxu2 }
 0x1ea   : > { %v2073_v23 = vadd.f32 %v5165_v51, %v2037_v13  ;;  %v1806_v10 = vadd.f32 %v1723_v2, %v1620_v43 }
 0x1eb   : > { %3823 = vmatmul.msk.bf16.gmra.mxu1 %vm604_vm1, %v4776_v16  ;;  %v6192_v16 = vld [vmem:[#allocation30_spill] sm:$0xff] }
 0x1ec   : > { %3870 = vst.msk [vmem:[%s4686_s18 + $0x140] sm:$0xff] %vm604_vm1, %v2073_v23 }
 0x1ee   : > { %3841 = vmatmul.msk.bf16.gmra.mxu2 %vm604_vm1, %v6191_v54 }
 0x1ef   : > { %v1955_v61 = vpop.f32.mrf.mxu3  ;;  %v1520_v49 = vpop.f32.mrf.mxu0 }
 0x1f0   : > { %v2038_v37 = vadd.f32 %v1955_v61, %v1806_v10  ;;  %v1623_v5 = vadd.f32 %v1622_v1, %v1520_v49  ;;  %v1624_v56 = vpop.f32.mrf.mxu1  ;;  %v4205_v10 = vld [vmem:[%s4405_s11 + $0x70] sm:$0xff]  ;;  %v6194_v49 = vld [vmem:[#allocation39_spill] sm:$0xff] }
 0x1f1   : > { %v1726_v30 = vpop.f32.mrf.mxu2  ;;  %v1865_v61 = vrot.slane %v4205_v10, 2 }
 0x1f2   : > { %v2074_v40 = vadd.f32 %v5165_v51, %v2038_v37  ;;  %3805 = vmatmul.msk.bf16.gmra.mxu0 %vm604_vm1, %v6192_v16  ;;  %v1807_v35 = vadd.f32 %v1726_v30, %v1623_v5 }
 0x1f4   : > { %3871 = vst.msk [vmem:[%s4686_s18 + $0x148] sm:$0xff] %vm604_vm1, %v2074_v40  ;;  %3859 = vmatmul.msk.bf16.gmra.mxu3 %vm604_vm1, %v5230_v28 }
 0x1f7   : > { %v1958_v13 = vpop.f32.mrf.mxu3  ;;  %v1522_v2 = vpop.f32.mrf.mxu0 }
 0x1f8   : > { %v2039_v25 = vadd.f32 %v1958_v13, %v1807_v35  ;;  %v1625_v43 = vadd.f32 %v1624_v56, %v1522_v2  ;;  %v1627_v1 = vpop.f32.mrf.mxu1  ;;  %v5248_v56 = vsel %vm1839_vm5, %v1863_v7, %v1865_v61 }
 0x1f9   : > { %v1728_v23 = vpop.f32.mrf.mxu2 }
 0x1fa   : > { %v2075_v8 = vadd.f32 %v5165_v51, %v2039_v25  ;;  %v1808_v37 = vadd.f32 %v1728_v23, %v1625_v43 }
 0x1fb   : > { %3824 = vmatmul.msk.bf16.gmra.mxu1 %vm604_vm1, %v6193_v26 }
 0x1fc   : > { %3872 = vst.msk [vmem:[%s4686_s18 + $0x150] sm:$0xff] %vm604_vm1, %v2075_v8  ;;  %v6195_v8 = vld [vmem:[#allocation33_spill] sm:$0xff] }
 0x1fe   : > { %3842 = vmatmul.msk.bf16.gmra.mxu2 %vm604_vm1, %v6194_v49 }
 0x1ff   : > { %v1960_v5 = vpop.f32.mrf.mxu3  ;;  %v1525_v40 = vpop.f32.mrf.mxu0 }
 0x200   : > { %v2040_v30 = vadd.f32 %v1960_v5, %v1808_v37  ;;  %v1628_v35 = vadd.f32 %v1627_v1, %v1525_v40  ;;  %v1629_v2 = vpop.f32.mrf.mxu1  ;;  %v4206_v40 = vld [vmem:[%s4405_s11 + $0x78] sm:$0xff] }
 0x201   : > { %v1731_v13 = vpop.f32.mrf.mxu2 }
 0x202   : > { %v2076_v25 = vadd.f32 %v5165_v51, %v2040_v30  ;;  %3806 = vmatmul.msk.bf16.gmra.mxu0 %vm604_vm1, %v6195_v8  ;;  %v1809_v23 = vadd.f32 %v1731_v13, %v1628_v35  ;;  %v6196_v30 = vld [vmem:[#allocation43_spill] sm:$0xff]  ;;  %v6197_v13 = vld [vmem:[#allocation44_spill] sm:$0xff] }
 0x204   : > { %3873 = vst.msk [vmem:[%s4686_s18 + $0x158] sm:$0xff] %vm604_vm1, %v2076_v25  ;;  %3860 = vmatmul.msk.bf16.gmra.mxu3 %vm604_vm1, %v5248_v56  ;;  %v1867_v25 = vrot.slane %v4206_v40, 2 }
 0x207   : > { %v1963_v43 = vpop.f32.mrf.mxu3  ;;  %v1527_v26 = vpop.f32.mrf.mxu0 }
 0x208   : > { %v2041_v1 = vadd.f32 %v1963_v43, %v1809_v23  ;;  %v1630_v37 = vadd.f32 %v1629_v2, %v1527_v26  ;;  %v1632_v5 = vpop.f32.mrf.mxu1  ;;  %v5266_v2 = vsel %vm1839_vm5, %v1865_v61, %v1867_v25 }
 0x209   : > { %v1733_v10 = vpop.f32.mrf.mxu2 }
 0x20a   : > { %v2077_v7 = vadd.f32 %v5165_v51, %v2041_v1  ;;  %v1810_v35 = vadd.f32 %v1733_v10, %v1630_v37 }
 0x20b   : > { %3825 = vmatmul.msk.bf16.gmra.mxu1 %vm604_vm1, %v6196_v30 }
 0x20c   : > { %3874 = vst.msk [vmem:[%s4686_s18 + $0x160] sm:$0xff] %vm604_vm1, %v2077_v7 }
 0x20e   : > { %3843 = vmatmul.msk.bf16.gmra.mxu2 %vm604_vm1, %v6197_v13 }
 0x20f   : > { %v1965_v63 = vpop.f32.mrf.mxu3  ;;  %v1530_v43 = vpop.f32.mrf.mxu0 }
 0x210   : > { %v2042_v23 = vadd.f32 %v1965_v63, %v1810_v35  ;;  %v1633_v12 = vadd.f32 %v1632_v5, %v1530_v43  ;;  %v1634_v7 = vpop.f32.mrf.mxu1  ;;  %v6199_v43 = vld [vmem:[#allocation48_spill] sm:$0xff] }
 0x211   : > { %v1736_v1 = vpop.f32.mrf.mxu2 }
 0x212   : > { %v2078_v26 = vadd.f32 %v5165_v51, %v2042_v23  ;;  %3807 = vmatmul.msk.bf16.gmra.mxu0 %vm604_vm1, %v6198_v15  ;;  %v1811_v10 = vadd.f32 %v1736_v1, %v1633_v12  ;;  %v1869_v23 = vrot.slane %v4856_v41, 2 }
 0x214   : > { %3875 = vst.msk [vmem:[%s4686_s18 + $0x168] sm:$0xff] %vm604_vm1, %v2078_v26  ;;  %3861 = vmatmul.msk.bf16.gmra.mxu3 %vm604_vm1, %v5266_v2 }
 0x217   : > { %v1968_v63 = vpop.f32.mrf.mxu3  ;;  %v1532_v5 = vpop.f32.mrf.mxu0 }
 0x218   : > { %v2043_v37 = vadd.f32 %v1968_v63, %v1811_v10  ;;  %v1635_v61 = vadd.f32 %v1634_v7, %v1532_v5  ;;  %v1637_v35 = vpop.f32.mrf.mxu1  ;;  %v5284_v7 = vsel %vm1839_vm5, %v1867_v25, %v1869_v23 }
 0x219   : > { %v1738_v30 = vpop.f32.mrf.mxu2  ;;  %6200 = vst [vmem:[#allocation34_spill] sm:$0xff] %v5284_v7 }
 0x21a   : > { %v2079_v40 = vadd.f32 %v5165_v51, %v2043_v37  ;;  %v1812_v12 = vadd.f32 %v1738_v30, %v1635_v61 }
 0x21b   : > { %3826 = vmatmul.msk.bf16.gmra.mxu1 %vm604_vm1, %v4887_v4 }
 0x21c   : > { %3876 = vst.msk [vmem:[%s4686_s18 + $0x170] sm:$0xff] %vm604_vm1, %v2079_v40 }
 0x21e   : > { %3844 = vmatmul.msk.bf16.gmra.mxu2 %vm604_vm1, %v6199_v43  ;;  %v6204_v43 = vld [vmem:[#allocation47_spill] sm:$0xff] }
 0x21f   : > { %v1970_v1 = vpop.f32.mrf.mxu3  ;;  %v1535_v10 = vpop.f32.mrf.mxu0 }
 0x220   : > { %v2044_v26 = vadd.f32 %v1970_v1, %v1812_v12  ;;  %v1638_v63 = vadd.f32 %v1637_v35, %v1535_v10  ;;  %v1639_v40 = vpop.f32.mrf.mxu1 }
 0x221   : > { %v1741_v37 = vpop.f32.mrf.mxu2 }
 0x222   : > { %v2080_v5 = vadd.f32 %v5165_v51, %v2044_v26  ;;  %3808 = vmatmul.msk.bf16.gmra.mxu0 %vm604_vm1, %v6201_v21  ;;  %v1813_v41 = vadd.f32 %v1741_v37, %v1638_v63  ;;  %v1871_v26 = vrot.slane %v4893_v33, 2  ;;  %v6202_v63 = vld [vmem:[#allocation52_spill] sm:$0xff] }
 0x224   : > { %3877 = vst.msk [vmem:[%s4686_s18 + $0x178] sm:$0xff] %vm604_vm1, %v2080_v5  ;;  %3862 = vmatmul.msk.bf16.gmra.mxu3 %vm604_vm1, %v5284_v7 }
 0x227   : > { %v1973_v4 = vpop.f32.mrf.mxu3  ;;  %v1537_v61 = vpop.f32.mrf.mxu0 }
 0x228   : > { %v2045_v30 = vadd.f32 %v1973_v4, %v1813_v41  ;;  %v1640_v25 = vadd.f32 %v1639_v40, %v1537_v61  ;;  %v1642_v1 = vpop.f32.mrf.mxu1  ;;  %v5302_v40 = vsel %vm1839_vm5, %v1869_v23, %v1871_v26 }
 0x229   : > { %v1743_v35 = vpop.f32.mrf.mxu2  ;;  %6203 = vst [vmem:[#allocation30_spill] sm:$0xff] %v5302_v40 }
 0x22a   : > { %v2081_v12 = vadd.f32 %v5165_v51, %v2045_v30  ;;  %v1814_v10 = vadd.f32 %v1743_v35, %v1640_v25 }
 0x22b   : > { %3827 = vmatmul.msk.bf16.gmra.mxu1 %vm604_vm1, %v4930_v0 }
 0x22c   : > { %3878 = vst.msk [vmem:[%s4686_s18 + $0x180] sm:$0xff] %vm604_vm1, %v2081_v12 }
 0x22e   : > { %3845 = vmatmul.msk.bf16.gmra.mxu2 %vm604_vm1, %v6202_v63 }
 0x22f   : > { %v1975_v37 = vpop.f32.mrf.mxu3  ;;  %v1540_v41 = vpop.f32.mrf.mxu0 }
 0x230   : > { %v2046_v5 = vadd.f32 %v1975_v37, %v1814_v10  ;;  %v1643_v4 = vadd.f32 %v1642_v1, %v1540_v41  ;;  %v1644_v12 = vpop.f32.mrf.mxu1  ;;  %v6206_v41 = vld [vmem:[#allocation53_spill] sm:$0xff] }
 0x231   : > { %v1746_v30 = vpop.f32.mrf.mxu2 }
 0x232   : > { %v2082_v61 = vadd.f32 %v5165_v51, %v2046_v5  ;;  %3809 = vmatmul.msk.bf16.gmra.mxu0 %vm604_vm1, %v6204_v43  ;;  %v1815_v33 = vadd.f32 %v1746_v30, %v1643_v4  ;;  %v6205_v5 = vld [vmem:[#allocation57_spill] sm:$0xff]  ;;  %v6207_v30 = vld [vmem:[#allocation58_spill] sm:$0xff] }
 0x234   : > { %3879 = vst.msk [vmem:[%s4686_s18 + $0x188] sm:$0xff] %vm604_vm1, %v2082_v61  ;;  %3863 = vmatmul.msk.bf16.gmra.mxu3 %vm604_vm1, %v5302_v40  ;;  %v1873_v61 = vrot.slane %v6206_v41, 2 }
 0x237   : > { %v1978_v0 = vpop.f32.mrf.mxu3  ;;  %v1542_v25 = vpop.f32.mrf.mxu0 }
 0x238   : > { %v2047_v35 = vadd.f32 %v1978_v0, %v1815_v33  ;;  %v1645_v23 = vadd.f32 %v1644_v12, %v1542_v25  ;;  %v1647_v37 = vpop.f32.mrf.mxu1  ;;  %v5320_v12 = vsel %vm1839_vm5, %v1871_v26, %v1873_v61  ;;  %v2846_v26 = vld [vmem:[#allocation2 + $0x1a] sm:$0x3] }
 0x239   : > { %v1748_v1 = vpop.f32.mrf.mxu2  ;;  %6208 = vst [vmem:[#allocation38_spill] sm:$0xff] %v5320_v12 }
 0x23a   : > { %v2083_v10 = vadd.f32 %v5165_v51, %v2047_v35  ;;  %v1816_v4 = vadd.f32 %v1748_v1, %v1645_v23  ;;  %v3052_v23 = vld [vmem:[#allocation2 + $0x1c] sm:$0x3] }
 0x23b   : > { %3828 = vmatmul.msk.bf16.gmra.mxu1 %vm604_vm1, %v6205_v5 }
 0x23c   : > { %3880 = vst.msk [vmem:[%s4686_s18 + $0x190] sm:$0xff] %vm604_vm1, %v2083_v10  ;;  %v6209_v10 = vld [vmem:[#allocation51_spill] sm:$0xff] }
 0x23e   : > { %3846 = vmatmul.msk.bf16.gmra.mxu2 %vm604_vm1, %v6207_v30 }
 0x23f   : > { %v1980_v63 = vpop.f32.mrf.mxu3  ;;  %v1545_v0 = vpop.f32.mrf.mxu0 }
 0x240   : > { %v2048_v33 = vadd.f32 %v1980_v63, %v1816_v4  ;;  %v1648_v40 = vadd.f32 %v1647_v37, %v1545_v0  ;;  %v1649_v25 = vpop.f32.mrf.mxu1  ;;  %v3192_v63 = vld [vmem:[#allocation2 + $0x1e] sm:$0x3]  ;;  %v3054_v37 = vsel %vm659_vm0, %v3052_v23, 0  ;;  %v2844_v4 = vld [vmem:[#allocation2 + $0x18] sm:$0x3] }
 0x241   : > { %v1751_v43 = vpop.f32.mrf.mxu2  ;;  %v3286_v5 = vsel %vm659_vm0, %v3192_v63, 0  ;;  %3063 = vmatpush.bf16.msrb.mxu2 %v3054_v37  ;;  %v2950_v0 = vsel %vm659_vm0, %v2844_v4, 0  ;;  %v6121_v37 = vrot.slane %v4966_v32, 2 }
 0x242   : > { %v2084_v35 = vadd.f32 %v5165_v51, %v2048_v33  ;;  %3810 = vmatmul.msk.bf16.gmra.mxu0 %vm604_vm1, %v6209_v10  ;;  %v1817_v1 = vadd.f32 %v1751_v43, %v1648_v40  ;;  %3295 = vmatpush.bf16.msrb.mxu3 %v3286_v5  ;;  %v2848_v33 = vsel %vm659_vm0, %v2846_v26, 0 }
 0x243   : > { %2857 = vmatpush.bf16.msrb.mxu0 %v2848_v33  ;;  %2959 = vmatpush.bf16.msrb.mxu1 %v2950_v0 }
 0x244   : > { %3881 = vst.msk [vmem:[%s4686_s18 + $0x198] sm:$0xff] %vm604_vm1, %v2084_v35  ;;  %3864 = vmatmul.msk.bf16.gmra.mxu3 %vm604_vm1, %v5320_v12 }
 0x247   : > { %v1983_v35 = vpop.f32.mrf.mxu3  ;;  %v1547_v40 = vpop.f32.mrf.mxu0 }
 0x248   : > { %v2049_v43 = vadd.f32 %v1983_v35, %v1817_v1  ;;  %v1650_v23 = vadd.f32 %v1649_v25, %v1547_v40  ;;  %v1652_v63 = vpop.f32.mrf.mxu1  ;;  %v5344_v25 = vsel %vm1839_vm5, %v1873_v61, %v6121_v37 }
 0x249   : > { %v1753_v30 = vpop.f32.mrf.mxu2  ;;  %6210 = vst [vmem:[#allocation39_spill] sm:$0xff] %v5344_v25 }
 0x24a   : > { %v2085_v12 = vadd.f32 %v5165_v51, %v2049_v43  ;;  %v1818_v5 = vadd.f32 %v1753_v30, %v1650_v23 }
 0x24b   : > { %3829 = vmatmul.msk.bf16.gmra.mxu1 %vm604_vm1, %v5005_v29  ;;  %v6211_v29 = vld [vmem:[#allocation55_spill] sm:$0xff] }
 0x24c   : > { %3882 = vst.msk [vmem:[%s4686_s18 + $0x1a0] sm:$0xff] %vm604_vm1, %v2085_v12 }
 0x24e   : > { %3847 = vmatmul.msk.bf16.gmra.mxu2 %vm604_vm1, %v5008_v20  ;;  %v6215_v20 = vld [vmem:[#allocation10_spill] sm:$0xff] }
 0x24f   : > { %v1985_v26 = vpop.f32.mrf.mxu3  ;;  %v1550_v4 = vpop.f32.mrf.mxu0  ;;  %v2502_v32 = vrot.slane %v6215_v20, 3 }
 0x250   : > { %v2050_v1 = vadd.f32 %v1985_v26, %v1818_v5  ;;  %v1653_v33 = vadd.f32 %v1652_v63, %v1550_v4  ;;  %v1654_v35 = vpop.f32.mrf.mxu1  ;;  %v6212_v5 = vld [vmem:[#allocation9_spill] sm:$0xff]  ;;  %v6213_v26 = vld [vmem:[#allocation8_spill] sm:$0xff] }
 0x251   : > { %v1756_v0 = vpop.f32.mrf.mxu2  ;;  %v2498_v61 = vrot.slane %v6212_v5, 2  ;;  %v2499_v4 = vrot.slane %v6213_v26, 3 }
 0x252   : > { %v2086_v12 = vadd.f32 %v5165_v51, %v2050_v1  ;;  %3811 = vmatmul.msk.bf16.gmra.mxu0 %vm604_vm1, %v6211_v29  ;;  %v1819_v30 = vadd.f32 %v1756_v0, %v1653_v33  ;;  %v6214_v1 = vld [vmem:[#allocation11_spill] sm:$0xff] }
 0x253   : > { %v2501_v37 = vrot.slane %v6214_v1, 2  ;;  %v2500_v33 = vor.u32 %v2499_v4, %v2498_v61  ;;  %v6216_v61 = vld [vmem:[#allocation13_spill] sm:$0xff]  ;;  %v6217_v1 = vld [vmem:[#allocation12_spill] sm:$0xff] }
 0x254   : > { %3883 = vst.msk [vmem:[%s4686_s18 + $0x1a8] sm:$0xff] %vm604_vm1, %v2086_v12  ;;  %3865 = vmatmul.msk.bf16.gmra.mxu3 %vm604_vm1, %v5344_v25  ;;  %v2505_v4 = vrot.slane %v6216_v61, 2 }
 0x255   : > { %v2503_v0 = vor.u32 %v2502_v32, %v2501_v37 }
 0x257   : > { %v1988_v43 = vpop.f32.mrf.mxu3  ;;  %v1552_v23 = vpop.f32.mrf.mxu0 }
 0x258   : > { %v2051_v40 = vadd.f32 %v1988_v43, %v1819_v30  ;;  %v1655_v10 = vadd.f32 %v1654_v35, %v1552_v23  ;;  %v1657_v12 = vpop.f32.mrf.mxu1  ;;  %v5365_v35 = vsel %vm2497_vm6, %v2500_v33, %v2503_v0 }
 0x259   : > { %v1758_v63 = vpop.f32.mrf.mxu2 }
 0x25a   : > { %v2087_v29 = vadd.f32 %v5165_v51, %v2051_v40  ;;  %v1820_v30 = vadd.f32 %v1758_v63, %v1655_v10 }
 0x25b   : > { %3920 = vmatmul.msk.bf16.vlgmr.msra.gmra.mxu1 %vm604_vm1, %v4430_v22 }
 0x25c   : > { %3884 = vst.msk [vmem:[%s4686_s18 + $0x1b0] sm:$0xff] %vm604_vm1, %v2087_v29 }
 0x25e   : > { %3938 = vmatmul.msk.bf16.vlgmr.msra.gmra.mxu2 %vm604_vm1, %v5048_v47 }
 0x25f   : > { %v1990_v43 = vpop.f32.mrf.mxu3  ;;  %v1555_v20 = vpop.f32.mrf.mxu0 }
 0x260   : > { %v2052_v5 = vadd.f32 %v1990_v43, %v1820_v30  ;;  %v1658_v26 = vadd.f32 %v1657_v12, %v1555_v20  ;;  %v1659_v23 = vpop.f32.mrf.mxu1  ;;  %v2506_v12 = vrot.slane %v6217_v1, 3 }
 0x261   : > { %v1761_v40 = vpop.f32.mrf.mxu2 }
 0x262   : > { %v2088_v29 = vadd.f32 %v5165_v51, %v2052_v5  ;;  %3902 = vmatmul.msk.bf16.vlgmr.msra.gmra.mxu0 %vm604_vm1, %v4451_v39  ;;  %v1821_v22 = vadd.f32 %v1761_v40, %v1658_v26  ;;  %v2507_v5 = vor.u32 %v2506_v12, %v2505_v4  ;;  %v6218_v12 = vld [vmem:[#allocation15_spill] sm:$0xff] }
 0x264   : > { %3885 = vst.msk [vmem:[%s4686_s18 + $0x1b8] sm:$0xff] %vm604_vm1, %v2088_v29  ;;  %3956 = vmatmul.msk.bf16.vlgmr.msra.gmra.mxu3 %vm604_vm1, %v5365_v35 }
 0x267   : > { %v1993_v32 = vpop.f32.mrf.mxu3  ;;  %v1557_v37 = vpop.f32.mrf.mxu0 }
 0x268   : > { %v2053_v10 = vadd.f32 %v1993_v32, %v1821_v22  ;;  %v1660_v30 = vadd.f32 %v1659_v23, %v1557_v37  ;;  %v1662_v43 = vpop.f32.mrf.mxu1 }
 0x269   : > { %v1763_v63 = vpop.f32.mrf.mxu2 }
 0x26a   : > { %v2089_v33 = vadd.f32 %v5165_v51, %v2053_v10  ;;  %v1822_v20 = vadd.f32 %v1763_v63, %v1660_v30  ;;  %v5384_v10 = vsel %vm2497_vm6, %v2503_v0, %v2507_v5  ;;  %v2509_v0 = vrot.slane %v6218_v12, 2 }
 0x26b   : > { %3921 = vmatmul.msk.bf16.gmra.mxu1 %vm604_vm1, %v4465_v45 }
 0x26c   : > { %3886 = vst.msk [vmem:[%s4686_s18 + $0x1c0] sm:$0xff] %vm604_vm1, %v2089_v33  ;;  %v6219_v33 = vld [vmem:[#allocation14_spill] sm:$0xff] }
 0x26d   : > { %v2510_v30 = vrot.slane %v6219_v33, 3 }
 0x26e   : > { %3939 = vmatmul.msk.bf16.gmra.mxu2 %vm604_vm1, %v5066_v38 }
 0x26f   : > { %v1995_v26 = vpop.f32.mrf.mxu3  ;;  %v1560_v29 = vpop.f32.mrf.mxu0 }
 0x270   : > { %v2054_v40 = vadd.f32 %v1995_v26, %v1822_v20  ;;  %v1663_v22 = vadd.f32 %v1662_v43, %v1560_v29  ;;  %v1664_v37 = vpop.f32.mrf.mxu1 }
 0x271   : > { %v1766_v32 = vpop.f32.mrf.mxu2 }
 0x272   : > { %v2090_v23 = vadd.f32 %v5165_v51, %v2054_v40  ;;  %3903 = vmatmul.msk.bf16.gmra.mxu0 %vm604_vm1, %v4476_v50  ;;  %v1823_v45 = vadd.f32 %v1766_v32, %v1663_v22  ;;  %v2511_v40 = vor.u32 %v2510_v30, %v2509_v0  ;;  %v6220_v30 = vld [vmem:[#allocation17_spill] sm:$0xff] }
 0x274   : > { %3887 = vst.msk [vmem:[%s4686_s18 + $0x1c8] sm:$0xff] %vm604_vm1, %v2090_v23  ;;  %3957 = vmatmul.msk.bf16.gmra.mxu3 %vm604_vm1, %v5384_v10 }
 0x277   : > { %v1998_v63 = vpop.f32.mrf.mxu3  ;;  %v1562_v4 = vpop.f32.mrf.mxu0 }
 0x278   : > { %v2055_v61 = vadd.f32 %v1998_v63, %v1823_v45  ;;  %v1665_v20 = vadd.f32 %v1664_v37, %v1562_v4  ;;  %v1667_v26 = vpop.f32.mrf.mxu1 }
 0x279   : > { %v1768_v1 = vpop.f32.mrf.mxu2 }
 0x27a   : > { %v2091_v43 = vadd.f32 %v5165_v51, %v2055_v61  ;;  %v1824_v29 = vadd.f32 %v1768_v1, %v1665_v20  ;;  %v5403_v61 = vsel %vm2497_vm6, %v2507_v5, %v2511_v40  ;;  %v2513_v5 = vrot.slane %v6220_v30, 2 }
 0x27b   : > { %3922 = vmatmul.msk.bf16.gmra.mxu1 %vm604_vm1, %v4495_v57 }
 0x27c   : > { %3888 = vst.msk [vmem:[%s4686_s18 + $0x1d0] sm:$0xff] %vm604_vm1, %v2091_v43  ;;  %v6221_v43 = vld [vmem:[#allocation16_spill] sm:$0xff] }
 0x27d   : > { %v2514_v20 = vrot.slane %v6221_v43, 3 }
 0x27e   : > { %3940 = vmatmul.msk.bf16.gmra.mxu2 %vm604_vm1, %v5084_v36 }
 0x27f   : > { %v2000_v22 = vpop.f32.mrf.mxu3  ;;  %v1565_v23 = vpop.f32.mrf.mxu0 }
 0x280   : > { %v2056_v32 = vadd.f32 %v2000_v22, %v1824_v29  ;;  %v1668_v45 = vadd.f32 %v1667_v26, %v1565_v23  ;;  %v1669_v4 = vpop.f32.mrf.mxu1 }
 0x281   : > { %v1771_v63 = vpop.f32.mrf.mxu2 }
 0x282   : > { %v2092_v37 = vadd.f32 %v5165_v51, %v2056_v32  ;;  %3904 = vmatmul.msk.bf16.gmra.mxu0 %vm604_vm1, %v4507_v62  ;;  %v1825_v57 = vadd.f32 %v1771_v63, %v1668_v45  ;;  %v2515_v32 = vor.u32 %v2514_v20, %v2513_v5  ;;  %v6222_v20 = vld [vmem:[#allocation19_spill] sm:$0xff] }
 0x284   : > { %3889 = vst.msk [vmem:[%s4686_s18 + $0x1d8] sm:$0xff] %vm604_vm1, %v2092_v37  ;;  %3958 = vmatmul.msk.bf16.gmra.mxu3 %vm604_vm1, %v5403_v61 }
 0x287   : > { %v2003_v1 = vpop.f32.mrf.mxu3  ;;  %v1567_v0 = vpop.f32.mrf.mxu0 }
 0x288   : > { %v2057_v12 = vadd.f32 %v2003_v1, %v1825_v57  ;;  %v1670_v29 = vadd.f32 %v1669_v4, %v1567_v0  ;;  %v1672_v22 = vpop.f32.mrf.mxu1 }
 0x289   : > { %v1773_v33 = vpop.f32.mrf.mxu2 }
 0x28a   : > { %v2093_v26 = vadd.f32 %v5165_v51, %v2057_v12  ;;  %v1826_v23 = vadd.f32 %v1773_v33, %v1670_v29  ;;  %v5422_v12 = vsel %vm2497_vm6, %v2511_v40, %v2515_v32  ;;  %v2517_v40 = vrot.slane %v6222_v20, 2 }
 0x28b   : > { %3923 = vmatmul.msk.bf16.gmra.mxu1 %vm604_vm1, %v4521_v6 }
 0x28c   : > { %3890 = vst.msk [vmem:[%s4686_s18 + $0x1e0] sm:$0xff] %vm604_vm1, %v2093_v26  ;;  %v6223_v26 = vld [vmem:[#allocation18_spill] sm:$0xff] }
 0x28d   : > { %v2518_v29 = vrot.slane %v6223_v26, 3 }
 0x28e   : > { %3941 = vmatmul.msk.bf16.gmra.mxu2 %vm604_vm1, %v5102_v48 }
 0x28f   : > { %v2005_v45 = vpop.f32.mrf.mxu3  ;;  %v1570_v37 = vpop.f32.mrf.mxu0 }
 0x290   : > { %v2058_v63 = vadd.f32 %v2005_v45, %v1826_v23  ;;  %v1673_v57 = vadd.f32 %v1672_v22, %v1570_v37  ;;  %v1674_v0 = vpop.f32.mrf.mxu1 }
 0x291   : > { %v1776_v1 = vpop.f32.mrf.mxu2 }
 0x292   : > { %v2094_v4 = vadd.f32 %v5165_v51, %v2058_v63  ;;  %3905 = vmatmul.msk.bf16.gmra.mxu0 %vm604_vm1, %v4533_v11  ;;  %v1827_v6 = vadd.f32 %v1776_v1, %v1673_v57  ;;  %v2519_v63 = vor.u32 %v2518_v29, %v2517_v40  ;;  %v6224_v29 = vld [vmem:[#allocation21_spill] sm:$0xff] }
 0x294   : > { %3891 = vst.msk [vmem:[%s4686_s18 + $0x1e8] sm:$0xff] %vm604_vm1, %v2094_v4  ;;  %3959 = vmatmul.msk.bf16.gmra.mxu3 %vm604_vm1, %v5422_v12 }
 0x297   : > { %v2008_v33 = vpop.f32.mrf.mxu3  ;;  %v1572_v5 = vpop.f32.mrf.mxu0 }
 0x298   : > { %v2059_v30 = vadd.f32 %v2008_v33, %v1827_v6  ;;  %v1675_v23 = vadd.f32 %v1674_v0, %v1572_v5  ;;  %v1677_v45 = vpop.f32.mrf.mxu1 }
 0x299   : > { %v1778_v43 = vpop.f32.mrf.mxu2 }
 0x29a   : > { %v2095_v22 = vadd.f32 %v5165_v51, %v2059_v30  ;;  %v1828_v37 = vadd.f32 %v1778_v43, %v1675_v23  ;;  %v5441_v30 = vsel %vm2497_vm6, %v2515_v32, %v2519_v63  ;;  %v2521_v32 = vrot.slane %v6224_v29, 2 }
 0x29b   : > { %3924 = vmatmul.msk.bf16.gmra.mxu1 %vm604_vm1, %v4547_v19 }
 0x29c   : > { %3892 = vst.msk [vmem:[%s4686_s18 + $0x1f0] sm:$0xff] %vm604_vm1, %v2095_v22  ;;  %v6225_v22 = vld [vmem:[#allocation20_spill] sm:$0xff] }
 0x29d   : > { %v2522_v23 = vrot.slane %v6225_v22, 3 }
 0x29e   : > { %3942 = vmatmul.msk.bf16.gmra.mxu2 %vm604_vm1, %v5120_v52 }
 0x29f   : > { %v2010_v57 = vpop.f32.mrf.mxu3  ;;  %v1575_v4 = vpop.f32.mrf.mxu0 }
 0x2a0   : > { %v2060_v1 = vadd.f32 %v2010_v57, %v1828_v37  ;;  %v1678_v6 = vadd.f32 %v1677_v45, %v1575_v4  ;;  %v1679_v5 = vpop.f32.mrf.mxu1 }
 0x2a1   : > { %v1781_v33 = vpop.f32.mrf.mxu2 }
 0x2a2   : > { %v2096_v0 = vadd.f32 %v5165_v51, %v2060_v1  ;;  %3906 = vmatmul.msk.bf16.gmra.mxu0 %vm604_vm1, %v4559_v27  ;;  %v1829_v19 = vadd.f32 %v1781_v33, %v1678_v6  ;;  %v2523_v1 = vor.u32 %v2522_v23, %v2521_v32  ;;  %v6226_v23 = vld [vmem:[#allocation23_spill] sm:$0xff] }
 0x2a4   : > { %3893 = vst.msk [vmem:[%s4686_s18 + $0x1f8] sm:$0xff] %vm604_vm1, %v2096_v0  ;;  %3960 = vmatmul.msk.bf16.gmra.mxu3 %vm604_vm1, %v5441_v30 }
 0x2a7   : > { %v2013_v43 = vpop.f32.mrf.mxu3  ;;  %v1577_v40 = vpop.f32.mrf.mxu0 }
 0x2a8   : > { %v2061_v20 = vadd.f32 %v2013_v43, %v1829_v19  ;;  %v1680_v37 = vadd.f32 %v1679_v5, %v1577_v40  ;;  %v1682_v57 = vpop.f32.mrf.mxu1 }
 0x2a9   : > { %v1783_v26 = vpop.f32.mrf.mxu2 }
 0x2aa   : > { %v2097_v45 = vadd.f32 %v5165_v51, %v2061_v20  ;;  %v1830_v4 = vadd.f32 %v1783_v26, %v1680_v37  ;;  %v5460_v20 = vsel %vm2497_vm6, %v2519_v63, %v2523_v1  ;;  %v2525_v63 = vrot.slane %v6226_v23, 2 }
 0x2ab   : > { %3925 = vmatmul.msk.bf16.gmra.mxu1 %vm604_vm1, %v4573_v34 }
 0x2ac   : > { %3894 = vst.msk [vmem:[%s4686_s18 + $0x200] sm:$0xff] %vm604_vm1, %v2097_v45  ;;  %v6227_v45 = vld [vmem:[#allocation22_spill] sm:$0xff] }
 0x2ad   : > { %v2526_v37 = vrot.slane %v6227_v45, 3 }
 0x2ae   : > { %3943 = vmatmul.msk.bf16.gmra.mxu2 %vm604_vm1, %v5138_v60 }
 0x2af   : > { %v2015_v6 = vpop.f32.mrf.mxu3  ;;  %v1580_v0 = vpop.f32.mrf.mxu0 }
 0x2b0   : > { %v2062_v33 = vadd.f32 %v2015_v6, %v1830_v4  ;;  %v1683_v19 = vadd.f32 %v1682_v57, %v1580_v0  ;;  %v1684_v40 = vpop.f32.mrf.mxu1 }
 0x2b1   : > { %v1786_v43 = vpop.f32.mrf.mxu2 }
 0x2b2   : > { %v2098_v5 = vadd.f32 %v5165_v51, %v2062_v33  ;;  %3907 = vmatmul.msk.bf16.gmra.mxu0 %vm604_vm1, %v4584_v44  ;;  %v1831_v34 = vadd.f32 %v1786_v43, %v1683_v19  ;;  %v2527_v33 = vor.u32 %v2526_v37, %v2525_v63  ;;  %v6228_v37 = vld [vmem:[#allocation25_spill] sm:$0xff] }
 0x2b4   : > { %3895 = vst.msk [vmem:[%s4686_s18 + $0x208] sm:$0xff] %vm604_vm1, %v2098_v5  ;;  %3961 = vmatmul.msk.bf16.gmra.mxu3 %vm604_vm1, %v5460_v20 }
 0x2b7   : > { %v2018_v26 = vpop.f32.mrf.mxu3  ;;  %v1582_v32 = vpop.f32.mrf.mxu0 }
 0x2b8   : > { %v2063_v29 = vadd.f32 %v2018_v26, %v1831_v34  ;;  %v1685_v4 = vadd.f32 %v1684_v40, %v1582_v32  ;;  %v1687_v6 = vpop.f32.mrf.mxu1 }
 0x2b9   : > { %v1788_v22 = vpop.f32.mrf.mxu2 }
 0x2ba   : > { %v2099_v57 = vadd.f32 %v5165_v51, %v2063_v29  ;;  %v1832_v0 = vadd.f32 %v1788_v22, %v1685_v4  ;;  %v5479_v29 = vsel %vm2497_vm6, %v2523_v1, %v2527_v33  ;;  %v2529_v1 = vrot.slane %v6228_v37, 2 }
 0x2bb   : > { %3926 = vmatmul.msk.bf16.gmra.mxu1 %vm604_vm1, %v4598_v58 }
 0x2bc   : > { %3896 = vst.msk [vmem:[%s4686_s18 + $0x210] sm:$0xff] %vm604_vm1, %v2099_v57  ;;  %v6229_v57 = vld [vmem:[#allocation24_spill] sm:$0xff] }
 0x2bd   : > { %v2530_v4 = vrot.slane %v6229_v57, 3 }
 0x2be   : > { %3944 = vmatmul.msk.bf16.gmra.mxu2 %vm604_vm1, %v5156_v53 }
 0x2bf   : > { %v2020_v19 = vpop.f32.mrf.mxu3  ;;  %v1585_v5 = vpop.f32.mrf.mxu0 }
 0x2c0   : > { %v2064_v43 = vadd.f32 %v2020_v19, %v1832_v0  ;;  %v1688_v34 = vadd.f32 %v1687_v6, %v1585_v5  ;;  %v1689_v32 = vpop.f32.mrf.mxu1 }
 0x2c1   : > { %v1791_v26 = vpop.f32.mrf.mxu2 }
 0x2c2   : > { %v2100_v40 = vadd.f32 %v5165_v51, %v2064_v43  ;;  %3908 = vmatmul.msk.bf16.gmra.mxu0 %vm604_vm1, %v4609_v3  ;;  %v1833_v58 = vadd.f32 %v1791_v26, %v1688_v34  ;;  %v2531_v43 = vor.u32 %v2530_v4, %v2529_v1  ;;  %v6230_v4 = vld [vmem:[#allocation27_spill] sm:$0xff] }
 0x2c4   : > { %3897 = vst.msk [vmem:[%s4686_s18 + $0x218] sm:$0xff] %vm604_vm1, %v2100_v40  ;;  %3962 = vmatmul.msk.bf16.gmra.mxu3 %vm604_vm1, %v5479_v29 }
 0x2c7   : > { %v2023_v22 = vpop.f32.mrf.mxu3  ;;  %v1587_v63 = vpop.f32.mrf.mxu0 }
 0x2c8   : > { %v2065_v23 = vadd.f32 %v2023_v22, %v1833_v58  ;;  %v1690_v0 = vadd.f32 %v1689_v32, %v1587_v63  ;;  %v1692_v19 = vpop.f32.mrf.mxu1 }
 0x2c9   : > { %v1793_v45 = vpop.f32.mrf.mxu2 }
 0x2ca   : > { %v2101_v6 = vadd.f32 %v5165_v51, %v2065_v23  ;;  %v1834_v5 = vadd.f32 %v1793_v45, %v1690_v0  ;;  %v5498_v23 = vsel %vm2497_vm6, %v2527_v33, %v2531_v43  ;;  %v2533_v33 = vrot.slane %v6230_v4, 2 }
 0x2cb   : > { %3927 = vmatmul.msk.bf16.gmra.mxu1 %vm604_vm1, %v4623_v17 }
 0x2cc   : > { %3898 = vst.msk [vmem:[%s4686_s18 + $0x220] sm:$0xff] %vm604_vm1, %v2101_v6  ;;  %v6231_v6 = vld [vmem:[#allocation26_spill] sm:$0xff] }
 0x2cd   : > { %v2534_v0 = vrot.slane %v6231_v6, 3 }
 0x2ce   : > { %3945 = vmatmul.msk.bf16.gmra.mxu2 %vm604_vm1, %v5176_v46 }
 0x2cf   : > { %v2025_v34 = vpop.f32.mrf.mxu3  ;;  %v1590_v40 = vpop.f32.mrf.mxu0 }
 0x2d0   : > { %v2066_v26 = vadd.f32 %v2025_v34, %v1834_v5  ;;  %v1693_v58 = vadd.f32 %v1692_v19, %v1590_v40  ;;  %v1694_v63 = vpop.f32.mrf.mxu1 }
 0x2d1   : > { %v1796_v22 = vpop.f32.mrf.mxu2 }
 0x2d2   : > { %v2102_v32 = vadd.f32 %v5165_v51, %v2066_v26  ;;  %3909 = vmatmul.msk.bf16.gmra.mxu0 %vm604_vm1, %v4634_v31  ;;  %v1835_v17 = vadd.f32 %v1796_v22, %v1693_v58  ;;  %v2535_v26 = vor.u32 %v2534_v0, %v2533_v33  ;;  %v6232_v0 = vld [vmem:[#allocation29_spill] sm:$0xff] }
 0x2d4   : > { %3899 = vst.msk [vmem:[%s4686_s18 + $0x228] sm:$0xff] %vm604_vm1, %v2102_v32  ;;  %3963 = vmatmul.msk.bf16.gmra.mxu3 %vm604_vm1, %v5498_v23 }
 0x2d7   : > { %v2028_v45 = vpop.f32.mrf.mxu3  ;;  %v1592_v1 = vpop.f32.mrf.mxu0 }
 0x2d8   : > { %v2067_v37 = vadd.f32 %v2028_v45, %v1835_v17  ;;  %v1695_v5 = vadd.f32 %v1694_v63, %v1592_v1  ;;  %v2260_v34 = vpop.f32.mrf.mxu1 }
 0x2d9   : > { %v1798_v57 = vpop.f32.mrf.mxu2 }
 0x2da   : > { %v2103_v19 = vadd.f32 %v5165_v51, %v2067_v37  ;;  %v1836_v40 = vadd.f32 %v1798_v57, %v1695_v5  ;;  %v5517_v37 = vsel %vm2497_vm6, %v2531_v43, %v2535_v26  ;;  %v2537_v43 = vrot.slane %v6232_v0, 2 }
 0x2db   : > { %3928 = vmatmul.msk.bf16.gmra.mxu1 %vm604_vm1, %v4653_v55 }
 0x2dc   : > { %3900 = vst.msk [vmem:[%s4686_s18 + $0x230] sm:$0xff] %vm604_vm1, %v2103_v19  ;;  %v6233_v19 = vld [vmem:[#allocation28_spill] sm:$0xff] }
 0x2dd   : > { %v2538_v5 = vrot.slane %v6233_v19, 3 }
 0x2de   : > { %3946 = vmatmul.msk.bf16.gmra.mxu2 %vm604_vm1, %v5194_v42 }
 0x2df   : > { %v2030_v58 = vpop.f32.mrf.mxu3  ;;  %v2158_v32 = vpop.f32.mrf.mxu0 }
 0x2e0   : > { %v2068_v22 = vadd.f32 %v2030_v58, %v1836_v40  ;;  %v2261_v17 = vadd.f32 %v2260_v34, %v2158_v32  ;;  %v2262_v1 = vpop.f32.mrf.mxu1 }
 0x2e1   : > { %v2369_v45 = vpop.f32.mrf.mxu2 }
 0x2e2   : > { %v2104_v63 = vadd.f32 %v5165_v51, %v2068_v22  ;;  %3910 = vmatmul.msk.bf16.gmra.mxu0 %vm604_vm1, %v4664_v9  ;;  %v2459_v55 = vadd.f32 %v2369_v45, %v2261_v17  ;;  %v2539_v22 = vor.u32 %v2538_v5, %v2537_v43  ;;  %v6234_v5 = vld [vmem:[#allocation32_spill] sm:$0xff] }
 0x2e4   : > { %3901 = vst.msk [vmem:[%s4686_s18 + $0x238] sm:$0xff] %vm604_vm1, %v2104_v63  ;;  %3964 = vmatmul.msk.bf16.gmra.mxu3 %vm604_vm1, %v5517_v37 }
 0x2e7   : > { %v2644_v57 = vpop.f32.mrf.mxu3  ;;  %v2160_v33 = vpop.f32.mrf.mxu0 }
 0x2e8   : > { %v2734_v4 = vadd.f32 %v2644_v57, %v2459_v55  ;;  %v2263_v40 = vadd.f32 %v2262_v1, %v2160_v33  ;;  %v2265_v58 = vpop.f32.mrf.mxu1 }
 0x2e9   : > { %v2371_v6 = vpop.f32.mrf.mxu2 }
 0x2ea   : > { %v2770_v34 = vadd.f32 %v5165_v51, %v2734_v4  ;;  %v2460_v32 = vadd.f32 %v2371_v6, %v2263_v40  ;;  %v5536_v4 = vsel %vm2497_vm6, %v2535_v26, %v2539_v22  ;;  %v2541_v26 = vrot.slane %v6234_v5, 2 }
 0x2eb   : > { %3929 = vmatmul.msk.bf16.gmra.mxu1 %vm604_vm1, %v4692_v14 }
 0x2ec   : > { %3974 = vst.msk [vmem:[%s4686_s18 + $0x240] sm:$0xff] %vm604_vm1, %v2770_v34  ;;  %v6235_v34 = vld [vmem:[#allocation31_spill] sm:$0xff] }
 0x2ed   : > { %v2542_v40 = vrot.slane %v6235_v34, 3 }
 0x2ee   : > { %3947 = vmatmul.msk.bf16.gmra.mxu2 %vm604_vm1, %v5212_v18 }
 0x2ef   : > { %v2646_v17 = vpop.f32.mrf.mxu3  ;;  %v2163_v63 = vpop.f32.mrf.mxu0 }
 0x2f0   : > { %v2735_v45 = vadd.f32 %v2646_v17, %v2460_v32  ;;  %v2266_v55 = vadd.f32 %v2265_v58, %v2163_v63  ;;  %v2267_v33 = vpop.f32.mrf.mxu1 }
 0x2f1   : > { %v2374_v57 = vpop.f32.mrf.mxu2 }
 0x2f2   : > { %v2771_v1 = vadd.f32 %v5165_v51, %v2735_v45  ;;  %3911 = vmatmul.msk.bf16.gmra.mxu0 %vm604_vm1, %v4705_v59  ;;  %v2461_v14 = vadd.f32 %v2374_v57, %v2266_v55  ;;  %v5547_v51 = vld [vmem:[#allocation4] ss:$0 sm:$0xff]  ;;  %v2543_v45 = vor.u32 %v2542_v40, %v2541_v26  ;;  %v6236_v40 = vld [vmem:[#allocation36_spill] sm:$0xff] }
 0x2f4   : > { %3975 = vst.msk [vmem:[%s4686_s18 + $0x248] sm:$0xff] %vm604_vm1, %v2771_v1  ;;  %3965 = vmatmul.msk.bf16.gmra.mxu3 %vm604_vm1, %v5536_v4 }
 0x2f7   : > { %v2649_v6 = vpop.f32.mrf.mxu3  ;;  %v2165_v43 = vpop.f32.mrf.mxu0 }
 0x2f8   : > { %v2736_v0 = vadd.f32 %v2649_v6, %v2461_v14  ;;  %v2268_v32 = vadd.f32 %v2267_v33, %v2165_v43  ;;  %v2270_v17 = vpop.f32.mrf.mxu1 }
 0x2f9   : > { %v2376_v19 = vpop.f32.mrf.mxu2 }
 0x2fa   : > { %v2772_v58 = vadd.f32 %v5547_v51, %v2736_v0  ;;  %v2462_v63 = vadd.f32 %v2376_v19, %v2268_v32  ;;  %v5557_v0 = vsel %vm2497_vm6, %v2539_v22, %v2543_v45  ;;  %v2545_v22 = vrot.slane %v6236_v40, 2 }
 0x2fb   : > { %3930 = vmatmul.msk.bf16.gmra.mxu1 %vm604_vm1, %v6192_v16 }
 0x2fc   : > { %3976 = vst.msk [vmem:[%s4686_s18 + $0x250] sm:$0xff] %vm604_vm1, %v2772_v58  ;;  %v6237_v58 = vld [vmem:[#allocation35_spill] sm:$0xff] }
 0x2fd   : > { %v2546_v32 = vrot.slane %v6237_v58, 3 }
 0x2fe   : > { %3948 = vmatmul.msk.bf16.gmra.mxu2 %vm604_vm1, %v5230_v28 }
 0x2ff   : > { %v2651_v55 = vpop.f32.mrf.mxu3  ;;  %v2168_v1 = vpop.f32.mrf.mxu0 }
 0x300   : > { %v2737_v57 = vadd.f32 %v2651_v55, %v2462_v63  ;;  %v2271_v14 = vadd.f32 %v2270_v17, %v2168_v1  ;;  %v2272_v43 = vpop.f32.mrf.mxu1 }
 0x301   : > { %v2379_v6 = vpop.f32.mrf.mxu2 }
 0x302   : > { %v2773_v33 = vadd.f32 %v5547_v51, %v2737_v57  ;;  %3912 = vmatmul.msk.bf16.gmra.mxu0 %vm604_vm1, %v4742_v24  ;;  %v2463_v16 = vadd.f32 %v2379_v6, %v2271_v14  ;;  %v2547_v57 = vor.u32 %v2546_v32, %v2545_v22  ;;  %v6238_v32 = vld [vmem:[#allocation41_spill] sm:$0xff] }
 0x304   : > { %3977 = vst.msk [vmem:[%s4686_s18 + $0x258] sm:$0xff] %vm604_vm1, %v2773_v33  ;;  %3966 = vmatmul.msk.bf16.gmra.mxu3 %vm604_vm1, %v5557_v0 }
 0x307   : > { %v2654_v19 = vpop.f32.mrf.mxu3  ;;  %v2170_v26 = vpop.f32.mrf.mxu0 }
 0x308   : > { %v2738_v5 = vadd.f32 %v2654_v19, %v2463_v16  ;;  %v2273_v63 = vadd.f32 %v2272_v43, %v2170_v26  ;;  %v2275_v55 = vpop.f32.mrf.mxu1 }
 0x309   : > { %v2381_v34 = vpop.f32.mrf.mxu2 }
 0x30a   : > { %v2774_v17 = vadd.f32 %v5547_v51, %v2738_v5  ;;  %v2464_v1 = vadd.f32 %v2381_v34, %v2273_v63  ;;  %v5576_v5 = vsel %vm2497_vm6, %v2543_v45, %v2547_v57  ;;  %v2549_v45 = vrot.slane %v6238_v32, 2 }
 0x30b   : > { %3931 = vmatmul.msk.bf16.gmra.mxu1 %vm604_vm1, %v6195_v8 }
 0x30c   : > { %3978 = vst.msk [vmem:[%s4686_s18 + $0x260] sm:$0xff] %vm604_vm1, %v2774_v17  ;;  %v6239_v17 = vld [vmem:[#allocation40_spill] sm:$0xff] }
 0x30d   : > { %v2550_v63 = vrot.slane %v6239_v17, 3 }
 0x30e   : > { %3949 = vmatmul.msk.bf16.gmra.mxu2 %vm604_vm1, %v5248_v56 }
 0x30f   : > { %v2656_v14 = vpop.f32.mrf.mxu3  ;;  %v2173_v33 = vpop.f32.mrf.mxu0 }
 0x310   : > { %v2739_v6 = vadd.f32 %v2656_v14, %v2464_v1  ;;  %v2276_v16 = vadd.f32 %v2275_v55, %v2173_v33  ;;  %v2277_v26 = vpop.f32.mrf.mxu1 }
 0x311   : > { %v2384_v19 = vpop.f32.mrf.mxu2 }
 0x312   : > { %v2775_v43 = vadd.f32 %v5547_v51, %v2739_v6  ;;  %3913 = vmatmul.msk.bf16.gmra.mxu0 %vm604_vm1, %v6191_v54  ;;  %v2465_v8 = vadd.f32 %v2384_v19, %v2276_v16  ;;  %v2551_v6 = vor.u32 %v2550_v63, %v2549_v45  ;;  %v6240_v63 = vld [vmem:[#allocation46_spill] sm:$0xff] }
 0x314   : > { %3979 = vst.msk [vmem:[%s4686_s18 + $0x268] sm:$0xff] %vm604_vm1, %v2775_v43  ;;  %3967 = vmatmul.msk.bf16.gmra.mxu3 %vm604_vm1, %v5576_v5 }
 0x317   : > { %v2659_v34 = vpop.f32.mrf.mxu3  ;;  %v2175_v22 = vpop.f32.mrf.mxu0 }
 0x318   : > { %v2740_v40 = vadd.f32 %v2659_v34, %v2465_v8  ;;  %v2278_v1 = vadd.f32 %v2277_v26, %v2175_v22  ;;  %v2280_v14 = vpop.f32.mrf.mxu1 }
 0x319   : > { %v2386_v58 = vpop.f32.mrf.mxu2 }
 0x31a   : > { %v2776_v55 = vadd.f32 %v5547_v51, %v2740_v40  ;;  %v2466_v33 = vadd.f32 %v2386_v58, %v2278_v1  ;;  %v5595_v40 = vsel %vm2497_vm6, %v2547_v57, %v2551_v6  ;;  %v2553_v57 = vrot.slane %v6240_v63, 2 }
 0x31b   : > { %3932 = vmatmul.msk.bf16.gmra.mxu1 %vm604_vm1, %v6198_v15 }
 0x31c   : > { %3980 = vst.msk [vmem:[%s4686_s18 + $0x270] sm:$0xff] %vm604_vm1, %v2776_v55  ;;  %v6241_v55 = vld [vmem:[#allocation45_spill] sm:$0xff] }
 0x31d   : > { %v2554_v1 = vrot.slane %v6241_v55, 3 }
 0x31e   : > { %3950 = vmatmul.msk.bf16.gmra.mxu2 %vm604_vm1, %v5266_v2 }
 0x31f   : > { %v2661_v16 = vpop.f32.mrf.mxu3  ;;  %v2178_v43 = vpop.f32.mrf.mxu0 }
 0x320   : > { %v2741_v19 = vadd.f32 %v2661_v16, %v2466_v33  ;;  %v2281_v8 = vadd.f32 %v2280_v14, %v2178_v43  ;;  %v2282_v22 = vpop.f32.mrf.mxu1 }
 0x321   : > { %v2389_v34 = vpop.f32.mrf.mxu2 }
 0x322   : > { %v2777_v26 = vadd.f32 %v5547_v51, %v2741_v19  ;;  %3914 = vmatmul.msk.bf16.gmra.mxu0 %vm604_vm1, %v6194_v49  ;;  %v2467_v15 = vadd.f32 %v2389_v34, %v2281_v8  ;;  %v2555_v19 = vor.u32 %v2554_v1, %v2553_v57  ;;  %v6242_v1 = vld [vmem:[#allocation50_spill] sm:$0xff] }
 0x324   : > { %3981 = vst.msk [vmem:[%s4686_s18 + $0x278] sm:$0xff] %vm604_vm1, %v2777_v26  ;;  %3968 = vmatmul.msk.bf16.gmra.mxu3 %vm604_vm1, %v5595_v40 }
 0x327   : > { %v2664_v58 = vpop.f32.mrf.mxu3  ;;  %v2180_v45 = vpop.f32.mrf.mxu0 }
 0x328   : > { %v2742_v32 = vadd.f32 %v2664_v58, %v2467_v15  ;;  %v2283_v33 = vadd.f32 %v2282_v22, %v2180_v45  ;;  %v2285_v16 = vpop.f32.mrf.mxu1 }
 0x329   : > { %v2391_v17 = vpop.f32.mrf.mxu2 }
 0x32a   : > { %v2778_v14 = vadd.f32 %v5547_v51, %v2742_v32  ;;  %v2468_v43 = vadd.f32 %v2391_v17, %v2283_v33  ;;  %v5614_v32 = vsel %vm2497_vm6, %v2551_v6, %v2555_v19  ;;  %v2557_v6 = vrot.slane %v6242_v1, 2 }
 0x32b   : > { %3933 = vmatmul.msk.bf16.gmra.mxu1 %vm604_vm1, %v6201_v21 }
 0x32c   : > { %3982 = vst.msk [vmem:[%s4686_s18 + $0x280] sm:$0xff] %vm604_vm1, %v2778_v14  ;;  %v6243_v14 = vld [vmem:[#allocation49_spill] sm:$0xff] }
 0x32d   : > { %v2558_v33 = vrot.slane %v6243_v14, 3 }
 0x32e   : > { %3951 = vmatmul.msk.bf16.gmra.mxu2 %vm604_vm1, %v5284_v7 }
 0x32f   : > { %v2666_v8 = vpop.f32.mrf.mxu3  ;;  %v2183_v26 = vpop.f32.mrf.mxu0 }
 0x330   : > { %v2743_v34 = vadd.f32 %v2666_v8, %v2468_v43  ;;  %v2286_v15 = vadd.f32 %v2285_v16, %v2183_v26  ;;  %v2287_v45 = vpop.f32.mrf.mxu1  ;;  %v2559_v26 = vor.u32 %v2558_v33, %v2557_v6 }
 0x331   : > { %v2394_v58 = vpop.f32.mrf.mxu2 }
 0x332   : > { %v2779_v22 = vadd.f32 %v5547_v51, %v2743_v34  ;;  %3915 = vmatmul.msk.bf16.gmra.mxu0 %vm604_vm1, %v6197_v13  ;;  %v2469_v21 = vadd.f32 %v2394_v58, %v2286_v15  ;;  %v6244_v34 = vld [vmem:[#allocation47_spill] sm:$0xff]  ;;  %v6245_v58 = vld [vmem:[#allocation30_spill] sm:$0xff] }
 0x334   : > { %3983 = vst.msk [vmem:[%s4686_s18 + $0x288] sm:$0xff] %vm604_vm1, %v2779_v22  ;;  %3969 = vmatmul.msk.bf16.gmra.mxu3 %vm604_vm1, %v5614_v32 }
 0x337   : > { %v2669_v17 = vpop.f32.mrf.mxu3  ;;  %v2185_v57 = vpop.f32.mrf.mxu0 }
 0x338   : > { %v2744_v63 = vadd.f32 %v2669_v17, %v2469_v21  ;;  %v2288_v43 = vadd.f32 %v2287_v45, %v2185_v57  ;;  %v2290_v8 = vpop.f32.mrf.mxu1 }
 0x339   : > { %v2396_v55 = vpop.f32.mrf.mxu2 }
 0x33a   : > { %v2780_v16 = vadd.f32 %v5547_v51, %v2744_v63  ;;  %v2470_v15 = vadd.f32 %v2396_v55, %v2288_v43  ;;  %v5633_v63 = vsel %vm2497_vm6, %v2555_v19, %v2559_v26  ;;  %v6248_v19 = vshrl.u32 %v6206_v41, 16 }
 0x33b   : > { %3934 = vmatmul.msk.bf16.gmra.mxu1 %vm604_vm1, %v6244_v34  ;;  %6246 = vst [vmem:[#allocation33_spill] sm:$0xff] %v5633_v63 }
 0x33c   : > { %3984 = vst.msk [vmem:[%s4686_s18 + $0x290] sm:$0xff] %vm604_vm1, %v2780_v16  ;;  %v6247_v16 = vld [vmem:[#allocation48_spill] sm:$0xff]  ;;  %v2561_v34 = vrot.slane %v6248_v19, 2 }
 0x33e   : > { %3952 = vmatmul.msk.bf16.gmra.mxu2 %vm604_vm1, %v6245_v58 }
 0x33f   : > { %v2671_v22 = vpop.f32.mrf.mxu3  ;;  %v2188_v17 = vpop.f32.mrf.mxu0 }
 0x340   : > { %v2745_v21 = vadd.f32 %v2671_v22, %v2470_v15  ;;  %v2291_v1 = vadd.f32 %v2290_v8, %v2188_v17  ;;  %v2292_v57 = vpop.f32.mrf.mxu1  ;;  %v6249_v15 = vld [vmem:[#allocation54_spill] sm:$0xff] }
 0x341   : > { %v2399_v14 = vpop.f32.mrf.mxu2  ;;  %v2562_v22 = vrot.slane %v6249_v15, 3 }
 0x342   : > { %v2781_v45 = vadd.f32 %v5547_v51, %v2745_v21  ;;  %3916 = vmatmul.msk.bf16.gmra.mxu0 %vm604_vm1, %v6247_v16  ;;  %v2471_v55 = vadd.f32 %v2399_v14, %v2291_v1  ;;  %v6250_v1 = vld [vmem:[#allocation51_spill] sm:$0xff] }
 0x343   : > { %v2563_v14 = vor.u32 %v2562_v22, %v2561_v34 }
 0x344   : > { %3985 = vst.msk [vmem:[%s4686_s18 + $0x298] sm:$0xff] %vm604_vm1, %v2781_v45  ;;  %3970 = vmatmul.msk.bf16.gmra.mxu3 %vm604_vm1, %v5633_v63  ;;  %v6260_v63 = vld [vmem:[#allocation58_spill] sm:$0xff] }
 0x347   : > { %v2674_v6 = vpop.f32.mrf.mxu3  ;;  %v2190_v43 = vpop.f32.mrf.mxu0 }
 0x348   : > { %v2746_v33 = vadd.f32 %v2674_v6, %v2471_v55  ;;  %v2293_v17 = vadd.f32 %v2292_v57, %v2190_v43  ;;  %v2295_v58 = vpop.f32.mrf.mxu1  ;;  %v6251_v55 = vld [vmem:[#allocation38_spill] sm:$0xff] }
 0x349   : > { %v2401_v8 = vpop.f32.mrf.mxu2 }
 0x34a   : > { %v2782_v21 = vadd.f32 %v5547_v51, %v2746_v33  ;;  %v2472_v45 = vadd.f32 %v2401_v8, %v2293_v17  ;;  %v5653_v33 = vsel %vm2497_vm6, %v2559_v26, %v2563_v14 }
 0x34b   : > { %3935 = vmatmul.msk.bf16.gmra.mxu1 %vm604_vm1, %v6250_v1  ;;  %6252 = vst [vmem:[#allocation43_spill] sm:$0xff] %v5653_v33  ;;  %v6254_v1 = vld [vmem:[#allocation56_spill] sm:$0xff] }
 0x34c   : > { %3986 = vst.msk [vmem:[%s4686_s18 + $0x2a0] sm:$0xff] %vm604_vm1, %v2782_v21  ;;  %v6253_v21 = vld [vmem:[#allocation52_spill] sm:$0xff]  ;;  %v6255_v26 = vshrl.u32 %v6254_v1, 16 }
 0x34e   : > { %3953 = vmatmul.msk.bf16.gmra.mxu2 %vm604_vm1, %v6251_v55 }
 0x34f   : > { %v2676_v6 = vpop.f32.mrf.mxu3  ;;  %v2193_v19 = vpop.f32.mrf.mxu0 }
 0x350   : > { %v2747_v41 = vadd.f32 %v2676_v6, %v2472_v45  ;;  %v2296_v7 = vadd.f32 %v2295_v58, %v2193_v19  ;;  %v2297_v43 = vpop.f32.mrf.mxu1  ;;  %v2565_v45 = vrot.slane %v6255_v26, 2  ;;  %v6256_v6 = vshll.u32 %v6254_v1, 16 }
 0x351   : > { %v2404_v15 = vpop.f32.mrf.mxu2 }
 0x352   : > { %v2783_v57 = vadd.f32 %v5547_v51, %v2747_v41  ;;  %3917 = vmatmul.msk.bf16.gmra.mxu0 %vm604_vm1, %v6253_v21  ;;  %v2473_v8 = vadd.f32 %v2404_v15, %v2296_v7  ;;  %v2566_v41 = vrot.slane %v6256_v6, 3  ;;  %v6257_v7 = vld [vmem:[#allocation55_spill] sm:$0xff] }
 0x354   : > { %3987 = vst.msk [vmem:[%s4686_s18 + $0x2a8] sm:$0xff] %vm604_vm1, %v2783_v57  ;;  %3971 = vmatmul.msk.bf16.gmra.mxu3 %vm604_vm1, %v5653_v33  ;;  %v2567_v15 = vor.u32 %v2566_v41, %v2565_v45 }
 0x357   : > { %v2679_v34 = vpop.f32.mrf.mxu3  ;;  %v2195_v58 = vpop.f32.mrf.mxu0 }
 0x358   : > { %v2748_v22 = vadd.f32 %v2679_v34, %v2473_v8  ;;  %v2298_v55 = vadd.f32 %v2297_v43, %v2195_v58  ;;  %v2300_v21 = vpop.f32.mrf.mxu1  ;;  %v5677_v43 = vld [vmem:[%s4927_s22 + $0x10] sm:$0xff] }
 0x359   : > { %v2406_v17 = vpop.f32.mrf.mxu2  ;;  %6259 = vst [vmem:[#allocation37_spill] sm:$0xff] %v5677_v43  ;;  %v2352_v45 = vrot.slane %v5677_v43, 2 }
 0x35a   : > { %v2784_v19 = vadd.f32 %v5547_v51, %v2748_v22  ;;  %v2474_v57 = vadd.f32 %v2406_v17, %v2298_v55  ;;  %v5674_v22 = vsel %vm2497_vm6, %v2563_v14, %v2567_v15  ;;  %v2573_v14 = vshll.u32 %v5677_v43, 16 }
 0x35b   : > { %3936 = vmatmul.msk.bf16.gmra.mxu1 %vm604_vm1, %v6257_v7  ;;  %6258 = vst [vmem:[#allocation44_spill] sm:$0xff] %v5674_v22 }
 0x35c   : > { %3988 = vst.msk [vmem:[%s4686_s18 + $0x2b0] sm:$0xff] %vm604_vm1, %v2784_v19 }
 0x35e   : > { %3954 = vmatmul.msk.bf16.gmra.mxu2 %vm604_vm1, %v5344_v25 }
 0x35f   : > { %v2681_v8 = vpop.f32.mrf.mxu3  ;;  %v2198_v26 = vpop.f32.mrf.mxu0 }
 0x360   : > { %v2749_v34 = vadd.f32 %v2681_v8, %v2474_v57  ;;  %v2301_v33 = vadd.f32 %v2300_v21, %v2198_v26  ;;  %v2302_v19 = vpop.f32.mrf.mxu1  ;;  %v2570_v21 = vshrl.u32 %v5677_v43, 16 }
 0x361   : > { %v2409_v6 = vpop.f32.mrf.mxu2 }
 0x362   : > { %v2785_v58 = vadd.f32 %v5547_v51, %v2749_v34  ;;  %3918 = vmatmul.msk.bf16.gmra.mxu0 %vm604_vm1, %v6260_v63  ;;  %v2475_v55 = vadd.f32 %v2409_v6, %v2301_v33  ;;  %v2572_v8 = vrot.slane %v2570_v21, 2  ;;  %v2575_v34 = vrot.slane %v2573_v14, 3 }
 0x363   : > { %v6261_v33 = vrot.slane %v6254_v1, 2 }
 0x364   : > { %3989 = vst.msk [vmem:[%s4686_s18 + $0x2b8] sm:$0xff] %vm604_vm1, %v2785_v58  ;;  %3972 = vmatmul.msk.bf16.gmra.mxu3 %vm604_vm1, %v5674_v22  ;;  %v6262_v22 = vld [vmem:[#allocation59_spill] sm:$0xff]  ;;  %v2576_v43 = vor.u32 %v2575_v34, %v2572_v8 }
 0x365   : > { %v2353_v6 = vsel %vm1839_vm5, %v6261_v33, %v2352_v45  ;;  %v4208_v33 = vld [vmem:[%s4405_s11 + $0x10] sm:$0xff] }
 0x366   : > { %v5699_v1 = vsel %vm2497_vm6, %v2567_v15, %v2576_v43 }
 0x367   : > { %v2684_v17 = vpop.f32.mrf.mxu3  ;;  %v2200_v7 = vpop.f32.mrf.mxu0 }
 0x368   : > { %v2750_v41 = vadd.f32 %v2684_v17, %v2475_v55  ;;  %v2303_v58 = vadd.f32 %v2302_v19, %v2200_v7  ;;  %v2305_v25 = vpop.f32.mrf.mxu1 }
 0x369   : > { %v2411_v57 = vpop.f32.mrf.mxu2 }
 0x36a   : > { %v2786_v26 = vadd.f32 %v5547_v51, %v2750_v41  ;;  %v2476_v55 = vadd.f32 %v2411_v57, %v2303_v58 }
 0x36b   : > { %3937 = vmatmul.msk.bf16.gmra.mxu1 %vm604_vm1, %v6262_v22 }
 0x36c   : > { %3990 = vst.msk [vmem:[%s4686_s18 + $0x2c0] sm:$0xff] %vm604_vm1, %v2786_v26  ;;  %v6263_v26 = vld [vmem:[#allocation60_spill] sm:$0xff] }
 0x36e   : > { %3955 = vmatmul.msk.bf16.gmra.mxu2 %vm604_vm1, %v2353_v6  ;;  %v3194_v6 = vrot.slane %v4208_v33, 3 }
 0x36f   : > { %v2686_v21 = vpop.f32.mrf.mxu3  ;;  %v2203_v17 = vpop.f32.mrf.mxu0 }
 0x370   : > { %v2751_v14 = vadd.f32 %v2686_v21, %v2476_v55  ;;  %v2306_v41 = vadd.f32 %v2305_v25, %v2203_v17  ;;  %v2307_v7 = vpop.f32.mrf.mxu1  ;;  %v4209_v55 = vld [vmem:[%s4405_s11 + $0x18] sm:$0xff] }
 0x371   : > { %v2414_v19 = vpop.f32.mrf.mxu2  ;;  %v3195_v21 = vrot.slane %v4209_v55, 3  ;;  %v4210_v55 = vld [vmem:[%s4405_s11 + $0x20] sm:$0xff] }
 0x372   : > { %v2787_v45 = vadd.f32 %v5547_v51, %v2751_v14  ;;  %3919 = vmatmul.msk.bf16.gmra.mxu0 %vm604_vm1, %v6263_v26  ;;  %v2477_v22 = vadd.f32 %v2414_v19, %v2306_v41 }
 0x374   : > { %3991 = vst.msk [vmem:[%s4686_s18 + $0x2c8] sm:$0xff] %vm604_vm1, %v2787_v45  ;;  %3973 = vmatmul.msk.bf16.gmra.mxu3 %vm604_vm1, %v5699_v1 }
 0x377   : > { %v2689_v25 = vpop.f32.mrf.mxu3  ;;  %v2205_v8 = vpop.f32.mrf.mxu0 }
 0x378   : > { %v2752_v57 = vadd.f32 %v2689_v25, %v2477_v22  ;;  %v2308_v43 = vadd.f32 %v2307_v7, %v2205_v8  ;;  %v2310_v58 = vpop.f32.mrf.mxu1  ;;  %v3196_v22 = vsel %vm3193_vm7, %v3194_v6, %v3195_v21 }
 0x379   : > { %v2416_v34 = vpop.f32.mrf.mxu2 }
 0x37a   : > { %v2788_v15 = vadd.f32 %v5547_v51, %v2752_v57  ;;  %v2478_v14 = vadd.f32 %v2416_v34, %v2308_v43  ;;  %v6264_v57 = vld [vmem:[#allocation61_spill] sm:$0xff] }
 0x37b   : > { %4028 = vmatmul.msk.bf16.vlgmr.msrb.gmra.mxu1 %vm604_vm1, %v4451_v39 }
 0x37c   : > { %3992 = vst.msk [vmem:[%s4686_s18 + $0x2d0] sm:$0xff] %vm604_vm1, %v2788_v15 }
 0x37e   : > { %4046 = vmatmul.msk.bf16.vlgmr.msrb.gmra.mxu2 %vm604_vm1, %v5365_v35 }
 0x37f   : > { %v2691_v17 = vpop.f32.mrf.mxu3  ;;  %v2208_v19 = vpop.f32.mrf.mxu0 }
 0x380   : > { %v2753_v41 = vadd.f32 %v2691_v17, %v2478_v14  ;;  %v2311_v45 = vadd.f32 %v2310_v58, %v2208_v19  ;;  %v2312_v25 = vpop.f32.mrf.mxu1  ;;  %v3197_v14 = vrot.slane %v4210_v55, 3 }
 0x381   : > { %v2419_v7 = vpop.f32.mrf.mxu2 }
 0x382   : > { %v2789_v39 = vadd.f32 %v5547_v51, %v2753_v41  ;;  %4010 = vmatmul.msk.bf16.vlgmr.msrb.gmra.mxu0 %vm604_vm1, %v6264_v57  ;;  %v2479_v8 = vadd.f32 %v2419_v7, %v2311_v45 }
 0x384   : > { %3993 = vst.msk [vmem:[%s4686_s18 + $0x2d8] sm:$0xff] %vm604_vm1, %v2789_v39  ;;  %4064 = vmatmul.msk.bf16.vlgmr.msrb.gmra.mxu3 %vm604_vm1, %v3196_v22  ;;  %v3198_v39 = vsel %vm3193_vm7, %v3195_v21, %v3197_v14 }
 0x387   : > { %v2694_v35 = vpop.f32.mrf.mxu3  ;;  %v2210_v15 = vpop.f32.mrf.mxu0 }
 0x388   : > { %v2754_v34 = vadd.f32 %v2694_v35, %v2479_v8  ;;  %v2313_v33 = vadd.f32 %v2312_v25, %v2210_v15  ;;  %v2315_v6 = vpop.f32.mrf.mxu1 }
 0x389   : > { %v2421_v43 = vpop.f32.mrf.mxu2 }
 0x38a   : > { %v2790_v58 = vadd.f32 %v5547_v51, %v2754_v34  ;;  %v2480_v17 = vadd.f32 %v2421_v43, %v2313_v33 }
 0x38b   : > { %4029 = vmatmul.msk.bf16.gmra.mxu1 %vm604_vm1, %v4476_v50 }
 0x38c   : > { %3994 = vst.msk [vmem:[%s4686_s18 + $0x2e0] sm:$0xff] %vm604_vm1, %v2790_v58 }
 0x38e   : > { %4047 = vmatmul.msk.bf16.gmra.mxu2 %vm604_vm1, %v5384_v10 }
 0x38f   : > { %v2696_v41 = vpop.f32.mrf.mxu3  ;;  %v2213_v45 = vpop.f32.mrf.mxu0 }
 0x390   : > { %v2755_v19 = vadd.f32 %v2696_v41, %v2480_v17  ;;  %v2316_v7 = vadd.f32 %v2315_v6, %v2213_v45  ;;  %v2317_v57 = vpop.f32.mrf.mxu1 }
 0x391   : > { %v2424_v22 = vpop.f32.mrf.mxu2 }
 0x392   : > { %v2791_v25 = vadd.f32 %v5547_v51, %v2755_v19  ;;  %4011 = vmatmul.msk.bf16.gmra.mxu0 %vm604_vm1, %v5048_v47  ;;  %v2481_v50 = vadd.f32 %v2424_v22, %v2316_v7  ;;  %v4211_v47 = vld [vmem:[%s4405_s11 + $0x28] sm:$0xff] }
 0x393   : > { %v3199_v58 = vrot.slane %v4211_v47, 3 }
 0x394   : > { %3995 = vst.msk [vmem:[%s4686_s18 + $0x2e8] sm:$0xff] %vm604_vm1, %v2791_v25  ;;  %4065 = vmatmul.msk.bf16.gmra.mxu3 %vm604_vm1, %v3198_v39 }
 0x395   : > { %v3200_v45 = vsel %vm3193_vm7, %v3197_v14, %v3199_v58 }
 0x397   : > { %v2699_v10 = vpop.f32.mrf.mxu3  ;;  %v2215_v35 = vpop.f32.mrf.mxu0 }
 0x398   : > { %v2756_v8 = vadd.f32 %v2699_v10, %v2481_v50  ;;  %v2318_v43 = vadd.f32 %v2317_v57, %v2215_v35  ;;  %v2320_v21 = vpop.f32.mrf.mxu1 }
 0x399   : > { %v2426_v34 = vpop.f32.mrf.mxu2 }
 0x39a   : > { %v2792_v15 = vadd.f32 %v5547_v51, %v2756_v8  ;;  %v2482_v33 = vadd.f32 %v2426_v34, %v2318_v43 }
 0x39b   : > { %4030 = vmatmul.msk.bf16.gmra.mxu1 %vm604_vm1, %v4507_v62 }
 0x39c   : > { %3996 = vst.msk [vmem:[%s4686_s18 + $0x2f0] sm:$0xff] %vm604_vm1, %v2792_v15 }
 0x39e   : > { %4048 = vmatmul.msk.bf16.gmra.mxu2 %vm604_vm1, %v5403_v61 }
 0x39f   : > { %v2701_v6 = vpop.f32.mrf.mxu3  ;;  %v2218_v17 = vpop.f32.mrf.mxu0 }
 0x3a0   : > { %v2757_v55 = vadd.f32 %v2701_v6, %v2482_v33  ;;  %v2321_v41 = vadd.f32 %v2320_v21, %v2218_v17  ;;  %v2322_v22 = vpop.f32.mrf.mxu1 }
 0x3a1   : > { %v2429_v19 = vpop.f32.mrf.mxu2 }
 0x3a2   : > { %v2793_v7 = vadd.f32 %v5547_v51, %v2757_v55  ;;  %4012 = vmatmul.msk.bf16.gmra.mxu0 %vm604_vm1, %v5066_v38  ;;  %v2483_v62 = vadd.f32 %v2429_v19, %v2321_v41  ;;  %v4212_v38 = vld [vmem:[%s4405_s11 + $0x30] sm:$0xff] }
 0x3a3   : > { %v3201_v8 = vrot.slane %v4212_v38, 3 }
 0x3a4   : > { %3997 = vst.msk [vmem:[%s4686_s18 + $0x2f8] sm:$0xff] %vm604_vm1, %v2793_v7  ;;  %4066 = vmatmul.msk.bf16.gmra.mxu3 %vm604_vm1, %v3200_v45 }
 0x3a5   : > { %v3202_v33 = vsel %vm3193_vm7, %v3199_v58, %v3201_v8 }
 0x3a7   : > { %v2704_v61 = vpop.f32.mrf.mxu3  ;;  %v2220_v25 = vpop.f32.mrf.mxu0 }
 0x3a8   : > { %v2758_v39 = vadd.f32 %v2704_v61, %v2483_v62  ;;  %v2323_v10 = vadd.f32 %v2322_v22, %v2220_v25  ;;  %v2325_v14 = vpop.f32.mrf.mxu1 }
 0x3a9   : > { %v2431_v57 = vpop.f32.mrf.mxu2 }
 0x3aa   : > { %v2794_v50 = vadd.f32 %v5547_v51, %v2758_v39  ;;  %v2484_v35 = vadd.f32 %v2431_v57, %v2323_v10 }
 0x3ab   : > { %4031 = vmatmul.msk.bf16.gmra.mxu1 %vm604_vm1, %v4533_v11 }
 0x3ac   : > { %3998 = vst.msk [vmem:[%s4686_s18 + $0x300] sm:$0xff] %vm604_vm1, %v2794_v50 }
 0x3ae   : > { %4049 = vmatmul.msk.bf16.gmra.mxu2 %vm604_vm1, %v5422_v12 }
 0x3af   : > { %v2706_v34 = vpop.f32.mrf.mxu3  ;;  %v2223_v43 = vpop.f32.mrf.mxu0 }
 0x3b0   : > { %v2759_v15 = vadd.f32 %v2706_v34, %v2484_v35  ;;  %v2326_v21 = vadd.f32 %v2325_v14, %v2223_v43  ;;  %v2327_v55 = vpop.f32.mrf.mxu1 }
 0x3b1   : > { %v2434_v47 = vpop.f32.mrf.mxu2 }
 0x3b2   : > { %v2795_v6 = vadd.f32 %v5547_v51, %v2759_v15  ;;  %4013 = vmatmul.msk.bf16.gmra.mxu0 %vm604_vm1, %v5084_v36  ;;  %v2485_v11 = vadd.f32 %v2434_v47, %v2326_v21  ;;  %v4213_v36 = vld [vmem:[%s4405_s11 + $0x38] sm:$0xff] }
 0x3b3   : > { %v3203_v22 = vrot.slane %v4213_v36, 3 }
 0x3b4   : > { %3999 = vst.msk [vmem:[%s4686_s18 + $0x308] sm:$0xff] %vm604_vm1, %v2795_v6  ;;  %4067 = vmatmul.msk.bf16.gmra.mxu3 %vm604_vm1, %v3202_v33 }
 0x3b5   : > { %v3204_v10 = vsel %vm3193_vm7, %v3201_v8, %v3203_v22 }
 0x3b7   : > { %v2709_v12 = vpop.f32.mrf.mxu3  ;;  %v2225_v41 = vpop.f32.mrf.mxu0 }
 0x3b8   : > { %v2760_v17 = vadd.f32 %v2709_v12, %v2485_v11  ;;  %v2328_v7 = vadd.f32 %v2327_v55, %v2225_v41  ;;  %v2330_v58 = vpop.f32.mrf.mxu1 }
 0x3b9   : > { %v2436_v19 = vpop.f32.mrf.mxu2 }
 0x3ba   : > { %v2796_v45 = vadd.f32 %v5547_v51, %v2760_v17  ;;  %v2486_v62 = vadd.f32 %v2436_v19, %v2328_v7 }
 0x3bb   : > { %4032 = vmatmul.msk.bf16.gmra.mxu1 %vm604_vm1, %v4559_v27 }
 0x3bc   : > { %4000 = vst.msk [vmem:[%s4686_s18 + $0x310] sm:$0xff] %vm604_vm1, %v2796_v45 }
 0x3be   : > { %4050 = vmatmul.msk.bf16.gmra.mxu2 %vm604_vm1, %v5441_v30 }
 0x3bf   : > { %v2711_v61 = vpop.f32.mrf.mxu3  ;;  %v2228_v25 = vpop.f32.mrf.mxu0 }
 0x3c0   : > { %v2761_v39 = vadd.f32 %v2711_v61, %v2486_v62  ;;  %v2331_v57 = vadd.f32 %v2330_v58, %v2228_v25  ;;  %v2332_v38 = vpop.f32.mrf.mxu1 }
 0x3c1   : > { %v2439_v50 = vpop.f32.mrf.mxu2 }
 0x3c2   : > { %v2797_v14 = vadd.f32 %v5547_v51, %v2761_v39  ;;  %4014 = vmatmul.msk.bf16.gmra.mxu0 %vm604_vm1, %v5102_v48  ;;  %v2487_v27 = vadd.f32 %v2439_v50, %v2331_v57  ;;  %v4214_v48 = vld [vmem:[%s4405_s11 + $0x40] sm:$0xff] }
 0x3c3   : > { %v3205_v47 = vrot.slane %v4214_v48, 3 }
 0x3c4   : > { %4001 = vst.msk [vmem:[%s4686_s18 + $0x318] sm:$0xff] %vm604_vm1, %v2797_v14  ;;  %4068 = vmatmul.msk.bf16.gmra.mxu3 %vm604_vm1, %v3204_v10 }
 0x3c5   : > { %v3206_v41 = vsel %vm3193_vm7, %v3203_v22, %v3205_v47 }
 0x3c7   : > { %v2714_v30 = vpop.f32.mrf.mxu3  ;;  %v2230_v34 = vpop.f32.mrf.mxu0 }
 0x3c8   : > { %v2762_v35 = vadd.f32 %v2714_v30, %v2487_v27  ;;  %v2333_v21 = vadd.f32 %v2332_v38, %v2230_v34  ;;  %v2335_v8 = vpop.f32.mrf.mxu1 }
 0x3c9   : > { %v2441_v15 = vpop.f32.mrf.mxu2 }
 0x3ca   : > { %v2798_v43 = vadd.f32 %v5547_v51, %v2762_v35  ;;  %v2488_v33 = vadd.f32 %v2441_v15, %v2333_v21 }
 0x3cb   : > { %4033 = vmatmul.msk.bf16.gmra.mxu1 %vm604_vm1, %v4584_v44 }
 0x3cc   : > { %4002 = vst.msk [vmem:[%s4686_s18 + $0x320] sm:$0xff] %vm604_vm1, %v2798_v43 }
 0x3ce   : > { %4051 = vmatmul.msk.bf16.gmra.mxu2 %vm604_vm1, %v5460_v20 }
 0x3cf   : > { %v2716_v6 = vpop.f32.mrf.mxu3  ;;  %v2233_v11 = vpop.f32.mrf.mxu0 }
 0x3d0   : > { %v2763_v55 = vadd.f32 %v2716_v6, %v2488_v33  ;;  %v2336_v12 = vadd.f32 %v2335_v8, %v2233_v11  ;;  %v2337_v45 = vpop.f32.mrf.mxu1 }
 0x3d1   : > { %v2444_v17 = vpop.f32.mrf.mxu2 }
 0x3d2   : > { %v2799_v19 = vadd.f32 %v5547_v51, %v2763_v55  ;;  %4015 = vmatmul.msk.bf16.gmra.mxu0 %vm604_vm1, %v5120_v52  ;;  %v2489_v44 = vadd.f32 %v2444_v17, %v2336_v12  ;;  %v4215_v52 = vld [vmem:[%s4405_s11 + $0x48] sm:$0xff] }
 0x3d3   : > { %v3207_v39 = vrot.slane %v4215_v52, 3 }
 0x3d4   : > { %4003 = vst.msk [vmem:[%s4686_s18 + $0x328] sm:$0xff] %vm604_vm1, %v2799_v19  ;;  %4069 = vmatmul.msk.bf16.gmra.mxu3 %vm604_vm1, %v3206_v41 }
 0x3d5   : > { %v3208_v27 = vsel %vm3193_vm7, %v3205_v47, %v3207_v39 }
 0x3d7   : > { %v2719_v20 = vpop.f32.mrf.mxu3  ;;  %v2235_v58 = vpop.f32.mrf.mxu0 }
 0x3d8   : > { %v2764_v7 = vadd.f32 %v2719_v20, %v2489_v44  ;;  %v2338_v61 = vadd.f32 %v2337_v45, %v2235_v58  ;;  %v2340_v22 = vpop.f32.mrf.mxu1 }
 0x3d9   : > { %v2446_v36 = vpop.f32.mrf.mxu2 }
 0x3da   : > { %v2800_v62 = vadd.f32 %v5547_v51, %v2764_v7  ;;  %v2490_v25 = vadd.f32 %v2446_v36, %v2338_v61 }
 0x3db   : > { %4034 = vmatmul.msk.bf16.gmra.mxu1 %vm604_vm1, %v4609_v3 }
 0x3dc   : > { %4004 = vst.msk [vmem:[%s4686_s18 + $0x330] sm:$0xff] %vm604_vm1, %v2800_v62 }
 0x3de   : > { %4052 = vmatmul.msk.bf16.gmra.mxu2 %vm604_vm1, %v5479_v29 }
 0x3df   : > { %v2721_v57 = vpop.f32.mrf.mxu3  ;;  %v2238_v10 = vpop.f32.mrf.mxu0 }
 0x3e0   : > { %v2765_v50 = vadd.f32 %v2721_v57, %v2490_v25  ;;  %v2341_v14 = vadd.f32 %v2340_v22, %v2238_v10  ;;  %v2342_v35 = vpop.f32.mrf.mxu1 }
 0x3e1   : > { %v2449_v38 = vpop.f32.mrf.mxu2 }
 0x3e2   : > { %v2801_v30 = vadd.f32 %v5547_v51, %v2765_v50  ;;  %4016 = vmatmul.msk.bf16.gmra.mxu0 %vm604_vm1, %v5138_v60  ;;  %v2491_v3 = vadd.f32 %v2449_v38, %v2341_v14  ;;  %v4216_v60 = vld [vmem:[%s4405_s11 + $0x50] sm:$0xff] }
 0x3e3   : > { %v3209_v47 = vrot.slane %v4216_v60, 3 }
 0x3e4   : > { %4005 = vst.msk [vmem:[%s4686_s18 + $0x338] sm:$0xff] %vm604_vm1, %v2801_v30  ;;  %4070 = vmatmul.msk.bf16.gmra.mxu3 %vm604_vm1, %v3208_v27 }
 0x3e5   : > { %v3210_v41 = vsel %vm3193_vm7, %v3207_v39, %v3209_v47 }
 0x3e7   : > { %v2724_v29 = vpop.f32.mrf.mxu3  ;;  %v2240_v15 = vpop.f32.mrf.mxu0 }
 0x3e8   : > { %v2766_v34 = vadd.f32 %v2724_v29, %v2491_v3  ;;  %v2343_v8 = vadd.f32 %v2342_v35, %v2240_v15  ;;  %v2345_v48 = vpop.f32.mrf.mxu1 }
 0x3e9   : > { %v2451_v43 = vpop.f32.mrf.mxu2 }
 0x3ea   : > { %v2802_v21 = vadd.f32 %v5547_v51, %v2766_v34  ;;  %v2492_v33 = vadd.f32 %v2451_v43, %v2343_v8 }
 0x3eb   : > { %4035 = vmatmul.msk.bf16.gmra.mxu1 %vm604_vm1, %v4634_v31 }
 0x3ec   : > { %4006 = vst.msk [vmem:[%s4686_s18 + $0x340] sm:$0xff] %vm604_vm1, %v2802_v21 }
 0x3ee   : > { %4053 = vmatmul.msk.bf16.gmra.mxu2 %vm604_vm1, %v5498_v23 }
 0x3ef   : > { %v2726_v6 = vpop.f32.mrf.mxu3  ;;  %v2243_v11 = vpop.f32.mrf.mxu0 }
 0x3f0   : > { %v2767_v55 = vadd.f32 %v2726_v6, %v2492_v33  ;;  %v2346_v12 = vadd.f32 %v2345_v48, %v2243_v11  ;;  %v2347_v45 = vpop.f32.mrf.mxu1 }
 0x3f1   : > { %v2454_v17 = vpop.f32.mrf.mxu2 }
 0x3f2   : > { %v2803_v19 = vadd.f32 %v5547_v51, %v2767_v55  ;;  %4017 = vmatmul.msk.bf16.gmra.mxu0 %vm604_vm1, %v5156_v53  ;;  %v2493_v31 = vadd.f32 %v2454_v17, %v2346_v12  ;;  %v4217_v53 = vld [vmem:[%s4405_s11 + $0x58] sm:$0xff] }
 0x3f3   : > { %v3211_v61 = vrot.slane %v4217_v53, 3 }
 0x3f4   : > { %4007 = vst.msk [vmem:[%s4686_s18 + $0x348] sm:$0xff] %vm604_vm1, %v2803_v19  ;;  %4071 = vmatmul.msk.bf16.gmra.mxu3 %vm604_vm1, %v3210_v41 }
 0x3f5   : > { %v3212_v10 = vsel %vm3193_vm7, %v3209_v47, %v3211_v61 }
 0x3f7   : > { %v2729_v23 = vpop.f32.mrf.mxu3  ;;  %v2245_v20 = vpop.f32.mrf.mxu0 }
 0x3f8   : > { %v2768_v44 = vadd.f32 %v2729_v23, %v2493_v31  ;;  %v2348_v36 = vadd.f32 %v2347_v45, %v2245_v20  ;;  %v2961_v62 = vpop.f32.mrf.mxu1 }
 0x3f9   : > { %v2456_v7 = vpop.f32.mrf.mxu2 }
 0x3fa   : > { %v2804_v58 = vadd.f32 %v5547_v51, %v2768_v44  ;;  %v2494_v22 = vadd.f32 %v2456_v7, %v2348_v36 }
 0x3fb   : > { %4036 = vmatmul.msk.bf16.gmra.mxu1 %vm604_vm1, %v4664_v9 }
 0x3fc   : > { %4008 = vst.msk [vmem:[%s4686_s18 + $0x350] sm:$0xff] %vm604_vm1, %v2804_v58 }
 0x3fe   : > { %4054 = vmatmul.msk.bf16.gmra.mxu2 %vm604_vm1, %v5517_v37 }
 0x3ff   : > { %v2731_v52 = vpop.f32.mrf.mxu3  ;;  %v2859_v25 = vpop.f32.mrf.mxu0 }
 0x400   : > { %v2769_v39 = vadd.f32 %v2731_v52, %v2494_v22  ;;  %v2962_v57 = vadd.f32 %v2961_v62, %v2859_v25  ;;  %v2963_v38 = vpop.f32.mrf.mxu1 }
 0x401   : > { %v3065_v50 = vpop.f32.mrf.mxu2 }
 0x402   : > { %v2805_v14 = vadd.f32 %v5547_v51, %v2769_v39  ;;  %4018 = vmatmul.msk.bf16.gmra.mxu0 %vm604_vm1, %v5176_v46  ;;  %v3155_v9 = vadd.f32 %v3065_v50, %v2962_v57  ;;  %v4218_v46 = vld [vmem:[%s4405_s11 + $0x60] sm:$0xff] }
 0x403   : > { %v3213_v15 = vrot.slane %v4218_v46, 3 }
 0x404   : > { %4009 = vst.msk [vmem:[%s4686_s18 + $0x358] sm:$0xff] %vm604_vm1, %v2805_v14  ;;  %4072 = vmatmul.msk.bf16.gmra.mxu3 %vm604_vm1, %v3212_v10 }
 0x405   : > { %v3214_v33 = vsel %vm3193_vm7, %v3211_v61, %v3213_v15 }
 0x407   : > { %v3297_v37 = vpop.f32.mrf.mxu3  ;;  %v2861_v30 = vpop.f32.mrf.mxu0 }
 0x408   : > { %v3387_v27 = vadd.f32 %v3297_v37, %v3155_v9  ;;  %v2964_v29 = vadd.f32 %v2963_v38, %v2861_v30  ;;  %v2966_v34 = vpop.f32.mrf.mxu1 }
 0x409   : > { %v3067_v35 = vpop.f32.mrf.mxu2 }
 0x40a   : > { %v3423_v3 = vadd.f32 %v5547_v51, %v3387_v27  ;;  %v3156_v43 = vadd.f32 %v3067_v35, %v2964_v29 }
 0x40b   : > { %4037 = vmatmul.msk.bf16.gmra.mxu1 %vm604_vm1, %v4705_v59 }
 0x40c   : > { %4082 = vst.msk [vmem:[%s4686_s18 + $0x360] sm:$0xff] %vm604_vm1, %v3423_v3 }
 0x40e   : > { %4055 = vmatmul.msk.bf16.gmra.mxu2 %vm604_vm1, %v5536_v4 }
 0x40f   : > { %v3299_v21 = vpop.f32.mrf.mxu3  ;;  %v2864_v48 = vpop.f32.mrf.mxu0 }
 0x410   : > { %v3388_v8 = vadd.f32 %v3299_v21, %v3156_v43  ;;  %v2967_v60 = vadd.f32 %v2966_v34, %v2864_v48  ;;  %v2968_v55 = vpop.f32.mrf.mxu1 }
 0x411   : > { %v3070_v47 = vpop.f32.mrf.mxu2 }
 0x412   : > { %v3424_v6 = vadd.f32 %v5547_v51, %v3388_v8  ;;  %4019 = vmatmul.msk.bf16.gmra.mxu0 %vm604_vm1, %v5194_v42  ;;  %v3157_v59 = vadd.f32 %v3070_v47, %v2967_v60  ;;  %v4219_v42 = vld [vmem:[%s4405_s11 + $0x68] sm:$0xff] }
 0x413   : > { %v3215_v31 = vrot.slane %v4219_v42, 3 }
 0x414   : > { %4083 = vst.msk [vmem:[%s4686_s18 + $0x368] sm:$0xff] %vm604_vm1, %v3424_v6  ;;  %4073 = vmatmul.msk.bf16.gmra.mxu3 %vm604_vm1, %v3214_v33 }
 0x415   : > { %v3216_v62 = vsel %vm3193_vm7, %v3213_v15, %v3215_v31 }
 0x417   : > { %v3302_v4 = vpop.f32.mrf.mxu3  ;;  %v2866_v12 = vpop.f32.mrf.mxu0 }
 0x418   : > { %v3389_v11 = vadd.f32 %v3302_v4, %v3157_v59  ;;  %v2969_v19 = vadd.f32 %v2968_v55, %v2866_v12  ;;  %v2971_v45 = vpop.f32.mrf.mxu1  ;;  %v5898_v4 = vld [vmem:[#allocation4] ss:$0 sm:$0xff] }
 0x419   : > { %v3072_v17 = vpop.f32.mrf.mxu2 }
 0x41a   : > { %v3425_v41 = vadd.f32 %v5547_v51, %v3389_v11  ;;  %v3158_v23 = vadd.f32 %v3072_v17, %v2969_v19 }
 0x41b   : > { %4038 = vmatmul.msk.bf16.gmra.mxu1 %vm604_vm1, %v4742_v24 }
 0x41c   : > { %4084 = vst.msk [vmem:[%s4686_s18 + $0x370] sm:$0xff] %vm604_vm1, %v3425_v41 }
 0x41e   : > { %4056 = vmatmul.msk.bf16.gmra.mxu2 %vm604_vm1, %v5557_v0 }
 0x41f   : > { %v3304_v44 = vpop.f32.mrf.mxu3  ;;  %v2869_v7 = vpop.f32.mrf.mxu0 }
 0x420   : > { %v3390_v20 = vadd.f32 %v3304_v44, %v3158_v23  ;;  %v2972_v58 = vadd.f32 %v2971_v45, %v2869_v7  ;;  %v2973_v61 = vpop.f32.mrf.mxu1 }
 0x421   : > { %v3075_v36 = vpop.f32.mrf.mxu2 }
 0x422   : > { %v3426_v53 = vadd.f32 %v5547_v51, %v3390_v20  ;;  %4020 = vmatmul.msk.bf16.gmra.mxu0 %vm604_vm1, %v5212_v18  ;;  %v3159_v24 = vadd.f32 %v3075_v36, %v2972_v58  ;;  %v4220_v18 = vld [vmem:[%s4405_s11 + $0x70] sm:$0xff] }
 0x423   : > { %v3217_v10 = vrot.slane %v4220_v18, 3 }
 0x424   : > { %4085 = vst.msk [vmem:[%s4686_s18 + $0x378] sm:$0xff] %vm604_vm1, %v3426_v53  ;;  %4074 = vmatmul.msk.bf16.gmra.mxu3 %vm604_vm1, %v3216_v62 }
 0x425   : > { %v3218_v35 = vsel %vm3193_vm7, %v3215_v31, %v3217_v10 }
 0x427   : > { %v3307_v0 = vpop.f32.mrf.mxu3  ;;  %v2871_v52 = vpop.f32.mrf.mxu0 }
 0x428   : > { %v3391_v22 = vadd.f32 %v3307_v0, %v3159_v24  ;;  %v2974_v57 = vadd.f32 %v2973_v61, %v2871_v52  ;;  %v2976_v50 = vpop.f32.mrf.mxu1 }
 0x429   : > { %v3077_v39 = vpop.f32.mrf.mxu2 }
 0x42a   : > { %v3427_v25 = vadd.f32 %v5547_v51, %v3391_v22  ;;  %v3160_v14 = vadd.f32 %v3077_v39, %v2974_v57 }
 0x42b   : > { %4039 = vmatmul.msk.bf16.gmra.mxu1 %vm604_vm1, %v6191_v54 }
 0x42c   : > { %4086 = vst.msk [vmem:[%s4686_s18 + $0x380] sm:$0xff] %vm604_vm1, %v3427_v25 }
 0x42e   : > { %4057 = vmatmul.msk.bf16.gmra.mxu2 %vm604_vm1, %v5576_v5 }
 0x42f   : > { %v3309_v38 = vpop.f32.mrf.mxu3  ;;  %v2874_v37 = vpop.f32.mrf.mxu0 }
 0x430   : > { %v3392_v9 = vadd.f32 %v3309_v38, %v3160_v14  ;;  %v2977_v27 = vadd.f32 %v2976_v50, %v2874_v37  ;;  %v2978_v29 = vpop.f32.mrf.mxu1 }
 0x431   : > { %v3080_v30 = vpop.f32.mrf.mxu2 }
 0x432   : > { %v3428_v3 = vadd.f32 %v5547_v51, %v3392_v9  ;;  %4021 = vmatmul.msk.bf16.gmra.mxu0 %vm604_vm1, %v5230_v28  ;;  %v3161_v54 = vadd.f32 %v3080_v30, %v2977_v27  ;;  %v4221_v28 = vld [vmem:[%s4405_s11 + $0x78] sm:$0xff] }
 0x433   : > { %v3219_v48 = vrot.slane %v4221_v28, 3  ;;  %v4225_v28 = vld [vmem:[%s4927_s22] sm:$0xff] }
 0x434   : > { %4087 = vst.msk [vmem:[%s4686_s18 + $0x388] sm:$0xff] %vm604_vm1, %v3428_v3  ;;  %4075 = vmatmul.msk.bf16.gmra.mxu3 %vm604_vm1, %v3218_v35 }
 0x437   : > { %v3312_v5 = vpop.f32.mrf.mxu3  ;;  %v2876_v46 = vpop.f32.mrf.mxu0 }
 0x438   : > { %v3393_v34 = vadd.f32 %v3312_v5, %v3161_v54  ;;  %v2979_v21 = vadd.f32 %v2978_v29, %v2876_v46  ;;  %v2981_v8 = vpop.f32.mrf.mxu1  ;;  %v6266_v29 = vld [vmem:[#allocation34_spill] sm:$0xff] }
 0x439   : > { %v3082_v15 = vpop.f32.mrf.mxu2 }
 0x43a   : > { %v3429_v43 = vadd.f32 %v5547_v51, %v3393_v34  ;;  %v3162_v60 = vadd.f32 %v3082_v15, %v2979_v21  ;;  %v3220_v51 = vsel %vm3193_vm7, %v3217_v10, %v3219_v48  ;;  %v6265_v10 = vld [vmem:[#allocation33_spill] sm:$0xff] }
 0x43b   : > { %4040 = vmatmul.msk.bf16.gmra.mxu1 %vm604_vm1, %v6194_v49 }
 0x43c   : > { %4088 = vst.msk [vmem:[%s4686_s18 + $0x390] sm:$0xff] %vm604_vm1, %v3429_v43 }
 0x43e   : > { %4058 = vmatmul.msk.bf16.gmra.mxu2 %vm604_vm1, %v5595_v40 }
 0x43f   : > { %v3314_v47 = vpop.f32.mrf.mxu3  ;;  %v2879_v6 = vpop.f32.mrf.mxu0 }
 0x440   : > { %v3394_v33 = vadd.f32 %v3314_v47, %v3162_v60  ;;  %v2982_v55 = vadd.f32 %v2981_v8, %v2879_v6  ;;  %v2983_v49 = vpop.f32.mrf.mxu1  ;;  %v6267_v8 = vld [vmem:[#allocation52_spill] sm:$0xff]  ;;  %v6268_v47 = vld [vmem:[#allocation43_spill] sm:$0xff] }
 0x441   : > { %v3085_v59 = vpop.f32.mrf.mxu2 }
 0x442   : > { %v3430_v11 = vadd.f32 %v5898_v4, %v3394_v33  ;;  %4022 = vmatmul.msk.bf16.gmra.mxu0 %vm604_vm1, %v5248_v56  ;;  %v3163_v40 = vadd.f32 %v3085_v59, %v2982_v55  ;;  %v4223_v56 = vld [vmem:[%s4405_s11 + $0x80] sm:$0xff] }
 0x443   : > { %v3221_v23 = vrot.slane %v4223_v56, 3 }
 0x444   : > { %4089 = vst.msk [vmem:[%s4686_s18 + $0x398] sm:$0xff] %vm604_vm1, %v3430_v11  ;;  %4076 = vmatmul.msk.bf16.gmra.mxu3 %vm604_vm1, %v3220_v51 }
 0x445   : > { %v3222_v53 = vsel %vm3193_vm7, %v3219_v48, %v3221_v23  ;;  %v3225_v48 = vrot.slane %v4225_v28, 3 }
 0x447   : > { %v3317_v12 = vpop.f32.mrf.mxu3  ;;  %v2881_v41 = vpop.f32.mrf.mxu0 }
 0x448   : > { %v3395_v17 = vadd.f32 %v3317_v12, %v3163_v40  ;;  %v2984_v42 = vadd.f32 %v2983_v49, %v2881_v41  ;;  %v2986_v31 = vpop.f32.mrf.mxu1  ;;  %v6269_v12 = vld [vmem:[#allocation30_spill] sm:$0xff] }
 0x449   : > { %v3087_v19 = vpop.f32.mrf.mxu2 }
 0x44a   : > { %v3431_v45 = vadd.f32 %v5898_v4, %v3395_v17  ;;  %v3164_v44 = vadd.f32 %v3087_v19, %v2984_v42 }
 0x44b   : > { %4041 = vmatmul.msk.bf16.gmra.mxu1 %vm604_vm1, %v6197_v13 }
 0x44c   : > { %4090 = vst.msk [vmem:[%s4686_s18 + $0x3a0] sm:$0xff] %vm604_vm1, %v3431_v45 }
 0x44e   : > { %4059 = vmatmul.msk.bf16.gmra.mxu2 %vm604_vm1, %v5614_v32 }
 0x44f   : > { %v3319_v20 = vpop.f32.mrf.mxu3  ;;  %v2884_v58 = vpop.f32.mrf.mxu0 }
 0x450   : > { %v3396_v7 = vadd.f32 %v3319_v20, %v3164_v44  ;;  %v2987_v36 = vadd.f32 %v2986_v31, %v2884_v58  ;;  %v2988_v24 = vpop.f32.mrf.mxu1  ;;  %v4226_v44 = vld [vmem:[%s4927_s22 + $0x8] sm:$0xff] }
 0x451   : > { %v3090_v62 = vpop.f32.mrf.mxu2  ;;  %v3227_v20 = vrot.slane %v4226_v44, 3  ;;  %v6270_v58 = vld [vmem:[#allocation44_spill] sm:$0xff] }
 0x452   : > { %v3432_v61 = vadd.f32 %v5898_v4, %v3396_v7  ;;  %4023 = vmatmul.msk.bf16.gmra.mxu0 %vm604_vm1, %v5266_v2  ;;  %v3165_v13 = vadd.f32 %v3090_v62, %v2987_v36  ;;  %v4224_v2 = vld [vmem:[%s4405_s11 + $0x88] sm:$0xff] }
 0x453   : > { %v3223_v50 = vrot.slane %v4224_v2, 3 }
 0x454   : > { %4091 = vst.msk [vmem:[%s4686_s18 + $0x3a8] sm:$0xff] %vm604_vm1, %v3432_v61  ;;  %4077 = vmatmul.msk.bf16.gmra.mxu3 %vm604_vm1, %v3222_v53 }
 0x455   : > { %v3224_v30 = vsel %vm3193_vm7, %v3221_v23, %v3223_v50  ;;  %v3226_v11 = vsel %vm3193_vm7, %v3223_v50, %v3225_v48 }
 0x457   : > { %v3322_v32 = vpop.f32.mrf.mxu3  ;;  %v2886_v22 = vpop.f32.mrf.mxu0 }
 0x458   : > { %v3397_v0 = vadd.f32 %v3322_v32, %v3165_v13  ;;  %v2989_v25 = vadd.f32 %v2988_v24, %v2886_v22  ;;  %v2991_v57 = vpop.f32.mrf.mxu1  ;;  %v3228_v13 = vsel %vm3193_vm7, %v3225_v48, %v3227_v20  ;;  %v6271_v22 = vld [vmem:[#allocation38_spill] sm:$0xff] }
 0x459   : > { %v3092_v52 = vpop.f32.mrf.mxu2 }
 0x45a   : > { %v3433_v39 = vadd.f32 %v5898_v4, %v3397_v0  ;;  %v3166_v18 = vadd.f32 %v3092_v52, %v2989_v25 }
 0x45b   : > { %4042 = vmatmul.msk.bf16.gmra.mxu1 %vm604_vm1, %v6247_v16 }
 0x45c   : > { %4092 = vst.msk [vmem:[%s4686_s18 + $0x3b0] sm:$0xff] %vm604_vm1, %v3433_v39 }
 0x45e   : > { %4060 = vmatmul.msk.bf16.gmra.mxu2 %vm604_vm1, %v6265_v10  ;;  %v6272_v10 = vld [vmem:[#allocation37_spill] sm:$0xff] }
 0x45f   : > { %v3324_v14 = vpop.f32.mrf.mxu3  ;;  %v2889_v9 = vpop.f32.mrf.mxu0 }
 0x460   : > { %v3398_v38 = vadd.f32 %v3324_v14, %v3166_v18  ;;  %v2992_v37 = vadd.f32 %v2991_v57, %v2889_v9  ;;  %v2993_v3 = vpop.f32.mrf.mxu1  ;;  %v3229_v14 = vrot.slane %v6272_v10, 3 }
 0x461   : > { %v3095_v27 = vpop.f32.mrf.mxu2 }
 0x462   : > { %v3434_v35 = vadd.f32 %v5898_v4, %v3398_v38  ;;  %4024 = vmatmul.msk.bf16.gmra.mxu0 %vm604_vm1, %v6266_v29  ;;  %v3167_v16 = vadd.f32 %v3095_v27, %v2992_v37 }
 0x464   : > { %4093 = vst.msk [vmem:[%s4686_s18 + $0x3b8] sm:$0xff] %vm604_vm1, %v3434_v35  ;;  %4078 = vmatmul.msk.bf16.gmra.mxu3 %vm604_vm1, %v3224_v30 }
 0x467   : > { %v3327_v54 = vpop.f32.mrf.mxu3  ;;  %v2891_v34 = vpop.f32.mrf.mxu0 }
 0x468   : > { %v3399_v5 = vadd.f32 %v3327_v54, %v3167_v16  ;;  %v2994_v43 = vadd.f32 %v2993_v3, %v2891_v34  ;;  %v2996_v21 = vpop.f32.mrf.mxu1  ;;  %v3230_v3 = vsel %vm3193_vm7, %v3227_v20, %v3229_v14  ;;  %v6273_v54 = vld [vmem:[#allocation39_spill] sm:$0xff] }
 0x469   : > { %v3097_v46 = vpop.f32.mrf.mxu2 }
 0x46a   : > { %v3435_v15 = vadd.f32 %v5898_v4, %v3399_v5  ;;  %v3168_v60 = vadd.f32 %v3097_v46, %v2994_v43 }
 0x46b   : > { %4043 = vmatmul.msk.bf16.gmra.mxu1 %vm604_vm1, %v6267_v8 }
 0x46c   : > { %4094 = vst.msk [vmem:[%s4686_s18 + $0x3c0] sm:$0xff] %vm604_vm1, %v3435_v15 }
 0x46e   : > { %4061 = vmatmul.msk.bf16.gmra.mxu2 %vm604_vm1, %v6268_v47 }
 0x46f   : > { %v3329_v33 = vpop.f32.mrf.mxu3  ;;  %v2894_v55 = vpop.f32.mrf.mxu0 }
 0x470   : > { %v3400_v6 = vadd.f32 %v3329_v33, %v3168_v60  ;;  %v2997_v59 = vadd.f32 %v2996_v21, %v2894_v55  ;;  %v2998_v40 = vpop.f32.mrf.mxu1 }
 0x471   : > { %v3100_v51 = vpop.f32.mrf.mxu2 }
 0x472   : > { %v3436_v49 = vadd.f32 %v5898_v4, %v3400_v6  ;;  %4025 = vmatmul.msk.bf16.gmra.mxu0 %vm604_vm1, %v6269_v12  ;;  %v3169_v17 = vadd.f32 %v3100_v51, %v2997_v59 }
 0x474   : > { %4095 = vst.msk [vmem:[%s4686_s18 + $0x3c8] sm:$0xff] %vm604_vm1, %v3436_v49  ;;  %4079 = vmatmul.msk.bf16.gmra.mxu3 %vm604_vm1, %v3226_v11 }
 0x477   : > { %v3332_v41 = vpop.f32.mrf.mxu3  ;;  %v2896_v45 = vpop.f32.mrf.mxu0 }
 0x478   : > { %v3401_v19 = vadd.f32 %v3332_v41, %v3169_v17  ;;  %v2999_v56 = vadd.f32 %v2998_v40, %v2896_v45  ;;  %v3001_v23 = vpop.f32.mrf.mxu1 }
 0x479   : > { %v3102_v42 = vpop.f32.mrf.mxu2 }
 0x47a   : > { %v3437_v31 = vadd.f32 %v5898_v4, %v3401_v19  ;;  %v3170_v7 = vadd.f32 %v3102_v42, %v2999_v56 }
 0x47b   : > { %4044 = vmatmul.msk.bf16.gmra.mxu1 %vm604_vm1, %v6260_v63 }
 0x47c   : > { %4096 = vst.msk [vmem:[%s4686_s18 + $0x3d0] sm:$0xff] %vm604_vm1, %v3437_v31 }
 0x47e   : > { %4062 = vmatmul.msk.bf16.gmra.mxu2 %vm604_vm1, %v6270_v58 }
 0x47f   : > { %v3334_v36 = vpop.f32.mrf.mxu3  ;;  %v2899_v53 = vpop.f32.mrf.mxu0 }
 0x480   : > { %v3402_v62 = vadd.f32 %v3334_v36, %v3170_v7  ;;  %v3002_v61 = vadd.f32 %v3001_v23, %v2899_v53  ;;  %v3003_v0 = vpop.f32.mrf.mxu1 }
 0x481   : > { %v3105_v24 = vpop.f32.mrf.mxu2 }
 0x482   : > { %v3438_v32 = vadd.f32 %v5898_v4, %v3402_v62  ;;  %4026 = vmatmul.msk.bf16.gmra.mxu0 %vm604_vm1, %v6271_v22  ;;  %v3171_v63 = vadd.f32 %v3105_v24, %v3002_v61 }
 0x484   : > { %4097 = vst.msk [vmem:[%s4686_s18 + $0x3d8] sm:$0xff] %vm604_vm1, %v3438_v32  ;;  %4080 = vmatmul.msk.bf16.gmra.mxu3 %vm604_vm1, %v3228_v13 }
 0x487   : > { %v3337_v52 = vpop.f32.mrf.mxu3  ;;  %v2901_v25 = vpop.f32.mrf.mxu0 }
 0x488   : > { %v3403_v39 = vadd.f32 %v3337_v52, %v3171_v63  ;;  %v3004_v50 = vadd.f32 %v3003_v0, %v2901_v25  ;;  %v3006_v18 = vpop.f32.mrf.mxu1 }
 0x489   : > { %v3107_v57 = vpop.f32.mrf.mxu2 }
 0x48a   : > { %v3439_v2 = vadd.f32 %v5898_v4, %v3403_v39  ;;  %v3172_v38 = vadd.f32 %v3107_v57, %v3004_v50 }
 0x48b   : > { %4045 = vmatmul.msk.bf16.gmra.mxu1 %vm604_vm1, %v6263_v26 }
 0x48c   : > { %4098 = vst.msk [vmem:[%s4686_s18 + $0x3e0] sm:$0xff] %vm604_vm1, %v3439_v2 }
 0x48e   : > { %4063 = vmatmul.msk.bf16.gmra.mxu2 %vm604_vm1, %v5699_v1 }
 0x48f   : > { %v3339_v9 = vpop.f32.mrf.mxu3  ;;  %v2904_v27 = vpop.f32.mrf.mxu0 }
 0x490   : > { %v3404_v37 = vadd.f32 %v3339_v9, %v3172_v38  ;;  %v3007_v30 = vadd.f32 %v3006_v18, %v2904_v27  ;;  %v3008_v16 = vpop.f32.mrf.mxu1 }
 0x491   : > { %v3110_v35 = vpop.f32.mrf.mxu2 }
 0x492   : > { %v3440_v29 = vadd.f32 %v5898_v4, %v3404_v37  ;;  %4027 = vmatmul.msk.bf16.gmra.mxu0 %vm604_vm1, %v6273_v54  ;;  %v3173_v26 = vadd.f32 %v3110_v35, %v3007_v30 }
 0x494   : > { %4099 = vst.msk [vmem:[%s4686_s18 + $0x3e8] sm:$0xff] %vm604_vm1, %v3440_v29  ;;  %4081 = vmatmul.msk.bf16.gmra.mxu3 %vm604_vm1, %v3230_v3 }
 0x497   : > { %v3342_v1 = vpop.f32.mrf.mxu3  ;;  %v2906_v34 = vpop.f32.mrf.mxu0 }
 0x498   : > { %v3405_v5 = vadd.f32 %v3342_v1, %v3173_v26  ;;  %v3009_v43 = vadd.f32 %v3008_v16, %v2906_v34  ;;  %v3011_v21 = vpop.f32.mrf.mxu1 }
 0x499   : > { %v3112_v46 = vpop.f32.mrf.mxu2 }
 0x49a   : > { %v3441_v15 = vadd.f32 %v5898_v4, %v3405_v5  ;;  %v3174_v8 = vadd.f32 %v3112_v46, %v3009_v43 }
 0x49c   : > { %4100 = vst.msk [vmem:[%s4686_s18 + $0x3f0] sm:$0xff] %vm604_vm1, %v3441_v15 }
 0x49f   : > { %v3344_v28 = vpop.f32.mrf.mxu3  ;;  %v2909_v60 = vpop.f32.mrf.mxu0 }
 0x4a0   : > { %v3406_v48 = vadd.f32 %v3344_v28, %v3174_v8  ;;  %v3012_v47 = vadd.f32 %v3011_v21, %v2909_v60  ;;  %v3013_v55 = vpop.f32.mrf.mxu1 }
 0x4a1   : > { %v3115_v33 = vpop.f32.mrf.mxu2 }
 0x4a2   : > { %v3442_v6 = vadd.f32 %v5898_v4, %v3406_v48  ;;  %v3175_v59 = vadd.f32 %v3115_v33, %v3012_v47 }
 0x4a4   : > { %4101 = vst.msk [vmem:[%s4686_s18 + $0x3f8] sm:$0xff] %vm604_vm1, %v3442_v6 }
 0x4a7   : > { %v3347_v51 = vpop.f32.mrf.mxu3  ;;  %v2911_v49 = vpop.f32.mrf.mxu0 }
 0x4a8   : > { %v3407_v11 = vadd.f32 %v3347_v51, %v3175_v59  ;;  %v3014_v17 = vadd.f32 %v3013_v55, %v2911_v49  ;;  %v3016_v41 = vpop.f32.mrf.mxu1 }
 0x4a9   : > { %v3117_v40 = vpop.f32.mrf.mxu2 }
 0x4aa   : > { %v3443_v12 = vadd.f32 %v5898_v4, %v3407_v11  ;;  %v3176_v19 = vadd.f32 %v3117_v40, %v3014_v17 }
 0x4ac   : > { %4102 = vst.msk [vmem:[%s4686_s18 + $0x400] sm:$0xff] %vm604_vm1, %v3443_v12 }
 0x4af   : > { %v3349_v45 = vpop.f32.mrf.mxu3  ;;  %v2914_v31 = vpop.f32.mrf.mxu0 }
 0x4b0   : > { %v3408_v42 = vadd.f32 %v3349_v45, %v3176_v19  ;;  %v3017_v56 = vadd.f32 %v3016_v41, %v2914_v31  ;;  %v3018_v20 = vpop.f32.mrf.mxu1 }
 0x4b1   : > { %v3120_v23 = vpop.f32.mrf.mxu2 }
 0x4b2   : > { %v3444_v44 = vadd.f32 %v5898_v4, %v3408_v42  ;;  %v3177_v7 = vadd.f32 %v3120_v23, %v3017_v56 }
 0x4b4   : > { %4103 = vst.msk [vmem:[%s4686_s18 + $0x408] sm:$0xff] %vm604_vm1, %v3444_v44 }
 0x4b7   : > { %v3352_v58 = vpop.f32.mrf.mxu3  ;;  %v2916_v62 = vpop.f32.mrf.mxu0 }
 0x4b8   : > { %v3409_v36 = vadd.f32 %v3352_v58, %v3177_v7  ;;  %v3019_v24 = vadd.f32 %v3018_v20, %v2916_v62  ;;  %v3021_v13 = vpop.f32.mrf.mxu1 }
 0x4b9   : > { %v3122_v53 = vpop.f32.mrf.mxu2 }
 0x4ba   : > { %v3445_v61 = vadd.f32 %v5898_v4, %v3409_v36  ;;  %v3178_v32 = vadd.f32 %v3122_v53, %v3019_v24 }
 0x4bc   : > { %4104 = vst.msk [vmem:[%s4686_s18 + $0x410] sm:$0xff] %vm604_vm1, %v3445_v61 }
 0x4bf   : > { %v3354_v0 = vpop.f32.mrf.mxu3  ;;  %v2919_v63 = vpop.f32.mrf.mxu0 }
 0x4c0   : > { %v3410_v22 = vadd.f32 %v3354_v0, %v3178_v32  ;;  %v3022_v52 = vadd.f32 %v3021_v13, %v2919_v63  ;;  %v3023_v57 = vpop.f32.mrf.mxu1 }
 0x4c1   : > { %v3125_v39 = vpop.f32.mrf.mxu2 }
 0x4c2   : > { %v3446_v25 = vadd.f32 %v5898_v4, %v3410_v22  ;;  %v3179_v2 = vadd.f32 %v3125_v39, %v3022_v52 }
 0x4c4   : > { %4105 = vst.msk [vmem:[%s4686_s18 + $0x418] sm:$0xff] %vm604_vm1, %v3446_v25 }
 0x4c7   : > { %v3357_v50 = vpop.f32.mrf.mxu3  ;;  %v2921_v10 = vpop.f32.mrf.mxu0 }
 0x4c8   : > { %v3411_v18 = vadd.f32 %v3357_v50, %v3179_v2  ;;  %v3024_v9 = vadd.f32 %v3023_v57, %v2921_v10  ;;  %v3026_v37 = vpop.f32.mrf.mxu1 }
 0x4c9   : > { %v3127_v14 = vpop.f32.mrf.mxu2 }
 0x4ca   : > { %v3447_v38 = vadd.f32 %v5898_v4, %v3411_v18  ;;  %v3180_v27 = vadd.f32 %v3127_v14, %v3024_v9 }
 0x4cc   : > { %4106 = vst.msk [vmem:[%s4686_s18 + $0x420] sm:$0xff] %vm604_vm1, %v3447_v38 }
 0x4cf   : > { %v3359_v30 = vpop.f32.mrf.mxu3  ;;  %v2924_v3 = vpop.f32.mrf.mxu0 }
 0x4d0   : > { %v3412_v35 = vadd.f32 %v3359_v30, %v3180_v27  ;;  %v3027_v29 = vadd.f32 %v3026_v37, %v2924_v3  ;;  %v3028_v26 = vpop.f32.mrf.mxu1 }
 0x4d1   : > { %v3130_v16 = vpop.f32.mrf.mxu2 }
 0x4d2   : > { %v3448_v54 = vadd.f32 %v5898_v4, %v3412_v35  ;;  %v3181_v1 = vadd.f32 %v3130_v16, %v3027_v29 }
 0x4d4   : > { %4107 = vst.msk [vmem:[%s4686_s18 + $0x428] sm:$0xff] %vm604_vm1, %v3448_v54 }
 0x4d7   : > { %v3362_v5 = vpop.f32.mrf.mxu3  ;;  %v2926_v46 = vpop.f32.mrf.mxu0 }
 0x4d8   : > { %v3413_v34 = vadd.f32 %v3362_v5, %v3181_v1  ;;  %v3029_v21 = vadd.f32 %v3028_v26, %v2926_v46  ;;  %v3031_v8 = vpop.f32.mrf.mxu1 }
 0x4d9   : > { %v3132_v15 = vpop.f32.mrf.mxu2 }
 0x4da   : > { %v3449_v43 = vadd.f32 %v5898_v4, %v3413_v34  ;;  %v3182_v28 = vadd.f32 %v3132_v15, %v3029_v21 }
 0x4dc   : > { %4108 = vst.msk [vmem:[%s4686_s18 + $0x430] sm:$0xff] %vm604_vm1, %v3449_v43 }
 0x4df   : > { %v3364_v48 = vpop.f32.mrf.mxu3  ;;  %v2929_v47 = vpop.f32.mrf.mxu0 }
 0x4e0   : > { %v3414_v60 = vadd.f32 %v3364_v48, %v3182_v28  ;;  %v3032_v33 = vadd.f32 %v3031_v8, %v2929_v47  ;;  %v3033_v59 = vpop.f32.mrf.mxu1 }
 0x4e1   : > { %v3135_v6 = vpop.f32.mrf.mxu2 }
 0x4e2   : > { %v3450_v55 = vadd.f32 %v5898_v4, %v3414_v60  ;;  %v3183_v51 = vadd.f32 %v3135_v6, %v3032_v33 }
 0x4e4   : > { %4109 = vst.msk [vmem:[%s4686_s18 + $0x438] sm:$0xff] %vm604_vm1, %v3450_v55 }
 0x4e7   : > { %v3367_v11 = vpop.f32.mrf.mxu3  ;;  %v2931_v40 = vpop.f32.mrf.mxu0 }
 0x4e8   : > { %v3415_v49 = vadd.f32 %v3367_v11, %v3183_v51  ;;  %v3034_v41 = vadd.f32 %v3033_v59, %v2931_v40  ;;  %v3036_v19 = vpop.f32.mrf.mxu1 }
 0x4e9   : > { %v3137_v12 = vpop.f32.mrf.mxu2 }
 0x4ea   : > { %v3451_v17 = vadd.f32 %v5898_v4, %v3415_v49  ;;  %v3184_v45 = vadd.f32 %v3137_v12, %v3034_v41 }
 0x4ec   : > { %4110 = vst.msk [vmem:[%s4686_s18 + $0x440] sm:$0xff] %vm604_vm1, %v3451_v17 }
 0x4ef   : > { %v3369_v42 = vpop.f32.mrf.mxu3  ;;  %v2934_v56 = vpop.f32.mrf.mxu0 }
 0x4f0   : > { %v3416_v31 = vadd.f32 %v3369_v42, %v3184_v45  ;;  %v3037_v23 = vadd.f32 %v3036_v19, %v2934_v56  ;;  %v3038_v7 = vpop.f32.mrf.mxu1 }
 0x4f1   : > { %v3140_v44 = vpop.f32.mrf.mxu2 }
 0x4f2   : > { %v3452_v20 = vadd.f32 %v5898_v4, %v3416_v31  ;;  %v3185_v58 = vadd.f32 %v3140_v44, %v3037_v23 }
 0x4f4   : > { %4111 = vst.msk [vmem:[%s4686_s18 + $0x448] sm:$0xff] %vm604_vm1, %v3452_v20 }
 0x4f7   : > { %v3372_v36 = vpop.f32.mrf.mxu3  ;;  %v2936_v53 = vpop.f32.mrf.mxu0 }
 0x4f8   : > { %v3417_v62 = vadd.f32 %v3372_v36, %v3185_v58  ;;  %v3039_v13 = vadd.f32 %v3038_v7, %v2936_v53  ;;  %v3041_v32 = vpop.f32.mrf.mxu1 }
 0x4f9   : > { %v3142_v61 = vpop.f32.mrf.mxu2 }
 0x4fa   : > { %v3453_v24 = vadd.f32 %v5898_v4, %v3417_v62  ;;  %v3186_v0 = vadd.f32 %v3142_v61, %v3039_v13 }
 0x4fc   : > { %4112 = vst.msk [vmem:[%s4686_s18 + $0x450] sm:$0xff] %vm604_vm1, %v3453_v24 }
 0x4ff   : > { %v3374_v22 = vpop.f32.mrf.mxu3  ;;  %v2939_v52 = vpop.f32.mrf.mxu0 }
 0x500   : > { %v3418_v63 = vadd.f32 %v3374_v22, %v3186_v0  ;;  %v3042_v39 = vadd.f32 %v3041_v32, %v2939_v52  ;;  %v3043_v50 = vpop.f32.mrf.mxu1 }
 0x501   : > { %v3145_v25 = vpop.f32.mrf.mxu2 }
 0x502   : > { %v3454_v57 = vadd.f32 %v5898_v4, %v3418_v63  ;;  %v3187_v2 = vadd.f32 %v3145_v25, %v3042_v39 }
 0x504   : > { %4113 = vst.msk [vmem:[%s4686_s18 + $0x458] sm:$0xff] %vm604_vm1, %v3454_v57 }
 0x507   : > { %v3377_v18 = vpop.f32.mrf.mxu3  ;;  %v2941_v14 = vpop.f32.mrf.mxu0 }
 0x508   : > { %v3419_v10 = vadd.f32 %v3377_v18, %v3187_v2  ;;  %v3044_v37 = vadd.f32 %v3043_v50, %v2941_v14  ;;  %v3046_v30 = vpop.f32.mrf.mxu1 }
 0x509   : > { %v3147_v38 = vpop.f32.mrf.mxu2 }
 0x50a   : > { %v3455_v9 = vadd.f32 %v5898_v4, %v3419_v10  ;;  %v3188_v27 = vadd.f32 %v3147_v38, %v3044_v37 }
 0x50c   : > { %4114 = vst.msk [vmem:[%s4686_s18 + $0x460] sm:$0xff] %vm604_vm1, %v3455_v9 }
 0x50f   : > { %v3379_v35 = vpop.f32.mrf.mxu3  ;;  %v2944_v29 = vpop.f32.mrf.mxu0 }
 0x510   : > { %v3420_v3 = vadd.f32 %v3379_v35, %v3188_v27  ;;  %v3047_v16 = vadd.f32 %v3046_v30, %v2944_v29  ;;  %v3048_v15 = vpop.f32.mrf.mxu1 }
 0x511   : > { %v3150_v54 = vpop.f32.mrf.mxu2 }
 0x512   : > { %v3456_v26 = vadd.f32 %v5898_v4, %v3420_v3  ;;  %v3189_v1 = vadd.f32 %v3150_v54, %v3047_v16 }
 0x514   : > { %4115 = vst.msk [vmem:[%s4686_s18 + $0x468] sm:$0xff] %vm604_vm1, %v3456_v26 }
 0x517   : > { %v3382_v5 = vpop.f32.mrf.mxu3  ;;  %v2946_v46 = vpop.f32.mrf.mxu0 }
 0x518   : > { %v3421_v34 = vadd.f32 %v3382_v5, %v3189_v1  ;;  %v3049_v21 = vadd.f32 %v3048_v15, %v2946_v46 }
 0x519   : > { %v3152_v8 = vpop.f32.mrf.mxu2 }
 0x51a   : > { %v3457_v43 = vadd.f32 %v5898_v4, %v3421_v34  ;;  %v3190_v28 = vadd.f32 %v3152_v8, %v3049_v21 }
 0x51c   : > { %4116 = vst.msk [vmem:[%s4686_s18 + $0x470] sm:$0xff] %vm604_vm1, %v3457_v43 }
 0x51f   : > { %v3384_v48 = vpop.f32.mrf.mxu3 }
 0x520   : > { %v3422_v60 = vadd.f32 %v3384_v48, %v3190_v28 }
 0x522   : > { %v3458_v47 = vadd.f32 %v5898_v4, %v3422_v60 }
 0x524   : > { %4117 = vst.msk [vmem:[%s4686_s18 + $0x478] sm:$0xff] %vm604_vm1, %v3458_v47 }
 0x525 PF: > { %s16_s17 = sadd.s32 1, %s4317_s17   ;;  %s6274_s15 = smov %s4313_s16 }
 0x526   : > { %p13_p8 = scmp.ge.s32.totalorder %s16_s17, 4   ;;  %s6275_s16 = smov %s6277_s19 }
 0x528   :  { %15 = sbr.rel (!%p13_p8) target bundleno = 3 (0x3), region = 96 }
 0x52d   :  { %3526 = vsyncpa [#allocation3], 1 }
 0x52e   :  { %3528 = vsyncpa [#allocation3 + $0x1], 1 }
 0x52f   :  { %3529 = vsyncpa [#allocation5], 1 }

</bundles_post_ra>
